<compile_context>
chip_gen: v7x
topology: tpu7x:2x2x1
jax: 0.10.0
libtpu: 0.0.40
codegen_flags: <defaults>
</compile_context>

<pallas_src>
import functools

import jax
import jax.numpy as jnp
from jax import lax
from jax.experimental import pallas as pl
from jax.experimental.pallas import tpu as pltpu


def _gru_recurrence_kernel(xp_ref, w_hh_ref, b_hn_ref, out_ref, h_ref, *,
                           hidden_dim, chunk, unroll):
    """Recurrence for one (batch tile, time chunk) block, time-major layout.

    xp_ref  : (Tc, Bt, 3H) bf16   x @ W_ih + b_ih + [b_hr | b_hz | 0]
    w_hh_ref: (H, 3H)      bf16   fused hidden weights [W_hr | W_hz | W_hn]
    b_hn_ref: (1, H)       f32    n-gate hidden bias (stays inside r * (...))
    out_ref : (Tc, Bt, H)         hidden state for every step in the chunk
    h_ref   : (Bt, H)      f32    VMEM scratch carrying h across time chunks
    """
    c = pl.program_id(1)  # time-chunk index (innermost, sequential axis)

    @pl.when(c == 0)
    def _():
        h_ref[...] = jnp.zeros_like(h_ref)

    H = hidden_dim
    w_hh = w_hh_ref[...]          # resident; hoisted out of the loop
    b_hn = b_hn_ref[...]          # (1, H) f32

    def step(t, h):
        gx = xp_ref[t].astype(jnp.float32)                        # (Bt, 3H)
        hp = jnp.dot(h.astype(w_hh.dtype), w_hh,
                     preferred_element_type=jnp.float32)          # (Bt, 3H)
        r = jax.nn.sigmoid(gx[:, :H] + hp[:, :H])
        z = jax.nn.sigmoid(gx[:, H:2 * H] + hp[:, H:2 * H])
        n = jnp.tanh(gx[:, 2 * H:] + r * (hp[:, 2 * H:] + b_hn))
        h_new = (1.0 - z) * n + z * h
        out_ref[t] = h_new.astype(out_ref.dtype)                  # dense tile
        return h_new

    h_ref[...] = lax.fori_loop(0, chunk, step, h_ref[...], unroll=unroll)


def _round_up(x, m):
    return (x + m - 1) // m * m


def _pick_time_chunk(T, max_chunk=32):
    """Largest divisor of T <= max_chunk.  Time is the leading block dim in the
    time-major layout, so no (8,128) constraint applies to Tc."""
    best = 1
    for tc in range(1, min(T, max_chunk) + 1):
        if T % tc == 0:
            best = tc
    return best


def _pick_batch_tile(B, target=256):
    """Largest multiple-of-8 divisor of B <= target, preferring >= 2 batch
    tiles so the 'parallel' axis can split across v7x's two TensorCores.
    Falls back to the full batch (block == full array dim is always legal)."""
    cands = [d for d in range(8, min(B, target) + 1, 8) if B % d == 0]
    if not cands:
        return B
    split = [d for d in cands if B // d >= 2]
    return max(split) if split else max(cands)


def _pad_gate_cols(w, H, Hp):
    """(..., 3H) -> (..., 3Hp): zero-pad each of the r/z/n gate blocks."""
    if H == Hp:
        return w
    lead = w.shape[:-1]
    w3 = w.reshape(lead + (3, H))
    w3 = jnp.pad(w3, [(0, 0)] * len(lead) + [(0, 0), (0, Hp - H)])
    return w3.reshape(lead + (3 * Hp,))


def _pad_rows(w, rows_to):
    if w.shape[0] == rows_to:
        return w
    return jnp.pad(w, ((0, rows_to - w.shape[0]), (0, 0)))


def gru_layer_pallas(x_tm, w_ih, w_hh, b_ih, b_hh, *, out_dtype,
                     matmul_dtype=jnp.bfloat16, batch_tile=None, max_chunk=32):
    """One GRU layer on time-major input.  x_tm: (T, B, D) -> (T, B, H)."""
    T, B, D = x_tm.shape
    H = w_hh.shape[0]            # already lane-padded (multiple of 128)
    cd = matmul_dtype

    # Fold the linear hidden biases (b_hr, b_hz) into the hoisted projection;
    # b_hn must stay in-kernel inside r * (...) (PyTorch semantics).
    bias = b_ih.astype(jnp.float32).at[:, :2 * H].add(
        b_hh[:, :2 * H].astype(jnp.float32))
    b_hn = b_hh[:, 2 * H:].astype(jnp.float32)

    # Hoisted, time-parallel input projection: one big MXU GEMM per layer,
    # emitted in bf16 (halves HBM traffic / VMEM of the recurrence kernel).
    xp = jnp.dot(x_tm.reshape(T * B, D).astype(cd), w_ih.astype(cd),
                 preferred_element_type=jnp.float32) + bias
    xp = xp.reshape(T, B, 3 * H).astype(cd)

    Tc = _pick_time_chunk(T, max_chunk)
    Bt = _pick_batch_tile(B) if batch_tile is None else batch_tile
    assert B % Bt == 0 and T % Tc == 0

    # Explicit VMEM budget (default scoped limit is 32 MiB; v7x physical 64 MiB).
    xp_isz = jnp.dtype(cd).itemsize
    out_isz = jnp.dtype(out_dtype).itemsize
    need = (2 * Tc * Bt * 3 * H * xp_isz        # xp blocks (double-buffered)
            + 2 * Tc * Bt * H * out_isz         # out blocks (double-buffered)
            + 2 * H * 3 * H * xp_isz            # w_hh (headroom for 2 buffers)
            + 2 * 3 * H * 4                     # bias
            + Bt * H * 4)                       # f32 hidden-carry scratch
    vmem_limit = min(max(int(need * 1.5) + (1 << 20), 32 << 20), 100 << 20)

    kernel = functools.partial(
        _gru_recurrence_kernel, hidden_dim=H, chunk=Tc,
        unroll=Tc if Tc <= 16 else 8)

    grid_spec = pltpu.PrefetchScalarGridSpec(
        num_scalar_prefetch=0,
        grid=(B // Bt, T // Tc),
        in_specs=[
            pl.BlockSpec((Tc, Bt, 3 * H), lambda b, c: (c, b, 0)),     # xp
            pl.BlockSpec((H, 3 * H), lambda b, c: (0, 0),
                         pipeline_mode=pl.Buffered(1)),                # w_hh
            pl.BlockSpec((1, H), lambda b, c: (0, 0),
                         pipeline_mode=pl.Buffered(1)),                # b_hn
        ],
        out_specs=pl.BlockSpec((Tc, Bt, H), lambda b, c: (c, b, 0)),
        scratch_shapes=[pltpu.VMEM((Bt, H), jnp.float32)],             # h carry
    )

    # Time axis (c) must remain the innermost, sequential ("arbitrary") axis:
    # the hidden-state scratch carry and the c==0 reset depend on it.
    return pl.pallas_call(
        kernel,
        out_shape=jax.ShapeDtypeStruct((T, B, H), out_dtype),
        grid_spec=grid_spec,
        compiler_params=pltpu.CompilerParams(
            dimension_semantics=("parallel", "arbitrary"),
            vmem_limit_bytes=vmem_limit),
    )(xp, w_hh.astype(cd), b_hn)


def init_gru_params(key, input_dim, hidden_dim, layer_dim):
    """Deterministic init mirroring nn.GRU: U(-1/sqrt(H), 1/sqrt(H)).

    Weights are gate-fused along the output axis in PyTorch's (r, z, n) order:
    w_ih (D, 3H), w_hh (H, 3H), biases (1, 3H).
    """
    params = []
    k = 1.0 / float(hidden_dim) ** 0.5
    for layer in range(layer_dim):
        d_in = input_dim if layer == 0 else hidden_dim
        key, k1, k2, k3, k4 = jax.random.split(key, 5)
        w_ih = jax.random.uniform(k1, (d_in, 3 * hidden_dim), jnp.float32, -k, k)
        w_hh = jax.random.uniform(k2, (hidden_dim, 3 * hidden_dim), jnp.float32, -k, k)
        b_ih = jax.random.uniform(k3, (1, 3 * hidden_dim), jnp.float32, -k, k)
        b_hh = jax.random.uniform(k4, (1, 3 * hidden_dim), jnp.float32, -k, k)
        params.append((w_ih, w_hh, b_ih, b_hh))
    return params


@functools.partial(jax.jit, static_argnames=("return_sequences", "matmul_dtype"))
def gru_forward(x, params, return_sequences=True, matmul_dtype=jnp.bfloat16):
    """x: (B, T, D) batch-first, like the PyTorch module.  h0 = zeros.

    Intermediate-layer activations travel in bf16 (gate math stays f32 inside
    the kernel).  Hidden dim is lane-padded to a multiple of 128 with zeros
    (padded units provably stay 0); padding is sliced off at the end.
    """
    # TODO(synk): inter-layer dropout (p=0.2) only applies in training mode;
    # omitted here (eval-mode semantics).
    B, T, D = x.shape
    H = params[0][1].shape[0]
    Hp = _round_up(H, 128)

    h = jnp.transpose(x, (1, 0, 2))              # time-major (T, B, D), once
    n_layers = len(params)
    for i, (w_ih, w_hh, b_ih, b_hh) in enumerate(params):
        w_ih_p = _pad_gate_cols(w_ih, H, Hp)
        if i > 0:
            w_ih_p = _pad_rows(w_ih_p, Hp)       # previous layer emits Hp feats
        w_hh_p = _pad_rows(_pad_gate_cols(w_hh, H, Hp), Hp)
        b_ih_p = _pad_gate_cols(b_ih, H, Hp)
        b_hh_p = _pad_gate_cols(b_hh, H, Hp)
        last = i == n_layers - 1
        h = gru_layer_pallas(h, w_ih_p, w_hh_p, b_ih_p, b_hh_p,
                             out_dtype=(x.dtype if last else matmul_dtype),
                             matmul_dtype=matmul_dtype)
    h = h[..., :H]                               # strip lane padding
    if return_sequences:
        return jnp.transpose(h, (1, 0, 2))       # back to batch-first (B, T, H)
    return h[-1]                                 # (B, H): last timestep


def gru_forward_ref(x, params, return_sequences=True, matmul_dtype=jnp.bfloat16):
    """Pure-JAX reference (lax.scan) mirroring the kernel's numerics."""
    B, T, _ = x.shape
    out = x
    n_layers = len(params)
    for li, (w_ih, w_hh, b_ih, b_hh) in enumerate(params):
        H = w_hh.shape[0]
        D = out.shape[-1]
        cd = matmul_dtype
        bias = b_ih.astype(jnp.float32).at[:, :2 * H].add(
            b_hh[:, :2 * H].astype(jnp.float32))
        b_hn = b_hh[:, 2 * H:].astype(jnp.float32)
        xp = jnp.dot(out.reshape(B * T, D).astype(cd), w_ih.astype(cd),
                     preferred_element_type=jnp.float32) + bias
        xp = xp.reshape(B, T, 3 * H).astype(cd)
        w = w_hh.astype(cd)

        def step(h, gx):
            gx = gx.astype(jnp.float32)
            hp = jnp.dot(h.astype(cd), w, preferred_element_type=jnp.float32)
            r = jax.nn.sigmoid(gx[:, :H] + hp[:, :H])
            z = jax.nn.sigmoid(gx[:, H:2 * H] + hp[:, H:2 * H])
            n = jnp.tanh(gx[:, 2 * H:] + r * (hp[:, 2 * H:] + b_hn))
            h_new = (1.0 - z) * n + z * h
            return h_new, h_new

        h0 = jnp.zeros((B, H), jnp.float32)
        _, hs = jax.lax.scan(step, h0, jnp.transpose(xp, (1, 0, 2)))
        out_dtype = x.dtype if li == n_layers - 1 else cd
        out = jnp.transpose(hs, (1, 0, 2)).astype(out_dtype)
    if not return_sequences:
        out = out[:, -1, :]
    return out


if __name__ == "__main__":
    # Small shapes consistent with the module's forward: x is (batch, seq, input_dim).
    B, T, D, H, L = 2, 8, 16, 32, 3

    key = jax.random.PRNGKey(0)
    key, kx = jax.random.split(key)
    x = jax.random.normal(kx, (B, T, D), jnp.float32)
    params = init_gru_params(key, input_dim=D, hidden_dim=H, layer_dim=L)

    out = gru_forward(x, params, return_sequences=True)
    out = jax.block_until_ready(out)
    assert out.shape == (B, T, H), out.shape

    ref = gru_forward_ref(x, params, return_sequences=True)
    err = jnp.max(jnp.abs(out - ref))
    # bf16 inter-layer activations + padded-vs-unpadded contraction ordering
    # allow small ulp-level divergence between kernel and reference.
    assert jnp.allclose(out, ref, atol=2e-3, rtol=2e-3), f"max abs err {err}"

    print("KERNEL_OK")
</pallas_src>

<mosaic_0001>
module attributes {stable_mosaic.version = 11 : i64} {
  func.func @_gru_recurrence_kernel(%arg0: i32, %arg1: i32, %arg2: memref<8x2x384xbf16, #tpu.memory_space<vmem>>, %arg3: memref<128x384xbf16, #tpu.memory_space<vmem>>, %arg4: memref<1x128xf32, #tpu.memory_space<vmem>>, %arg5: memref<8x2x128xbf16, #tpu.memory_space<vmem>>, %arg6: memref<2x128xf32, #tpu.memory_space<vmem>>) attributes {dimension_semantics = [#tpu.dimension_semantics<parallel>, #tpu.dimension_semantics<arbitrary>], iteration_bounds = array<i64: 1, 1>, scalar_prefetch = 0 : i64, scratch_operands = 1 : i64, tpu.core_type = #tpu.core_type<tc>, window_params = [{transform_indices = @transform_0, window_bounds = array<i64: 8, 2, 384>}, {pipeline_mode = #tpu.pipeline_mode<synchronous>, transform_indices = @transform_1, window_bounds = array<i64: 128, 384>}, {pipeline_mode = #tpu.pipeline_mode<synchronous>, transform_indices = @transform_2, window_bounds = array<i64: 1, 128>}, {transform_indices = @transform_3, window_bounds = array<i64: 8, 2, 128>}]} {
    %c0_i32 = arith.constant 0 : i32
    %0 = arith.cmpi eq, %arg1, %c0_i32 : i32
    %1 = arith.extui %0 : i1 to i32
    %c0_i32_0 = arith.constant 0 : i32
    %2 = arith.cmpi ne, %1, %c0_i32_0 : i32
    scf.if %2 {
      %cst_72 = arith.constant 0.000000e+00 : f32
      %319 = vector.broadcast %cst_72 : f32 to vector<2x128xf32>
      %c0_73 = arith.constant 0 : index
      %c0_74 = arith.constant 0 : index
      %320 = vector.load %arg6[%c0_73, %c0_74] : memref<2x128xf32, #tpu.memory_space<vmem>>, vector<2x128xf32>
      tpu.vector_store %arg6[%c0_73, %c0_74], %319 {strides = array<i32>} : memref<2x128xf32, #tpu.memory_space<vmem>>, vector<2x128xf32>,
    } else {
    }
    %c0 = arith.constant 0 : index
    %c0_1 = arith.constant 0 : index
    %3 = vector.load %arg3[%c0, %c0_1] : memref<128x384xbf16, #tpu.memory_space<vmem>>, vector<128x384xbf16>
    %c0_2 = arith.constant 0 : index
    %c0_3 = arith.constant 0 : index
    %4 = vector.load %arg4[%c0_2, %c0_3] : memref<1x128xf32, #tpu.memory_space<vmem>>, vector<1x128xf32>
    %c0_4 = arith.constant 0 : index
    %c0_5 = arith.constant 0 : index
    %5 = vector.load %arg6[%c0_4, %c0_5] : memref<2x128xf32, #tpu.memory_space<vmem>>, vector<2x128xf32>
    %c0_i32_6 = arith.constant 0 : i32
    %6 = arith.index_cast %c0_i32_6 : i32 to index
    %c0_7 = arith.constant 0 : index
    %c0_8 = arith.constant 0 : index
    %7 = vector.load %arg2[%6, %c0_7, %c0_8] : memref<8x2x384xbf16, #tpu.memory_space<vmem>>, vector<1x2x384xbf16>
    %8 = vector.shape_cast %7 : vector<1x2x384xbf16> to vector<2x384xbf16>
    %9 = arith.extf %8 : vector<2x384xbf16> to vector<2x384xf32>
    %10 = arith.truncf %5 : vector<2x128xf32> to vector<2x128xbf16>
    %cst = arith.constant dense<0.000000e+00> : vector<2x384xf32>
    %11 = tpu.matmul %10, %3, %cst {dimension_numbers = #tpu.dot_dimension_numbers<[1], [0], [0], [1], [0, 0, 1, 1], [], []>} : vector<2x128xbf16>, vector<128x384xbf16>, vector<2x384xf32> -> vector<2x384xf32>
    %12 = vector.extract_strided_slice %9 {offsets = [0, 0], sizes = [2, 128], strides = [1, 1]} : vector<2x384xf32> to vector<2x128xf32>
    %13 = vector.extract_strided_slice %11 {offsets = [0, 0], sizes = [2, 128], strides = [1, 1]} : vector<2x384xf32> to vector<2x128xf32>
    %14 = arith.addf %12, %13 : vector<2x128xf32>
    %15 = arith.negf %14 : vector<2x128xf32>
    %16 = math.exp %15 : vector<2x128xf32>
    %cst_9 = arith.constant 1.000000e+00 : f32
    %17 = vector.broadcast %cst_9 : f32 to vector<2x128xf32>
    %18 = arith.addf %17, %16 : vector<2x128xf32>
    %19 = arith.divf %17, %18 : vector<2x128xf32>
    %20 = vector.extract_strided_slice %9 {offsets = [0, 128], sizes = [2, 128], strides = [1, 1]} : vector<2x384xf32> to vector<2x128xf32>
    %21 = vector.extract_strided_slice %11 {offsets = [0, 128], sizes = [2, 128], strides = [1, 1]} : vector<2x384xf32> to vector<2x128xf32>
    %22 = arith.addf %20, %21 : vector<2x128xf32>
    %23 = arith.negf %22 : vector<2x128xf32>
    %24 = math.exp %23 : vector<2x128xf32>
    %cst_10 = arith.constant 1.000000e+00 : f32
    %25 = vector.broadcast %cst_10 : f32 to vector<2x128xf32>
    %26 = arith.addf %25, %24 : vector<2x128xf32>
    %27 = arith.divf %25, %26 : vector<2x128xf32>
    %28 = vector.extract_strided_slice %9 {offsets = [0, 256], sizes = [2, 128], strides = [1, 1]} : vector<2x384xf32> to vector<2x128xf32>
    %29 = vector.extract_strided_slice %11 {offsets = [0, 256], sizes = [2, 128], strides = [1, 1]} : vector<2x384xf32> to vector<2x128xf32>
    %30 = vector.broadcast %4 : vector<1x128xf32> to vector<2x128xf32>
    %31 = arith.addf %29, %30 : vector<2x128xf32>
    %32 = arith.mulf %19, %31 : vector<2x128xf32>
    %33 = arith.addf %28, %32 : vector<2x128xf32>
    %34 = math.tanh %33 : vector<2x128xf32>
    %cst_11 = arith.constant 1.000000e+00 : f32
    %35 = vector.broadcast %cst_11 : f32 to vector<2x128xf32>
    %36 = arith.subf %35, %27 : vector<2x128xf32>
    %37 = arith.mulf %36, %34 : vector<2x128xf32>
    %38 = arith.mulf %27, %5 : vector<2x128xf32>
    %39 = arith.addf %37, %38 : vector<2x128xf32>
    %40 = arith.truncf %39 : vector<2x128xf32> to vector<2x128xbf16>
    %41 = arith.index_cast %c0_i32_6 : i32 to index
    %c0_12 = arith.constant 0 : index
    %c0_13 = arith.constant 0 : index
    %42 = vector.load %arg5[%41, %c0_12, %c0_13] : memref<8x2x128xbf16, #tpu.memory_space<vmem>>, vector<1x2x128xbf16>
    %43 = vector.shape_cast %42 : vector<1x2x128xbf16> to vector<2x128xbf16>
    %44 = vector.shape_cast %40 : vector<2x128xbf16> to vector<1x2x128xbf16>
    tpu.vector_store %arg5[%41, %c0_12, %c0_13], %44 {strides = array<i32>} : memref<8x2x128xbf16, #tpu.memory_space<vmem>>, vector<1x2x128xbf16>,
    %c1_i32 = arith.constant 1 : i32
    %45 = arith.index_cast %c1_i32 : i32 to index
    %c0_14 = arith.constant 0 : index
    %c0_15 = arith.constant 0 : index
    %46 = vector.load %arg2[%45, %c0_14, %c0_15] : memref<8x2x384xbf16, #tpu.memory_space<vmem>>, vector<1x2x384xbf16>
    %47 = vector.shape_cast %46 : vector<1x2x384xbf16> to vector<2x384xbf16>
    %48 = arith.extf %47 : vector<2x384xbf16> to vector<2x384xf32>
    %49 = arith.truncf %39 : vector<2x128xf32> to vector<2x128xbf16>
    %cst_16 = arith.constant dense<0.000000e+00> : vector<2x384xf32>
    %50 = tpu.matmul %49, %3, %cst_16 {dimension_numbers = #tpu.dot_dimension_numbers<[1], [0], [0], [1], [0, 0, 1, 1], [], []>} : vector<2x128xbf16>, vector<128x384xbf16>, vector<2x384xf32> -> vector<2x384xf32>
    %51 = vector.extract_strided_slice %48 {offsets = [0, 0], sizes = [2, 128], strides = [1, 1]} : vector<2x384xf32> to vector<2x128xf32>
    %52 = vector.extract_strided_slice %50 {offsets = [0, 0], sizes = [2, 128], strides = [1, 1]} : vector<2x384xf32> to vector<2x128xf32>
    %53 = arith.addf %51, %52 : vector<2x128xf32>
    %54 = arith.negf %53 : vector<2x128xf32>
    %55 = math.exp %54 : vector<2x128xf32>
    %cst_17 = arith.constant 1.000000e+00 : f32
    %56 = vector.broadcast %cst_17 : f32 to vector<2x128xf32>
    %57 = arith.addf %56, %55 : vector<2x128xf32>
    %58 = arith.divf %56, %57 : vector<2x128xf32>
    %59 = vector.extract_strided_slice %48 {offsets = [0, 128], sizes = [2, 128], strides = [1, 1]} : vector<2x384xf32> to vector<2x128xf32>
    %60 = vector.extract_strided_slice %50 {offsets = [0, 128], sizes = [2, 128], strides = [1, 1]} : vector<2x384xf32> to vector<2x128xf32>
    %61 = arith.addf %59, %60 : vector<2x128xf32>
    %62 = arith.negf %61 : vector<2x128xf32>
    %63 = math.exp %62 : vector<2x128xf32>
    %cst_18 = arith.constant 1.000000e+00 : f32
    %64 = vector.broadcast %cst_18 : f32 to vector<2x128xf32>
    %65 = arith.addf %64, %63 : vector<2x128xf32>
    %66 = arith.divf %64, %65 : vector<2x128xf32>
    %67 = vector.extract_strided_slice %48 {offsets = [0, 256], sizes = [2, 128], strides = [1, 1]} : vector<2x384xf32> to vector<2x128xf32>
    %68 = vector.extract_strided_slice %50 {offsets = [0, 256], sizes = [2, 128], strides = [1, 1]} : vector<2x384xf32> to vector<2x128xf32>
    %69 = vector.broadcast %4 : vector<1x128xf32> to vector<2x128xf32>
    %70 = arith.addf %68, %69 : vector<2x128xf32>
    %71 = arith.mulf %58, %70 : vector<2x128xf32>
    %72 = arith.addf %67, %71 : vector<2x128xf32>
    %73 = math.tanh %72 : vector<2x128xf32>
    %cst_19 = arith.constant 1.000000e+00 : f32
    %74 = vector.broadcast %cst_19 : f32 to vector<2x128xf32>
    %75 = arith.subf %74, %66 : vector<2x128xf32>
    %76 = arith.mulf %75, %73 : vector<2x128xf32>
    %77 = arith.mulf %66, %39 : vector<2x128xf32>
    %78 = arith.addf %76, %77 : vector<2x128xf32>
    %79 = arith.truncf %78 : vector<2x128xf32> to vector<2x128xbf16>
    %80 = arith.index_cast %c1_i32 : i32 to index
    %c0_20 = arith.constant 0 : index
    %c0_21 = arith.constant 0 : index
    %81 = vector.load %arg5[%80, %c0_20, %c0_21] : memref<8x2x128xbf16, #tpu.memory_space<vmem>>, vector<1x2x128xbf16>
    %82 = vector.shape_cast %81 : vector<1x2x128xbf16> to vector<2x128xbf16>
    %83 = vector.shape_cast %79 : vector<2x128xbf16> to vector<1x2x128xbf16>
    tpu.vector_store %arg5[%80, %c0_20, %c0_21], %83 {strides = array<i32>} : memref<8x2x128xbf16, #tpu.memory_space<vmem>>, vector<1x2x128xbf16>,
    %c2_i32 = arith.constant 2 : i32
    %84 = arith.index_cast %c2_i32 : i32 to index
    %c0_22 = arith.constant 0 : index
    %c0_23 = arith.constant 0 : index
    %85 = vector.load %arg2[%84, %c0_22, %c0_23] : memref<8x2x384xbf16, #tpu.memory_space<vmem>>, vector<1x2x384xbf16>
    %86 = vector.shape_cast %85 : vector<1x2x384xbf16> to vector<2x384xbf16>
    %87 = arith.extf %86 : vector<2x384xbf16> to vector<2x384xf32>
    %88 = arith.truncf %78 : vector<2x128xf32> to vector<2x128xbf16>
    %cst_24 = arith.constant dense<0.000000e+00> : vector<2x384xf32>
    %89 = tpu.matmul %88, %3, %cst_24 {dimension_numbers = #tpu.dot_dimension_numbers<[1], [0], [0], [1], [0, 0, 1, 1], [], []>} : vector<2x128xbf16>, vector<128x384xbf16>, vector<2x384xf32> -> vector<2x384xf32>
    %90 = vector.extract_strided_slice %87 {offsets = [0, 0], sizes = [2, 128], strides = [1, 1]} : vector<2x384xf32> to vector<2x128xf32>
    %91 = vector.extract_strided_slice %89 {offsets = [0, 0], sizes = [2, 128], strides = [1, 1]} : vector<2x384xf32> to vector<2x128xf32>
    %92 = arith.addf %90, %91 : vector<2x128xf32>
    %93 = arith.negf %92 : vector<2x128xf32>
    %94 = math.exp %93 : vector<2x128xf32>
    %cst_25 = arith.constant 1.000000e+00 : f32
    %95 = vector.broadcast %cst_25 : f32 to vector<2x128xf32>
    %96 = arith.addf %95, %94 : vector<2x128xf32>
    %97 = arith.divf %95, %96 : vector<2x128xf32>
    %98 = vector.extract_strided_slice %87 {offsets = [0, 128], sizes = [2, 128], strides = [1, 1]} : vector<2x384xf32> to vector<2x128xf32>
    %99 = vector.extract_strided_slice %89 {offsets = [0, 128], sizes = [2, 128], strides = [1, 1]} : vector<2x384xf32> to vector<2x128xf32>
    %100 = arith.addf %98, %99 : vector<2x128xf32>
    %101 = arith.negf %100 : vector<2x128xf32>
    %102 = math.exp %101 : vector<2x128xf32>
    %cst_26 = arith.constant 1.000000e+00 : f32
    %103 = vector.broadcast %cst_26 : f32 to vector<2x128xf32>
    %104 = arith.addf %103, %102 : vector<2x128xf32>
    %105 = arith.divf %103, %104 : vector<2x128xf32>
    %106 = vector.extract_strided_slice %87 {offsets = [0, 256], sizes = [2, 128], strides = [1, 1]} : vector<2x384xf32> to vector<2x128xf32>
    %107 = vector.extract_strided_slice %89 {offsets = [0, 256], sizes = [2, 128], strides = [1, 1]} : vector<2x384xf32> to vector<2x128xf32>
    %108 = vector.broadcast %4 : vector<1x128xf32> to vector<2x128xf32>
    %109 = arith.addf %107, %108 : vector<2x128xf32>
    %110 = arith.mulf %97, %109 : vector<2x128xf32>
    %111 = arith.addf %106, %110 : vector<2x128xf32>
    %112 = math.tanh %111 : vector<2x128xf32>
    %cst_27 = arith.constant 1.000000e+00 : f32
    %113 = vector.broadcast %cst_27 : f32 to vector<2x128xf32>
    %114 = arith.subf %113, %105 : vector<2x128xf32>
    %115 = arith.mulf %114, %112 : vector<2x128xf32>
    %116 = arith.mulf %105, %78 : vector<2x128xf32>
    %117 = arith.addf %115, %116 : vector<2x128xf32>
    %118 = arith.truncf %117 : vector<2x128xf32> to vector<2x128xbf16>
    %119 = arith.index_cast %c2_i32 : i32 to index
    %c0_28 = arith.constant 0 : index
    %c0_29 = arith.constant 0 : index
    %120 = vector.load %arg5[%119, %c0_28, %c0_29] : memref<8x2x128xbf16, #tpu.memory_space<vmem>>, vector<1x2x128xbf16>
    %121 = vector.shape_cast %120 : vector<1x2x128xbf16> to vector<2x128xbf16>
    %122 = vector.shape_cast %118 : vector<2x128xbf16> to vector<1x2x128xbf16>
    tpu.vector_store %arg5[%119, %c0_28, %c0_29], %122 {strides = array<i32>} : memref<8x2x128xbf16, #tpu.memory_space<vmem>>, vector<1x2x128xbf16>,
    %c3_i32 = arith.constant 3 : i32
    %123 = arith.index_cast %c3_i32 : i32 to index
    %c0_30 = arith.constant 0 : index
    %c0_31 = arith.constant 0 : index
    %124 = vector.load %arg2[%123, %c0_30, %c0_31] : memref<8x2x384xbf16, #tpu.memory_space<vmem>>, vector<1x2x384xbf16>
    %125 = vector.shape_cast %124 : vector<1x2x384xbf16> to vector<2x384xbf16>
    %126 = arith.extf %125 : vector<2x384xbf16> to vector<2x384xf32>
    %127 = arith.truncf %117 : vector<2x128xf32> to vector<2x128xbf16>
    %cst_32 = arith.constant dense<0.000000e+00> : vector<2x384xf32>
    %128 = tpu.matmul %127, %3, %cst_32 {dimension_numbers = #tpu.dot_dimension_numbers<[1], [0], [0], [1], [0, 0, 1, 1], [], []>} : vector<2x128xbf16>, vector<128x384xbf16>, vector<2x384xf32> -> vector<2x384xf32>
    %129 = vector.extract_strided_slice %126 {offsets = [0, 0], sizes = [2, 128], strides = [1, 1]} : vector<2x384xf32> to vector<2x128xf32>
    %130 = vector.extract_strided_slice %128 {offsets = [0, 0], sizes = [2, 128], strides = [1, 1]} : vector<2x384xf32> to vector<2x128xf32>
    %131 = arith.addf %129, %130 : vector<2x128xf32>
    %132 = arith.negf %131 : vector<2x128xf32>
    %133 = math.exp %132 : vector<2x128xf32>
    %cst_33 = arith.constant 1.000000e+00 : f32
    %134 = vector.broadcast %cst_33 : f32 to vector<2x128xf32>
    %135 = arith.addf %134, %133 : vector<2x128xf32>
    %136 = arith.divf %134, %135 : vector<2x128xf32>
    %137 = vector.extract_strided_slice %126 {offsets = [0, 128], sizes = [2, 128], strides = [1, 1]} : vector<2x384xf32> to vector<2x128xf32>
    %138 = vector.extract_strided_slice %128 {offsets = [0, 128], sizes = [2, 128], strides = [1, 1]} : vector<2x384xf32> to vector<2x128xf32>
    %139 = arith.addf %137, %138 : vector<2x128xf32>
    %140 = arith.negf %139 : vector<2x128xf32>
    %141 = math.exp %140 : vector<2x128xf32>
    %cst_34 = arith.constant 1.000000e+00 : f32
    %142 = vector.broadcast %cst_34 : f32 to vector<2x128xf32>
    %143 = arith.addf %142, %141 : vector<2x128xf32>
    %144 = arith.divf %142, %143 : vector<2x128xf32>
    %145 = vector.extract_strided_slice %126 {offsets = [0, 256], sizes = [2, 128], strides = [1, 1]} : vector<2x384xf32> to vector<2x128xf32>
    %146 = vector.extract_strided_slice %128 {offsets = [0, 256], sizes = [2, 128], strides = [1, 1]} : vector<2x384xf32> to vector<2x128xf32>
    %147 = vector.broadcast %4 : vector<1x128xf32> to vector<2x128xf32>
    %148 = arith.addf %146, %147 : vector<2x128xf32>
    %149 = arith.mulf %136, %148 : vector<2x128xf32>
    %150 = arith.addf %145, %149 : vector<2x128xf32>
    %151 = math.tanh %150 : vector<2x128xf32>
    %cst_35 = arith.constant 1.000000e+00 : f32
    %152 = vector.broadcast %cst_35 : f32 to vector<2x128xf32>
    %153 = arith.subf %152, %144 : vector<2x128xf32>
    %154 = arith.mulf %153, %151 : vector<2x128xf32>
    %155 = arith.mulf %144, %117 : vector<2x128xf32>
    %156 = arith.addf %154, %155 : vector<2x128xf32>
    %157 = arith.truncf %156 : vector<2x128xf32> to vector<2x128xbf16>
    %158 = arith.index_cast %c3_i32 : i32 to index
    %c0_36 = arith.constant 0 : index
    %c0_37 = arith.constant 0 : index
    %159 = vector.load %arg5[%158, %c0_36, %c0_37] : memref<8x2x128xbf16, #tpu.memory_space<vmem>>, vector<1x2x128xbf16>
    %160 = vector.shape_cast %159 : vector<1x2x128xbf16> to vector<2x128xbf16>
    %161 = vector.shape_cast %157 : vector<2x128xbf16> to vector<1x2x128xbf16>
    tpu.vector_store %arg5[%158, %c0_36, %c0_37], %161 {strides = array<i32>} : memref<8x2x128xbf16, #tpu.memory_space<vmem>>, vector<1x2x128xbf16>,
    %c4_i32 = arith.constant 4 : i32
    %162 = arith.index_cast %c4_i32 : i32 to index
    %c0_38 = arith.constant 0 : index
    %c0_39 = arith.constant 0 : index
    %163 = vector.load %arg2[%162, %c0_38, %c0_39] : memref<8x2x384xbf16, #tpu.memory_space<vmem>>, vector<1x2x384xbf16>
    %164 = vector.shape_cast %163 : vector<1x2x384xbf16> to vector<2x384xbf16>
    %165 = arith.extf %164 : vector<2x384xbf16> to vector<2x384xf32>
    %166 = arith.truncf %156 : vector<2x128xf32> to vector<2x128xbf16>
    %cst_40 = arith.constant dense<0.000000e+00> : vector<2x384xf32>
    %167 = tpu.matmul %166, %3, %cst_40 {dimension_numbers = #tpu.dot_dimension_numbers<[1], [0], [0], [1], [0, 0, 1, 1], [], []>} : vector<2x128xbf16>, vector<128x384xbf16>, vector<2x384xf32> -> vector<2x384xf32>
    %168 = vector.extract_strided_slice %165 {offsets = [0, 0], sizes = [2, 128], strides = [1, 1]} : vector<2x384xf32> to vector<2x128xf32>
    %169 = vector.extract_strided_slice %167 {offsets = [0, 0], sizes = [2, 128], strides = [1, 1]} : vector<2x384xf32> to vector<2x128xf32>
    %170 = arith.addf %168, %169 : vector<2x128xf32>
    %171 = arith.negf %170 : vector<2x128xf32>
    %172 = math.exp %171 : vector<2x128xf32>
    %cst_41 = arith.constant 1.000000e+00 : f32
    %173 = vector.broadcast %cst_41 : f32 to vector<2x128xf32>
    %174 = arith.addf %173, %172 : vector<2x128xf32>
    %175 = arith.divf %173, %174 : vector<2x128xf32>
    %176 = vector.extract_strided_slice %165 {offsets = [0, 128], sizes = [2, 128], strides = [1, 1]} : vector<2x384xf32> to vector<2x128xf32>
    %177 = vector.extract_strided_slice %167 {offsets = [0, 128], sizes = [2, 128], strides = [1, 1]} : vector<2x384xf32> to vector<2x128xf32>
    %178 = arith.addf %176, %177 : vector<2x128xf32>
    %179 = arith.negf %178 : vector<2x128xf32>
    %180 = math.exp %179 : vector<2x128xf32>
    %cst_42 = arith.constant 1.000000e+00 : f32
    %181 = vector.broadcast %cst_42 : f32 to vector<2x128xf32>
    %182 = arith.addf %181, %180 : vector<2x128xf32>
    %183 = arith.divf %181, %182 : vector<2x128xf32>
    %184 = vector.extract_strided_slice %165 {offsets = [0, 256], sizes = [2, 128], strides = [1, 1]} : vector<2x384xf32> to vector<2x128xf32>
    %185 = vector.extract_strided_slice %167 {offsets = [0, 256], sizes = [2, 128], strides = [1, 1]} : vector<2x384xf32> to vector<2x128xf32>
    %186 = vector.broadcast %4 : vector<1x128xf32> to vector<2x128xf32>
    %187 = arith.addf %185, %186 : vector<2x128xf32>
    %188 = arith.mulf %175, %187 : vector<2x128xf32>
    %189 = arith.addf %184, %188 : vector<2x128xf32>
    %190 = math.tanh %189 : vector<2x128xf32>
    %cst_43 = arith.constant 1.000000e+00 : f32
    %191 = vector.broadcast %cst_43 : f32 to vector<2x128xf32>
    %192 = arith.subf %191, %183 : vector<2x128xf32>
    %193 = arith.mulf %192, %190 : vector<2x128xf32>
    %194 = arith.mulf %183, %156 : vector<2x128xf32>
    %195 = arith.addf %193, %194 : vector<2x128xf32>
    %196 = arith.truncf %195 : vector<2x128xf32> to vector<2x128xbf16>
    %197 = arith.index_cast %c4_i32 : i32 to index
    %c0_44 = arith.constant 0 : index
    %c0_45 = arith.constant 0 : index
    %198 = vector.load %arg5[%197, %c0_44, %c0_45] : memref<8x2x128xbf16, #tpu.memory_space<vmem>>, vector<1x2x128xbf16>
    %199 = vector.shape_cast %198 : vector<1x2x128xbf16> to vector<2x128xbf16>
    %200 = vector.shape_cast %196 : vector<2x128xbf16> to vector<1x2x128xbf16>
    tpu.vector_store %arg5[%197, %c0_44, %c0_45], %200 {strides = array<i32>} : memref<8x2x128xbf16, #tpu.memory_space<vmem>>, vector<1x2x128xbf16>,
    %c5_i32 = arith.constant 5 : i32
    %201 = arith.index_cast %c5_i32 : i32 to index
    %c0_46 = arith.constant 0 : index
    %c0_47 = arith.constant 0 : index
    %202 = vector.load %arg2[%201, %c0_46, %c0_47] : memref<8x2x384xbf16, #tpu.memory_space<vmem>>, vector<1x2x384xbf16>
    %203 = vector.shape_cast %202 : vector<1x2x384xbf16> to vector<2x384xbf16>
    %204 = arith.extf %203 : vector<2x384xbf16> to vector<2x384xf32>
    %205 = arith.truncf %195 : vector<2x128xf32> to vector<2x128xbf16>
    %cst_48 = arith.constant dense<0.000000e+00> : vector<2x384xf32>
    %206 = tpu.matmul %205, %3, %cst_48 {dimension_numbers = #tpu.dot_dimension_numbers<[1], [0], [0], [1], [0, 0, 1, 1], [], []>} : vector<2x128xbf16>, vector<128x384xbf16>, vector<2x384xf32> -> vector<2x384xf32>
    %207 = vector.extract_strided_slice %204 {offsets = [0, 0], sizes = [2, 128], strides = [1, 1]} : vector<2x384xf32> to vector<2x128xf32>
    %208 = vector.extract_strided_slice %206 {offsets = [0, 0], sizes = [2, 128], strides = [1, 1]} : vector<2x384xf32> to vector<2x128xf32>
    %209 = arith.addf %207, %208 : vector<2x128xf32>
    %210 = arith.negf %209 : vector<2x128xf32>
    %211 = math.exp %210 : vector<2x128xf32>
    %cst_49 = arith.constant 1.000000e+00 : f32
    %212 = vector.broadcast %cst_49 : f32 to vector<2x128xf32>
    %213 = arith.addf %212, %211 : vector<2x128xf32>
    %214 = arith.divf %212, %213 : vector<2x128xf32>
    %215 = vector.extract_strided_slice %204 {offsets = [0, 128], sizes = [2, 128], strides = [1, 1]} : vector<2x384xf32> to vector<2x128xf32>
    %216 = vector.extract_strided_slice %206 {offsets = [0, 128], sizes = [2, 128], strides = [1, 1]} : vector<2x384xf32> to vector<2x128xf32>
    %217 = arith.addf %215, %216 : vector<2x128xf32>
    %218 = arith.negf %217 : vector<2x128xf32>
    %219 = math.exp %218 : vector<2x128xf32>
    %cst_50 = arith.constant 1.000000e+00 : f32
    %220 = vector.broadcast %cst_50 : f32 to vector<2x128xf32>
    %221 = arith.addf %220, %219 : vector<2x128xf32>
    %222 = arith.divf %220, %221 : vector<2x128xf32>
    %223 = vector.extract_strided_slice %204 {offsets = [0, 256], sizes = [2, 128], strides = [1, 1]} : vector<2x384xf32> to vector<2x128xf32>
    %224 = vector.extract_strided_slice %206 {offsets = [0, 256], sizes = [2, 128], strides = [1, 1]} : vector<2x384xf32> to vector<2x128xf32>
    %225 = vector.broadcast %4 : vector<1x128xf32> to vector<2x128xf32>
    %226 = arith.addf %224, %225 : vector<2x128xf32>
    %227 = arith.mulf %214, %226 : vector<2x128xf32>
    %228 = arith.addf %223, %227 : vector<2x128xf32>
    %229 = math.tanh %228 : vector<2x128xf32>
    %cst_51 = arith.constant 1.000000e+00 : f32
    %230 = vector.broadcast %cst_51 : f32 to vector<2x128xf32>
    %231 = arith.subf %230, %222 : vector<2x128xf32>
    %232 = arith.mulf %231, %229 : vector<2x128xf32>
    %233 = arith.mulf %222, %195 : vector<2x128xf32>
    %234 = arith.addf %232, %233 : vector<2x128xf32>
    %235 = arith.truncf %234 : vector<2x128xf32> to vector<2x128xbf16>
    %236 = arith.index_cast %c5_i32 : i32 to index
    %c0_52 = arith.constant 0 : index
    %c0_53 = arith.constant 0 : index
    %237 = vector.load %arg5[%236, %c0_52, %c0_53] : memref<8x2x128xbf16, #tpu.memory_space<vmem>>, vector<1x2x128xbf16>
    %238 = vector.shape_cast %237 : vector<1x2x128xbf16> to vector<2x128xbf16>
    %239 = vector.shape_cast %235 : vector<2x128xbf16> to vector<1x2x128xbf16>
    tpu.vector_store %arg5[%236, %c0_52, %c0_53], %239 {strides = array<i32>} : memref<8x2x128xbf16, #tpu.memory_space<vmem>>, vector<1x2x128xbf16>,
    %c6_i32 = arith.constant 6 : i32
    %240 = arith.index_cast %c6_i32 : i32 to index
    %c0_54 = arith.constant 0 : index
    %c0_55 = arith.constant 0 : index
    %241 = vector.load %arg2[%240, %c0_54, %c0_55] : memref<8x2x384xbf16, #tpu.memory_space<vmem>>, vector<1x2x384xbf16>
    %242 = vector.shape_cast %241 : vector<1x2x384xbf16> to vector<2x384xbf16>
    %243 = arith.extf %242 : vector<2x384xbf16> to vector<2x384xf32>
    %244 = arith.truncf %234 : vector<2x128xf32> to vector<2x128xbf16>
    %cst_56 = arith.constant dense<0.000000e+00> : vector<2x384xf32>
    %245 = tpu.matmul %244, %3, %cst_56 {dimension_numbers = #tpu.dot_dimension_numbers<[1], [0], [0], [1], [0, 0, 1, 1], [], []>} : vector<2x128xbf16>, vector<128x384xbf16>, vector<2x384xf32> -> vector<2x384xf32>
    %246 = vector.extract_strided_slice %243 {offsets = [0, 0], sizes = [2, 128], strides = [1, 1]} : vector<2x384xf32> to vector<2x128xf32>
    %247 = vector.extract_strided_slice %245 {offsets = [0, 0], sizes = [2, 128], strides = [1, 1]} : vector<2x384xf32> to vector<2x128xf32>
    %248 = arith.addf %246, %247 : vector<2x128xf32>
    %249 = arith.negf %248 : vector<2x128xf32>
    %250 = math.exp %249 : vector<2x128xf32>
    %cst_57 = arith.constant 1.000000e+00 : f32
    %251 = vector.broadcast %cst_57 : f32 to vector<2x128xf32>
    %252 = arith.addf %251, %250 : vector<2x128xf32>
    %253 = arith.divf %251, %252 : vector<2x128xf32>
    %254 = vector.extract_strided_slice %243 {offsets = [0, 128], sizes = [2, 128], strides = [1, 1]} : vector<2x384xf32> to vector<2x128xf32>
    %255 = vector.extract_strided_slice %245 {offsets = [0, 128], sizes = [2, 128], strides = [1, 1]} : vector<2x384xf32> to vector<2x128xf32>
    %256 = arith.addf %254, %255 : vector<2x128xf32>
    %257 = arith.negf %256 : vector<2x128xf32>
    %258 = math.exp %257 : vector<2x128xf32>
    %cst_58 = arith.constant 1.000000e+00 : f32
    %259 = vector.broadcast %cst_58 : f32 to vector<2x128xf32>
    %260 = arith.addf %259, %258 : vector<2x128xf32>
    %261 = arith.divf %259, %260 : vector<2x128xf32>
    %262 = vector.extract_strided_slice %243 {offsets = [0, 256], sizes = [2, 128], strides = [1, 1]} : vector<2x384xf32> to vector<2x128xf32>
    %263 = vector.extract_strided_slice %245 {offsets = [0, 256], sizes = [2, 128], strides = [1, 1]} : vector<2x384xf32> to vector<2x128xf32>
    %264 = vector.broadcast %4 : vector<1x128xf32> to vector<2x128xf32>
    %265 = arith.addf %263, %264 : vector<2x128xf32>
    %266 = arith.mulf %253, %265 : vector<2x128xf32>
    %267 = arith.addf %262, %266 : vector<2x128xf32>
    %268 = math.tanh %267 : vector<2x128xf32>
    %cst_59 = arith.constant 1.000000e+00 : f32
    %269 = vector.broadcast %cst_59 : f32 to vector<2x128xf32>
    %270 = arith.subf %269, %261 : vector<2x128xf32>
    %271 = arith.mulf %270, %268 : vector<2x128xf32>
    %272 = arith.mulf %261, %234 : vector<2x128xf32>
    %273 = arith.addf %271, %272 : vector<2x128xf32>
    %274 = arith.truncf %273 : vector<2x128xf32> to vector<2x128xbf16>
    %275 = arith.index_cast %c6_i32 : i32 to index
    %c0_60 = arith.constant 0 : index
    %c0_61 = arith.constant 0 : index
    %276 = vector.load %arg5[%275, %c0_60, %c0_61] : memref<8x2x128xbf16, #tpu.memory_space<vmem>>, vector<1x2x128xbf16>
    %277 = vector.shape_cast %276 : vector<1x2x128xbf16> to vector<2x128xbf16>
    %278 = vector.shape_cast %274 : vector<2x128xbf16> to vector<1x2x128xbf16>
    tpu.vector_store %arg5[%275, %c0_60, %c0_61], %278 {strides = array<i32>} : memref<8x2x128xbf16, #tpu.memory_space<vmem>>, vector<1x2x128xbf16>,
    %c7_i32 = arith.constant 7 : i32
    %279 = arith.index_cast %c7_i32 : i32 to index
    %c0_62 = arith.constant 0 : index
    %c0_63 = arith.constant 0 : index
    %280 = vector.load %arg2[%279, %c0_62, %c0_63] : memref<8x2x384xbf16, #tpu.memory_space<vmem>>, vector<1x2x384xbf16>
    %281 = vector.shape_cast %280 : vector<1x2x384xbf16> to vector<2x384xbf16>
    %282 = arith.extf %281 : vector<2x384xbf16> to vector<2x384xf32>
    %283 = arith.truncf %273 : vector<2x128xf32> to vector<2x128xbf16>
    %cst_64 = arith.constant dense<0.000000e+00> : vector<2x384xf32>
    %284 = tpu.matmul %283, %3, %cst_64 {dimension_numbers = #tpu.dot_dimension_numbers<[1], [0], [0], [1], [0, 0, 1, 1], [], []>} : vector<2x128xbf16>, vector<128x384xbf16>, vector<2x384xf32> -> vector<2x384xf32>
    %285 = vector.extract_strided_slice %282 {offsets = [0, 0], sizes = [2, 128], strides = [1, 1]} : vector<2x384xf32> to vector<2x128xf32>
    %286 = vector.extract_strided_slice %284 {offsets = [0, 0], sizes = [2, 128], strides = [1, 1]} : vector<2x384xf32> to vector<2x128xf32>
    %287 = arith.addf %285, %286 : vector<2x128xf32>
    %288 = arith.negf %287 : vector<2x128xf32>
    %289 = math.exp %288 : vector<2x128xf32>
    %cst_65 = arith.constant 1.000000e+00 : f32
    %290 = vector.broadcast %cst_65 : f32 to vector<2x128xf32>
    %291 = arith.addf %290, %289 : vector<2x128xf32>
    %292 = arith.divf %290, %291 : vector<2x128xf32>
    %293 = vector.extract_strided_slice %282 {offsets = [0, 128], sizes = [2, 128], strides = [1, 1]} : vector<2x384xf32> to vector<2x128xf32>
    %294 = vector.extract_strided_slice %284 {offsets = [0, 128], sizes = [2, 128], strides = [1, 1]} : vector<2x384xf32> to vector<2x128xf32>
    %295 = arith.addf %293, %294 : vector<2x128xf32>
    %296 = arith.negf %295 : vector<2x128xf32>
    %297 = math.exp %296 : vector<2x128xf32>
    %cst_66 = arith.constant 1.000000e+00 : f32
    %298 = vector.broadcast %cst_66 : f32 to vector<2x128xf32>
    %299 = arith.addf %298, %297 : vector<2x128xf32>
    %300 = arith.divf %298, %299 : vector<2x128xf32>
    %301 = vector.extract_strided_slice %282 {offsets = [0, 256], sizes = [2, 128], strides = [1, 1]} : vector<2x384xf32> to vector<2x128xf32>
    %302 = vector.extract_strided_slice %284 {offsets = [0, 256], sizes = [2, 128], strides = [1, 1]} : vector<2x384xf32> to vector<2x128xf32>
    %303 = vector.broadcast %4 : vector<1x128xf32> to vector<2x128xf32>
    %304 = arith.addf %302, %303 : vector<2x128xf32>
    %305 = arith.mulf %292, %304 : vector<2x128xf32>
    %306 = arith.addf %301, %305 : vector<2x128xf32>
    %307 = math.tanh %306 : vector<2x128xf32>
    %cst_67 = arith.constant 1.000000e+00 : f32
    %308 = vector.broadcast %cst_67 : f32 to vector<2x128xf32>
    %309 = arith.subf %308, %300 : vector<2x128xf32>
    %310 = arith.mulf %309, %307 : vector<2x128xf32>
    %311 = arith.mulf %300, %273 : vector<2x128xf32>
    %312 = arith.addf %310, %311 : vector<2x128xf32>
    %313 = arith.truncf %312 : vector<2x128xf32> to vector<2x128xbf16>
    %314 = arith.index_cast %c7_i32 : i32 to index
    %c0_68 = arith.constant 0 : index
    %c0_69 = arith.constant 0 : index
    %315 = vector.load %arg5[%314, %c0_68, %c0_69] : memref<8x2x128xbf16, #tpu.memory_space<vmem>>, vector<1x2x128xbf16>
    %316 = vector.shape_cast %315 : vector<1x2x128xbf16> to vector<2x128xbf16>
    %317 = vector.shape_cast %313 : vector<2x128xbf16> to vector<1x2x128xbf16>
    tpu.vector_store %arg5[%314, %c0_68, %c0_69], %317 {strides = array<i32>} : memref<8x2x128xbf16, #tpu.memory_space<vmem>>, vector<1x2x128xbf16>,
    %c8_i32 = arith.constant 8 : i32
    %c0_70 = arith.constant 0 : index
    %c0_71 = arith.constant 0 : index
    %318 = vector.load %arg6[%c0_70, %c0_71] : memref<2x128xf32, #tpu.memory_space<vmem>>, vector<2x128xf32>
    tpu.vector_store %arg6[%c0_70, %c0_71], %312 {strides = array<i32>} : memref<2x128xf32, #tpu.memory_space<vmem>>, vector<2x128xf32>,
    return
  }
  func.func @transform_0(%arg0: i32, %arg1: i32) -> (i32, i32, i32) {
    %c0_i32 = arith.constant 0 : i32
    %c0_i32_0 = arith.constant 0 : i32
    return %arg1, %arg0, %c0_i32 : i32, i32, i32
  }
  func.func @transform_1(%arg0: i32, %arg1: i32) -> (i32, i32) {
    %c0_i32 = arith.constant 0 : i32
    %c0_i32_0 = arith.constant 0 : i32
    %c0_i32_1 = arith.constant 0 : i32
    return %c0_i32, %c0_i32_0 : i32, i32
  }
  func.func @transform_2(%arg0: i32, %arg1: i32) -> (i32, i32) {
    %c0_i32 = arith.constant 0 : i32
    %c0_i32_0 = arith.constant 0 : i32
    %c0_i32_1 = arith.constant 0 : i32
    return %c0_i32, %c0_i32_0 : i32, i32
  }
  func.func @transform_3(%arg0: i32, %arg1: i32) -> (i32, i32, i32) {
    %c0_i32 = arith.constant 0 : i32
    %c0_i32_0 = arith.constant 0 : i32
    return %arg1, %arg0, %c0_i32 : i32, i32, i32
  }
}

module attributes {stable_mosaic.version = 11 : i64} {
  func.func @_gru_recurrence_kernel(%arg0: i32, %arg1: i32, %arg2: memref<8x2x384xbf16, #tpu.memory_space<vmem>>, %arg3: memref<128x384xbf16, #tpu.memory_space<vmem>>, %arg4: memref<1x128xf32, #tpu.memory_space<vmem>>, %arg5: memref<8x2x128xf32, #tpu.memory_space<vmem>>, %arg6: memref<2x128xf32, #tpu.memory_space<vmem>>) attributes {dimension_semantics = [#tpu.dimension_semantics<parallel>, #tpu.dimension_semantics<arbitrary>], iteration_bounds = array<i64: 1, 1>, scalar_prefetch = 0 : i64, scratch_operands = 1 : i64, tpu.core_type = #tpu.core_type<tc>, window_params = [{transform_indices = @transform_0, window_bounds = array<i64: 8, 2, 384>}, {pipeline_mode = #tpu.pipeline_mode<synchronous>, transform_indices = @transform_1, window_bounds = array<i64: 128, 384>}, {pipeline_mode = #tpu.pipeline_mode<synchronous>, transform_indices = @transform_2, window_bounds = array<i64: 1, 128>}, {transform_indices = @transform_3, window_bounds = array<i64: 8, 2, 128>}]} {
    %c0_i32 = arith.constant 0 : i32
    %0 = arith.cmpi eq, %arg1, %c0_i32 : i32
    %1 = arith.extui %0 : i1 to i32
    %c0_i32_0 = arith.constant 0 : i32
    %2 = arith.cmpi ne, %1, %c0_i32_0 : i32
    scf.if %2 {
      %cst_72 = arith.constant 0.000000e+00 : f32
      %311 = vector.broadcast %cst_72 : f32 to vector<2x128xf32>
      %c0_73 = arith.constant 0 : index
      %c0_74 = arith.constant 0 : index
      %312 = vector.load %arg6[%c0_73, %c0_74] : memref<2x128xf32, #tpu.memory_space<vmem>>, vector<2x128xf32>
      tpu.vector_store %arg6[%c0_73, %c0_74], %311 {strides = array<i32>} : memref<2x128xf32, #tpu.memory_space<vmem>>, vector<2x128xf32>,
    } else {
    }
    %c0 = arith.constant 0 : index
    %c0_1 = arith.constant 0 : index
    %3 = vector.load %arg3[%c0, %c0_1] : memref<128x384xbf16, #tpu.memory_space<vmem>>, vector<128x384xbf16>
    %c0_2 = arith.constant 0 : index
    %c0_3 = arith.constant 0 : index
    %4 = vector.load %arg4[%c0_2, %c0_3] : memref<1x128xf32, #tpu.memory_space<vmem>>, vector<1x128xf32>
    %c0_4 = arith.constant 0 : index
    %c0_5 = arith.constant 0 : index
    %5 = vector.load %arg6[%c0_4, %c0_5] : memref<2x128xf32, #tpu.memory_space<vmem>>, vector<2x128xf32>
    %c0_i32_6 = arith.constant 0 : i32
    %6 = arith.index_cast %c0_i32_6 : i32 to index
    %c0_7 = arith.constant 0 : index
    %c0_8 = arith.constant 0 : index
    %7 = vector.load %arg2[%6, %c0_7, %c0_8] : memref<8x2x384xbf16, #tpu.memory_space<vmem>>, vector<1x2x384xbf16>
    %8 = vector.shape_cast %7 : vector<1x2x384xbf16> to vector<2x384xbf16>
    %9 = arith.extf %8 : vector<2x384xbf16> to vector<2x384xf32>
    %10 = arith.truncf %5 : vector<2x128xf32> to vector<2x128xbf16>
    %cst = arith.constant dense<0.000000e+00> : vector<2x384xf32>
    %11 = tpu.matmul %10, %3, %cst {dimension_numbers = #tpu.dot_dimension_numbers<[1], [0], [0], [1], [0, 0, 1, 1], [], []>} : vector<2x128xbf16>, vector<128x384xbf16>, vector<2x384xf32> -> vector<2x384xf32>
    %12 = vector.extract_strided_slice %9 {offsets = [0, 0], sizes = [2, 128], strides = [1, 1]} : vector<2x384xf32> to vector<2x128xf32>
    %13 = vector.extract_strided_slice %11 {offsets = [0, 0], sizes = [2, 128], strides = [1, 1]} : vector<2x384xf32> to vector<2x128xf32>
    %14 = arith.addf %12, %13 : vector<2x128xf32>
    %15 = arith.negf %14 : vector<2x128xf32>
    %16 = math.exp %15 : vector<2x128xf32>
    %cst_9 = arith.constant 1.000000e+00 : f32
    %17 = vector.broadcast %cst_9 : f32 to vector<2x128xf32>
    %18 = arith.addf %17, %16 : vector<2x128xf32>
    %19 = arith.divf %17, %18 : vector<2x128xf32>
    %20 = vector.extract_strided_slice %9 {offsets = [0, 128], sizes = [2, 128], strides = [1, 1]} : vector<2x384xf32> to vector<2x128xf32>
    %21 = vector.extract_strided_slice %11 {offsets = [0, 128], sizes = [2, 128], strides = [1, 1]} : vector<2x384xf32> to vector<2x128xf32>
    %22 = arith.addf %20, %21 : vector<2x128xf32>
    %23 = arith.negf %22 : vector<2x128xf32>
    %24 = math.exp %23 : vector<2x128xf32>
    %cst_10 = arith.constant 1.000000e+00 : f32
    %25 = vector.broadcast %cst_10 : f32 to vector<2x128xf32>
    %26 = arith.addf %25, %24 : vector<2x128xf32>
    %27 = arith.divf %25, %26 : vector<2x128xf32>
    %28 = vector.extract_strided_slice %9 {offsets = [0, 256], sizes = [2, 128], strides = [1, 1]} : vector<2x384xf32> to vector<2x128xf32>
    %29 = vector.extract_strided_slice %11 {offsets = [0, 256], sizes = [2, 128], strides = [1, 1]} : vector<2x384xf32> to vector<2x128xf32>
    %30 = vector.broadcast %4 : vector<1x128xf32> to vector<2x128xf32>
    %31 = arith.addf %29, %30 : vector<2x128xf32>
    %32 = arith.mulf %19, %31 : vector<2x128xf32>
    %33 = arith.addf %28, %32 : vector<2x128xf32>
    %34 = math.tanh %33 : vector<2x128xf32>
    %cst_11 = arith.constant 1.000000e+00 : f32
    %35 = vector.broadcast %cst_11 : f32 to vector<2x128xf32>
    %36 = arith.subf %35, %27 : vector<2x128xf32>
    %37 = arith.mulf %36, %34 : vector<2x128xf32>
    %38 = arith.mulf %27, %5 : vector<2x128xf32>
    %39 = arith.addf %37, %38 : vector<2x128xf32>
    %40 = arith.index_cast %c0_i32_6 : i32 to index
    %c0_12 = arith.constant 0 : index
    %c0_13 = arith.constant 0 : index
    %41 = vector.load %arg5[%40, %c0_12, %c0_13] : memref<8x2x128xf32, #tpu.memory_space<vmem>>, vector<1x2x128xf32>
    %42 = vector.shape_cast %41 : vector<1x2x128xf32> to vector<2x128xf32>
    %43 = vector.shape_cast %39 : vector<2x128xf32> to vector<1x2x128xf32>
    tpu.vector_store %arg5[%40, %c0_12, %c0_13], %43 {strides = array<i32>} : memref<8x2x128xf32, #tpu.memory_space<vmem>>, vector<1x2x128xf32>,
    %c1_i32 = arith.constant 1 : i32
    %44 = arith.index_cast %c1_i32 : i32 to index
    %c0_14 = arith.constant 0 : index
    %c0_15 = arith.constant 0 : index
    %45 = vector.load %arg2[%44, %c0_14, %c0_15] : memref<8x2x384xbf16, #tpu.memory_space<vmem>>, vector<1x2x384xbf16>
    %46 = vector.shape_cast %45 : vector<1x2x384xbf16> to vector<2x384xbf16>
    %47 = arith.extf %46 : vector<2x384xbf16> to vector<2x384xf32>
    %48 = arith.truncf %39 : vector<2x128xf32> to vector<2x128xbf16>
    %cst_16 = arith.constant dense<0.000000e+00> : vector<2x384xf32>
    %49 = tpu.matmul %48, %3, %cst_16 {dimension_numbers = #tpu.dot_dimension_numbers<[1], [0], [0], [1], [0, 0, 1, 1], [], []>} : vector<2x128xbf16>, vector<128x384xbf16>, vector<2x384xf32> -> vector<2x384xf32>
    %50 = vector.extract_strided_slice %47 {offsets = [0, 0], sizes = [2, 128], strides = [1, 1]} : vector<2x384xf32> to vector<2x128xf32>
    %51 = vector.extract_strided_slice %49 {offsets = [0, 0], sizes = [2, 128], strides = [1, 1]} : vector<2x384xf32> to vector<2x128xf32>
    %52 = arith.addf %50, %51 : vector<2x128xf32>
    %53 = arith.negf %52 : vector<2x128xf32>
    %54 = math.exp %53 : vector<2x128xf32>
    %cst_17 = arith.constant 1.000000e+00 : f32
    %55 = vector.broadcast %cst_17 : f32 to vector<2x128xf32>
    %56 = arith.addf %55, %54 : vector<2x128xf32>
    %57 = arith.divf %55, %56 : vector<2x128xf32>
    %58 = vector.extract_strided_slice %47 {offsets = [0, 128], sizes = [2, 128], strides = [1, 1]} : vector<2x384xf32> to vector<2x128xf32>
    %59 = vector.extract_strided_slice %49 {offsets = [0, 128], sizes = [2, 128], strides = [1, 1]} : vector<2x384xf32> to vector<2x128xf32>
    %60 = arith.addf %58, %59 : vector<2x128xf32>
    %61 = arith.negf %60 : vector<2x128xf32>
    %62 = math.exp %61 : vector<2x128xf32>
    %cst_18 = arith.constant 1.000000e+00 : f32
    %63 = vector.broadcast %cst_18 : f32 to vector<2x128xf32>
    %64 = arith.addf %63, %62 : vector<2x128xf32>
    %65 = arith.divf %63, %64 : vector<2x128xf32>
    %66 = vector.extract_strided_slice %47 {offsets = [0, 256], sizes = [2, 128], strides = [1, 1]} : vector<2x384xf32> to vector<2x128xf32>
    %67 = vector.extract_strided_slice %49 {offsets = [0, 256], sizes = [2, 128], strides = [1, 1]} : vector<2x384xf32> to vector<2x128xf32>
    %68 = vector.broadcast %4 : vector<1x128xf32> to vector<2x128xf32>
    %69 = arith.addf %67, %68 : vector<2x128xf32>
    %70 = arith.mulf %57, %69 : vector<2x128xf32>
    %71 = arith.addf %66, %70 : vector<2x128xf32>
    %72 = math.tanh %71 : vector<2x128xf32>
    %cst_19 = arith.constant 1.000000e+00 : f32
    %73 = vector.broadcast %cst_19 : f32 to vector<2x128xf32>
    %74 = arith.subf %73, %65 : vector<2x128xf32>
    %75 = arith.mulf %74, %72 : vector<2x128xf32>
    %76 = arith.mulf %65, %39 : vector<2x128xf32>
    %77 = arith.addf %75, %76 : vector<2x128xf32>
    %78 = arith.index_cast %c1_i32 : i32 to index
    %c0_20 = arith.constant 0 : index
    %c0_21 = arith.constant 0 : index
    %79 = vector.load %arg5[%78, %c0_20, %c0_21] : memref<8x2x128xf32, #tpu.memory_space<vmem>>, vector<1x2x128xf32>
    %80 = vector.shape_cast %79 : vector<1x2x128xf32> to vector<2x128xf32>
    %81 = vector.shape_cast %77 : vector<2x128xf32> to vector<1x2x128xf32>
    tpu.vector_store %arg5[%78, %c0_20, %c0_21], %81 {strides = array<i32>} : memref<8x2x128xf32, #tpu.memory_space<vmem>>, vector<1x2x128xf32>,
    %c2_i32 = arith.constant 2 : i32
    %82 = arith.index_cast %c2_i32 : i32 to index
    %c0_22 = arith.constant 0 : index
    %c0_23 = arith.constant 0 : index
    %83 = vector.load %arg2[%82, %c0_22, %c0_23] : memref<8x2x384xbf16, #tpu.memory_space<vmem>>, vector<1x2x384xbf16>
    %84 = vector.shape_cast %83 : vector<1x2x384xbf16> to vector<2x384xbf16>
    %85 = arith.extf %84 : vector<2x384xbf16> to vector<2x384xf32>
    %86 = arith.truncf %77 : vector<2x128xf32> to vector<2x128xbf16>
    %cst_24 = arith.constant dense<0.000000e+00> : vector<2x384xf32>
    %87 = tpu.matmul %86, %3, %cst_24 {dimension_numbers = #tpu.dot_dimension_numbers<[1], [0], [0], [1], [0, 0, 1, 1], [], []>} : vector<2x128xbf16>, vector<128x384xbf16>, vector<2x384xf32> -> vector<2x384xf32>
    %88 = vector.extract_strided_slice %85 {offsets = [0, 0], sizes = [2, 128], strides = [1, 1]} : vector<2x384xf32> to vector<2x128xf32>
    %89 = vector.extract_strided_slice %87 {offsets = [0, 0], sizes = [2, 128], strides = [1, 1]} : vector<2x384xf32> to vector<2x128xf32>
    %90 = arith.addf %88, %89 : vector<2x128xf32>
    %91 = arith.negf %90 : vector<2x128xf32>
    %92 = math.exp %91 : vector<2x128xf32>
    %cst_25 = arith.constant 1.000000e+00 : f32
    %93 = vector.broadcast %cst_25 : f32 to vector<2x128xf32>
    %94 = arith.addf %93, %92 : vector<2x128xf32>
    %95 = arith.divf %93, %94 : vector<2x128xf32>
    %96 = vector.extract_strided_slice %85 {offsets = [0, 128], sizes = [2, 128], strides = [1, 1]} : vector<2x384xf32> to vector<2x128xf32>
    %97 = vector.extract_strided_slice %87 {offsets = [0, 128], sizes = [2, 128], strides = [1, 1]} : vector<2x384xf32> to vector<2x128xf32>
    %98 = arith.addf %96, %97 : vector<2x128xf32>
    %99 = arith.negf %98 : vector<2x128xf32>
    %100 = math.exp %99 : vector<2x128xf32>
    %cst_26 = arith.constant 1.000000e+00 : f32
    %101 = vector.broadcast %cst_26 : f32 to vector<2x128xf32>
    %102 = arith.addf %101, %100 : vector<2x128xf32>
    %103 = arith.divf %101, %102 : vector<2x128xf32>
    %104 = vector.extract_strided_slice %85 {offsets = [0, 256], sizes = [2, 128], strides = [1, 1]} : vector<2x384xf32> to vector<2x128xf32>
    %105 = vector.extract_strided_slice %87 {offsets = [0, 256], sizes = [2, 128], strides = [1, 1]} : vector<2x384xf32> to vector<2x128xf32>
    %106 = vector.broadcast %4 : vector<1x128xf32> to vector<2x128xf32>
    %107 = arith.addf %105, %106 : vector<2x128xf32>
    %108 = arith.mulf %95, %107 : vector<2x128xf32>
    %109 = arith.addf %104, %108 : vector<2x128xf32>
    %110 = math.tanh %109 : vector<2x128xf32>
    %cst_27 = arith.constant 1.000000e+00 : f32
    %111 = vector.broadcast %cst_27 : f32 to vector<2x128xf32>
    %112 = arith.subf %111, %103 : vector<2x128xf32>
    %113 = arith.mulf %112, %110 : vector<2x128xf32>
    %114 = arith.mulf %103, %77 : vector<2x128xf32>
    %115 = arith.addf %113, %114 : vector<2x128xf32>
    %116 = arith.index_cast %c2_i32 : i32 to index
    %c0_28 = arith.constant 0 : index
    %c0_29 = arith.constant 0 : index
    %117 = vector.load %arg5[%116, %c0_28, %c0_29] : memref<8x2x128xf32, #tpu.memory_space<vmem>>, vector<1x2x128xf32>
    %118 = vector.shape_cast %117 : vector<1x2x128xf32> to vector<2x128xf32>
    %119 = vector.shape_cast %115 : vector<2x128xf32> to vector<1x2x128xf32>
    tpu.vector_store %arg5[%116, %c0_28, %c0_29], %119 {strides = array<i32>} : memref<8x2x128xf32, #tpu.memory_space<vmem>>, vector<1x2x128xf32>,
    %c3_i32 = arith.constant 3 : i32
    %120 = arith.index_cast %c3_i32 : i32 to index
    %c0_30 = arith.constant 0 : index
    %c0_31 = arith.constant 0 : index
    %121 = vector.load %arg2[%120, %c0_30, %c0_31] : memref<8x2x384xbf16, #tpu.memory_space<vmem>>, vector<1x2x384xbf16>
    %122 = vector.shape_cast %121 : vector<1x2x384xbf16> to vector<2x384xbf16>
    %123 = arith.extf %122 : vector<2x384xbf16> to vector<2x384xf32>
    %124 = arith.truncf %115 : vector<2x128xf32> to vector<2x128xbf16>
    %cst_32 = arith.constant dense<0.000000e+00> : vector<2x384xf32>
    %125 = tpu.matmul %124, %3, %cst_32 {dimension_numbers = #tpu.dot_dimension_numbers<[1], [0], [0], [1], [0, 0, 1, 1], [], []>} : vector<2x128xbf16>, vector<128x384xbf16>, vector<2x384xf32> -> vector<2x384xf32>
    %126 = vector.extract_strided_slice %123 {offsets = [0, 0], sizes = [2, 128], strides = [1, 1]} : vector<2x384xf32> to vector<2x128xf32>
    %127 = vector.extract_strided_slice %125 {offsets = [0, 0], sizes = [2, 128], strides = [1, 1]} : vector<2x384xf32> to vector<2x128xf32>
    %128 = arith.addf %126, %127 : vector<2x128xf32>
    %129 = arith.negf %128 : vector<2x128xf32>
    %130 = math.exp %129 : vector<2x128xf32>
    %cst_33 = arith.constant 1.000000e+00 : f32
    %131 = vector.broadcast %cst_33 : f32 to vector<2x128xf32>
    %132 = arith.addf %131, %130 : vector<2x128xf32>
    %133 = arith.divf %131, %132 : vector<2x128xf32>
    %134 = vector.extract_strided_slice %123 {offsets = [0, 128], sizes = [2, 128], strides = [1, 1]} : vector<2x384xf32> to vector<2x128xf32>
    %135 = vector.extract_strided_slice %125 {offsets = [0, 128], sizes = [2, 128], strides = [1, 1]} : vector<2x384xf32> to vector<2x128xf32>
    %136 = arith.addf %134, %135 : vector<2x128xf32>
    %137 = arith.negf %136 : vector<2x128xf32>
    %138 = math.exp %137 : vector<2x128xf32>
    %cst_34 = arith.constant 1.000000e+00 : f32
    %139 = vector.broadcast %cst_34 : f32 to vector<2x128xf32>
    %140 = arith.addf %139, %138 : vector<2x128xf32>
    %141 = arith.divf %139, %140 : vector<2x128xf32>
    %142 = vector.extract_strided_slice %123 {offsets = [0, 256], sizes = [2, 128], strides = [1, 1]} : vector<2x384xf32> to vector<2x128xf32>
    %143 = vector.extract_strided_slice %125 {offsets = [0, 256], sizes = [2, 128], strides = [1, 1]} : vector<2x384xf32> to vector<2x128xf32>
    %144 = vector.broadcast %4 : vector<1x128xf32> to vector<2x128xf32>
    %145 = arith.addf %143, %144 : vector<2x128xf32>
    %146 = arith.mulf %133, %145 : vector<2x128xf32>
    %147 = arith.addf %142, %146 : vector<2x128xf32>
    %148 = math.tanh %147 : vector<2x128xf32>
    %cst_35 = arith.constant 1.000000e+00 : f32
    %149 = vector.broadcast %cst_35 : f32 to vector<2x128xf32>
    %150 = arith.subf %149, %141 : vector<2x128xf32>
    %151 = arith.mulf %150, %148 : vector<2x128xf32>
    %152 = arith.mulf %141, %115 : vector<2x128xf32>
    %153 = arith.addf %151, %152 : vector<2x128xf32>
    %154 = arith.index_cast %c3_i32 : i32 to index
    %c0_36 = arith.constant 0 : index
    %c0_37 = arith.constant 0 : index
    %155 = vector.load %arg5[%154, %c0_36, %c0_37] : memref<8x2x128xf32, #tpu.memory_space<vmem>>, vector<1x2x128xf32>
    %156 = vector.shape_cast %155 : vector<1x2x128xf32> to vector<2x128xf32>
    %157 = vector.shape_cast %153 : vector<2x128xf32> to vector<1x2x128xf32>
    tpu.vector_store %arg5[%154, %c0_36, %c0_37], %157 {strides = array<i32>} : memref<8x2x128xf32, #tpu.memory_space<vmem>>, vector<1x2x128xf32>,
    %c4_i32 = arith.constant 4 : i32
    %158 = arith.index_cast %c4_i32 : i32 to index
    %c0_38 = arith.constant 0 : index
    %c0_39 = arith.constant 0 : index
    %159 = vector.load %arg2[%158, %c0_38, %c0_39] : memref<8x2x384xbf16, #tpu.memory_space<vmem>>, vector<1x2x384xbf16>
    %160 = vector.shape_cast %159 : vector<1x2x384xbf16> to vector<2x384xbf16>
    %161 = arith.extf %160 : vector<2x384xbf16> to vector<2x384xf32>
    %162 = arith.truncf %153 : vector<2x128xf32> to vector<2x128xbf16>
    %cst_40 = arith.constant dense<0.000000e+00> : vector<2x384xf32>
    %163 = tpu.matmul %162, %3, %cst_40 {dimension_numbers = #tpu.dot_dimension_numbers<[1], [0], [0], [1], [0, 0, 1, 1], [], []>} : vector<2x128xbf16>, vector<128x384xbf16>, vector<2x384xf32> -> vector<2x384xf32>
    %164 = vector.extract_strided_slice %161 {offsets = [0, 0], sizes = [2, 128], strides = [1, 1]} : vector<2x384xf32> to vector<2x128xf32>
    %165 = vector.extract_strided_slice %163 {offsets = [0, 0], sizes = [2, 128], strides = [1, 1]} : vector<2x384xf32> to vector<2x128xf32>
    %166 = arith.addf %164, %165 : vector<2x128xf32>
    %167 = arith.negf %166 : vector<2x128xf32>
    %168 = math.exp %167 : vector<2x128xf32>
    %cst_41 = arith.constant 1.000000e+00 : f32
    %169 = vector.broadcast %cst_41 : f32 to vector<2x128xf32>
    %170 = arith.addf %169, %168 : vector<2x128xf32>
    %171 = arith.divf %169, %170 : vector<2x128xf32>
    %172 = vector.extract_strided_slice %161 {offsets = [0, 128], sizes = [2, 128], strides = [1, 1]} : vector<2x384xf32> to vector<2x128xf32>
    %173 = vector.extract_strided_slice %163 {offsets = [0, 128], sizes = [2, 128], strides = [1, 1]} : vector<2x384xf32> to vector<2x128xf32>
    %174 = arith.addf %172, %173 : vector<2x128xf32>
    %175 = arith.negf %174 : vector<2x128xf32>
    %176 = math.exp %175 : vector<2x128xf32>
    %cst_42 = arith.constant 1.000000e+00 : f32
    %177 = vector.broadcast %cst_42 : f32 to vector<2x128xf32>
    %178 = arith.addf %177, %176 : vector<2x128xf32>
    %179 = arith.divf %177, %178 : vector<2x128xf32>
    %180 = vector.extract_strided_slice %161 {offsets = [0, 256], sizes = [2, 128], strides = [1, 1]} : vector<2x384xf32> to vector<2x128xf32>
    %181 = vector.extract_strided_slice %163 {offsets = [0, 256], sizes = [2, 128], strides = [1, 1]} : vector<2x384xf32> to vector<2x128xf32>
    %182 = vector.broadcast %4 : vector<1x128xf32> to vector<2x128xf32>
    %183 = arith.addf %181, %182 : vector<2x128xf32>
    %184 = arith.mulf %171, %183 : vector<2x128xf32>
    %185 = arith.addf %180, %184 : vector<2x128xf32>
    %186 = math.tanh %185 : vector<2x128xf32>
    %cst_43 = arith.constant 1.000000e+00 : f32
    %187 = vector.broadcast %cst_43 : f32 to vector<2x128xf32>
    %188 = arith.subf %187, %179 : vector<2x128xf32>
    %189 = arith.mulf %188, %186 : vector<2x128xf32>
    %190 = arith.mulf %179, %153 : vector<2x128xf32>
    %191 = arith.addf %189, %190 : vector<2x128xf32>
    %192 = arith.index_cast %c4_i32 : i32 to index
    %c0_44 = arith.constant 0 : index
    %c0_45 = arith.constant 0 : index
    %193 = vector.load %arg5[%192, %c0_44, %c0_45] : memref<8x2x128xf32, #tpu.memory_space<vmem>>, vector<1x2x128xf32>
    %194 = vector.shape_cast %193 : vector<1x2x128xf32> to vector<2x128xf32>
    %195 = vector.shape_cast %191 : vector<2x128xf32> to vector<1x2x128xf32>
    tpu.vector_store %arg5[%192, %c0_44, %c0_45], %195 {strides = array<i32>} : memref<8x2x128xf32, #tpu.memory_space<vmem>>, vector<1x2x128xf32>,
    %c5_i32 = arith.constant 5 : i32
    %196 = arith.index_cast %c5_i32 : i32 to index
    %c0_46 = arith.constant 0 : index
    %c0_47 = arith.constant 0 : index
    %197 = vector.load %arg2[%196, %c0_46, %c0_47] : memref<8x2x384xbf16, #tpu.memory_space<vmem>>, vector<1x2x384xbf16>
    %198 = vector.shape_cast %197 : vector<1x2x384xbf16> to vector<2x384xbf16>
    %199 = arith.extf %198 : vector<2x384xbf16> to vector<2x384xf32>
    %200 = arith.truncf %191 : vector<2x128xf32> to vector<2x128xbf16>
    %cst_48 = arith.constant dense<0.000000e+00> : vector<2x384xf32>
    %201 = tpu.matmul %200, %3, %cst_48 {dimension_numbers = #tpu.dot_dimension_numbers<[1], [0], [0], [1], [0, 0, 1, 1], [], []>} : vector<2x128xbf16>, vector<128x384xbf16>, vector<2x384xf32> -> vector<2x384xf32>
    %202 = vector.extract_strided_slice %199 {offsets = [0, 0], sizes = [2, 128], strides = [1, 1]} : vector<2x384xf32> to vector<2x128xf32>
    %203 = vector.extract_strided_slice %201 {offsets = [0, 0], sizes = [2, 128], strides = [1, 1]} : vector<2x384xf32> to vector<2x128xf32>
    %204 = arith.addf %202, %203 : vector<2x128xf32>
    %205 = arith.negf %204 : vector<2x128xf32>
    %206 = math.exp %205 : vector<2x128xf32>
    %cst_49 = arith.constant 1.000000e+00 : f32
    %207 = vector.broadcast %cst_49 : f32 to vector<2x128xf32>
    %208 = arith.addf %207, %206 : vector<2x128xf32>
    %209 = arith.divf %207, %208 : vector<2x128xf32>
    %210 = vector.extract_strided_slice %199 {offsets = [0, 128], sizes = [2, 128], strides = [1, 1]} : vector<2x384xf32> to vector<2x128xf32>
    %211 = vector.extract_strided_slice %201 {offsets = [0, 128], sizes = [2, 128], strides = [1, 1]} : vector<2x384xf32> to vector<2x128xf32>
    %212 = arith.addf %210, %211 : vector<2x128xf32>
    %213 = arith.negf %212 : vector<2x128xf32>
    %214 = math.exp %213 : vector<2x128xf32>
    %cst_50 = arith.constant 1.000000e+00 : f32
    %215 = vector.broadcast %cst_50 : f32 to vector<2x128xf32>
    %216 = arith.addf %215, %214 : vector<2x128xf32>
    %217 = arith.divf %215, %216 : vector<2x128xf32>
    %218 = vector.extract_strided_slice %199 {offsets = [0, 256], sizes = [2, 128], strides = [1, 1]} : vector<2x384xf32> to vector<2x128xf32>
    %219 = vector.extract_strided_slice %201 {offsets = [0, 256], sizes = [2, 128], strides = [1, 1]} : vector<2x384xf32> to vector<2x128xf32>
    %220 = vector.broadcast %4 : vector<1x128xf32> to vector<2x128xf32>
    %221 = arith.addf %219, %220 : vector<2x128xf32>
    %222 = arith.mulf %209, %221 : vector<2x128xf32>
    %223 = arith.addf %218, %222 : vector<2x128xf32>
    %224 = math.tanh %223 : vector<2x128xf32>
    %cst_51 = arith.constant 1.000000e+00 : f32
    %225 = vector.broadcast %cst_51 : f32 to vector<2x128xf32>
    %226 = arith.subf %225, %217 : vector<2x128xf32>
    %227 = arith.mulf %226, %224 : vector<2x128xf32>
    %228 = arith.mulf %217, %191 : vector<2x128xf32>
    %229 = arith.addf %227, %228 : vector<2x128xf32>
    %230 = arith.index_cast %c5_i32 : i32 to index
    %c0_52 = arith.constant 0 : index
    %c0_53 = arith.constant 0 : index
    %231 = vector.load %arg5[%230, %c0_52, %c0_53] : memref<8x2x128xf32, #tpu.memory_space<vmem>>, vector<1x2x128xf32>
    %232 = vector.shape_cast %231 : vector<1x2x128xf32> to vector<2x128xf32>
    %233 = vector.shape_cast %229 : vector<2x128xf32> to vector<1x2x128xf32>
    tpu.vector_store %arg5[%230, %c0_52, %c0_53], %233 {strides = array<i32>} : memref<8x2x128xf32, #tpu.memory_space<vmem>>, vector<1x2x128xf32>,
    %c6_i32 = arith.constant 6 : i32
    %234 = arith.index_cast %c6_i32 : i32 to index
    %c0_54 = arith.constant 0 : index
    %c0_55 = arith.constant 0 : index
    %235 = vector.load %arg2[%234, %c0_54, %c0_55] : memref<8x2x384xbf16, #tpu.memory_space<vmem>>, vector<1x2x384xbf16>
    %236 = vector.shape_cast %235 : vector<1x2x384xbf16> to vector<2x384xbf16>
    %237 = arith.extf %236 : vector<2x384xbf16> to vector<2x384xf32>
    %238 = arith.truncf %229 : vector<2x128xf32> to vector<2x128xbf16>
    %cst_56 = arith.constant dense<0.000000e+00> : vector<2x384xf32>
    %239 = tpu.matmul %238, %3, %cst_56 {dimension_numbers = #tpu.dot_dimension_numbers<[1], [0], [0], [1], [0, 0, 1, 1], [], []>} : vector<2x128xbf16>, vector<128x384xbf16>, vector<2x384xf32> -> vector<2x384xf32>
    %240 = vector.extract_strided_slice %237 {offsets = [0, 0], sizes = [2, 128], strides = [1, 1]} : vector<2x384xf32> to vector<2x128xf32>
    %241 = vector.extract_strided_slice %239 {offsets = [0, 0], sizes = [2, 128], strides = [1, 1]} : vector<2x384xf32> to vector<2x128xf32>
    %242 = arith.addf %240, %241 : vector<2x128xf32>
    %243 = arith.negf %242 : vector<2x128xf32>
    %244 = math.exp %243 : vector<2x128xf32>
    %cst_57 = arith.constant 1.000000e+00 : f32
    %245 = vector.broadcast %cst_57 : f32 to vector<2x128xf32>
    %246 = arith.addf %245, %244 : vector<2x128xf32>
    %247 = arith.divf %245, %246 : vector<2x128xf32>
    %248 = vector.extract_strided_slice %237 {offsets = [0, 128], sizes = [2, 128], strides = [1, 1]} : vector<2x384xf32> to vector<2x128xf32>
    %249 = vector.extract_strided_slice %239 {offsets = [0, 128], sizes = [2, 128], strides = [1, 1]} : vector<2x384xf32> to vector<2x128xf32>
    %250 = arith.addf %248, %249 : vector<2x128xf32>
    %251 = arith.negf %250 : vector<2x128xf32>
    %252 = math.exp %251 : vector<2x128xf32>
    %cst_58 = arith.constant 1.000000e+00 : f32
    %253 = vector.broadcast %cst_58 : f32 to vector<2x128xf32>
    %254 = arith.addf %253, %252 : vector<2x128xf32>
    %255 = arith.divf %253, %254 : vector<2x128xf32>
    %256 = vector.extract_strided_slice %237 {offsets = [0, 256], sizes = [2, 128], strides = [1, 1]} : vector<2x384xf32> to vector<2x128xf32>
    %257 = vector.extract_strided_slice %239 {offsets = [0, 256], sizes = [2, 128], strides = [1, 1]} : vector<2x384xf32> to vector<2x128xf32>
    %258 = vector.broadcast %4 : vector<1x128xf32> to vector<2x128xf32>
    %259 = arith.addf %257, %258 : vector<2x128xf32>
    %260 = arith.mulf %247, %259 : vector<2x128xf32>
    %261 = arith.addf %256, %260 : vector<2x128xf32>
    %262 = math.tanh %261 : vector<2x128xf32>
    %cst_59 = arith.constant 1.000000e+00 : f32
    %263 = vector.broadcast %cst_59 : f32 to vector<2x128xf32>
    %264 = arith.subf %263, %255 : vector<2x128xf32>
    %265 = arith.mulf %264, %262 : vector<2x128xf32>
    %266 = arith.mulf %255, %229 : vector<2x128xf32>
    %267 = arith.addf %265, %266 : vector<2x128xf32>
    %268 = arith.index_cast %c6_i32 : i32 to index
    %c0_60 = arith.constant 0 : index
    %c0_61 = arith.constant 0 : index
    %269 = vector.load %arg5[%268, %c0_60, %c0_61] : memref<8x2x128xf32, #tpu.memory_space<vmem>>, vector<1x2x128xf32>
    %270 = vector.shape_cast %269 : vector<1x2x128xf32> to vector<2x128xf32>
    %271 = vector.shape_cast %267 : vector<2x128xf32> to vector<1x2x128xf32>
    tpu.vector_store %arg5[%268, %c0_60, %c0_61], %271 {strides = array<i32>} : memref<8x2x128xf32, #tpu.memory_space<vmem>>, vector<1x2x128xf32>,
    %c7_i32 = arith.constant 7 : i32
    %272 = arith.index_cast %c7_i32 : i32 to index
    %c0_62 = arith.constant 0 : index
    %c0_63 = arith.constant 0 : index
    %273 = vector.load %arg2[%272, %c0_62, %c0_63] : memref<8x2x384xbf16, #tpu.memory_space<vmem>>, vector<1x2x384xbf16>
    %274 = vector.shape_cast %273 : vector<1x2x384xbf16> to vector<2x384xbf16>
    %275 = arith.extf %274 : vector<2x384xbf16> to vector<2x384xf32>
    %276 = arith.truncf %267 : vector<2x128xf32> to vector<2x128xbf16>
    %cst_64 = arith.constant dense<0.000000e+00> : vector<2x384xf32>
    %277 = tpu.matmul %276, %3, %cst_64 {dimension_numbers = #tpu.dot_dimension_numbers<[1], [0], [0], [1], [0, 0, 1, 1], [], []>} : vector<2x128xbf16>, vector<128x384xbf16>, vector<2x384xf32> -> vector<2x384xf32>
    %278 = vector.extract_strided_slice %275 {offsets = [0, 0], sizes = [2, 128], strides = [1, 1]} : vector<2x384xf32> to vector<2x128xf32>
    %279 = vector.extract_strided_slice %277 {offsets = [0, 0], sizes = [2, 128], strides = [1, 1]} : vector<2x384xf32> to vector<2x128xf32>
    %280 = arith.addf %278, %279 : vector<2x128xf32>
    %281 = arith.negf %280 : vector<2x128xf32>
    %282 = math.exp %281 : vector<2x128xf32>
    %cst_65 = arith.constant 1.000000e+00 : f32
    %283 = vector.broadcast %cst_65 : f32 to vector<2x128xf32>
    %284 = arith.addf %283, %282 : vector<2x128xf32>
    %285 = arith.divf %283, %284 : vector<2x128xf32>
    %286 = vector.extract_strided_slice %275 {offsets = [0, 128], sizes = [2, 128], strides = [1, 1]} : vector<2x384xf32> to vector<2x128xf32>
    %287 = vector.extract_strided_slice %277 {offsets = [0, 128], sizes = [2, 128], strides = [1, 1]} : vector<2x384xf32> to vector<2x128xf32>
    %288 = arith.addf %286, %287 : vector<2x128xf32>
    %289 = arith.negf %288 : vector<2x128xf32>
    %290 = math.exp %289 : vector<2x128xf32>
    %cst_66 = arith.constant 1.000000e+00 : f32
    %291 = vector.broadcast %cst_66 : f32 to vector<2x128xf32>
    %292 = arith.addf %291, %290 : vector<2x128xf32>
    %293 = arith.divf %291, %292 : vector<2x128xf32>
    %294 = vector.extract_strided_slice %275 {offsets = [0, 256], sizes = [2, 128], strides = [1, 1]} : vector<2x384xf32> to vector<2x128xf32>
    %295 = vector.extract_strided_slice %277 {offsets = [0, 256], sizes = [2, 128], strides = [1, 1]} : vector<2x384xf32> to vector<2x128xf32>
    %296 = vector.broadcast %4 : vector<1x128xf32> to vector<2x128xf32>
    %297 = arith.addf %295, %296 : vector<2x128xf32>
    %298 = arith.mulf %285, %297 : vector<2x128xf32>
    %299 = arith.addf %294, %298 : vector<2x128xf32>
    %300 = math.tanh %299 : vector<2x128xf32>
    %cst_67 = arith.constant 1.000000e+00 : f32
    %301 = vector.broadcast %cst_67 : f32 to vector<2x128xf32>
    %302 = arith.subf %301, %293 : vector<2x128xf32>
    %303 = arith.mulf %302, %300 : vector<2x128xf32>
    %304 = arith.mulf %293, %267 : vector<2x128xf32>
    %305 = arith.addf %303, %304 : vector<2x128xf32>
    %306 = arith.index_cast %c7_i32 : i32 to index
    %c0_68 = arith.constant 0 : index
    %c0_69 = arith.constant 0 : index
    %307 = vector.load %arg5[%306, %c0_68, %c0_69] : memref<8x2x128xf32, #tpu.memory_space<vmem>>, vector<1x2x128xf32>
    %308 = vector.shape_cast %307 : vector<1x2x128xf32> to vector<2x128xf32>
    %309 = vector.shape_cast %305 : vector<2x128xf32> to vector<1x2x128xf32>
    tpu.vector_store %arg5[%306, %c0_68, %c0_69], %309 {strides = array<i32>} : memref<8x2x128xf32, #tpu.memory_space<vmem>>, vector<1x2x128xf32>,
    %c8_i32 = arith.constant 8 : i32
    %c0_70 = arith.constant 0 : index
    %c0_71 = arith.constant 0 : index
    %310 = vector.load %arg6[%c0_70, %c0_71] : memref<2x128xf32, #tpu.memory_space<vmem>>, vector<2x128xf32>
    tpu.vector_store %arg6[%c0_70, %c0_71], %305 {strides = array<i32>} : memref<2x128xf32, #tpu.memory_space<vmem>>, vector<2x128xf32>,
    return
  }
  func.func @transform_0(%arg0: i32, %arg1: i32) -> (i32, i32, i32) {
    %c0_i32 = arith.constant 0 : i32
    %c0_i32_0 = arith.constant 0 : i32
    return %arg1, %arg0, %c0_i32 : i32, i32, i32
  }
  func.func @transform_1(%arg0: i32, %arg1: i32) -> (i32, i32) {
    %c0_i32 = arith.constant 0 : i32
    %c0_i32_0 = arith.constant 0 : i32
    %c0_i32_1 = arith.constant 0 : i32
    return %c0_i32, %c0_i32_0 : i32, i32
  }
  func.func @transform_2(%arg0: i32, %arg1: i32) -> (i32, i32) {
    %c0_i32 = arith.constant 0 : i32
    %c0_i32_0 = arith.constant 0 : i32
    %c0_i32_1 = arith.constant 0 : i32
    return %c0_i32, %c0_i32_0 : i32, i32
  }
  func.func @transform_3(%arg0: i32, %arg1: i32) -> (i32, i32, i32) {
    %c0_i32 = arith.constant 0 : i32
    %c0_i32_0 = arith.constant 0 : i32
    return %arg1, %arg0, %c0_i32 : i32, i32, i32
  }
}

</mosaic_0001>

<bundles_post_ra>
// kernel: gru_forward.3
= control target key start
LH: loop header
LB: loop body
LE: loop exit
PB: predicated region body
PF: predicated region fallthrough
CT: control target
= control target key end

     0   :  { %v1514_v1 = vmov 0.0   ;;  %v1515_v2 = vmov 0   ;;  %vm1516_vm0 = vmmov 0   ;;  %s2050_s1 = inlined_call_operand.vmem [shape: bf16[128,384], index: 1, kind: input, shape index: {}]   ;;  %s2051_s0 = inlined_call_operand.vmem [shape: bf16[8,2,384], index: 0, kind: input, shape index: {}]   ;;  %s2052_s2 = inlined_call_operand.vmem [shape: f32[1,128], index: 2, kind: input, shape index: {}]   ;;  %s2053_s3 = inlined_call_operand.vmem [shape: bf16[8,2,128], index: 3, kind: output, shape index: {}]  }
   0x1   :  { %v1540_v0 = vld [vmem:[%s2050_s1 + $0x4] ss:$12 sps:$4 sm:$0xff]   ;;  %1231 = vmatprep.subr.bf16.mxu1 %v1514_v1  ;;  %19 = vst [vmem:[#allocation2] sm:$0x3] %v1514_v1  ;;  %217 = vmatprep.mubr.bf16.mxu0 %v1515_v2  ;;  %v1548_v3 = vld [vmem:[%s2050_s1] ss:$12 sps:$4 sm:$0xff]  }
   0x2   :  { %1247 = vmatprep.mubr.msk.bf16.mxu1 %vm1516_vm0, %v1514_v1  ;;  %185 = vmatprep.subr.bf16.mxu0 %v1540_v0  ;;  %v1556_v4 = vld [vmem:[%s2050_s1 + $0x1c] ss:$12 sps:$4 sm:$0xff]   ;;  %v1562_v5 = vld [vmem:[%s2050_s1 + $0x18] ss:$12 sps:$4 sm:$0xff]   ;;  %v1568_v6 = vld [vmem:[%s2050_s1 + $0x34] ss:$12 sps:$4 sm:$0xff]  }
   0x3   :  { %186 = vmatpush1.bf16.msra.mxu0 %v1548_v3  ;;  %v1574_v7 = vld [vmem:[%s2050_s1 + $0x30] ss:$12 sps:$4 sm:$0xff]   ;;  %v1580_v8 = vld [vmem:[%s2050_s1 + $0x4c] ss:$12 sps:$4 sm:$0xff]   ;;  %v1585_v9 = vld [vmem:[%s2050_s1 + $0x8] ss:$12 sps:$4 sm:$0xff]  }
   0x4   :  { %187 = vmatprep.subr.bf16.mxu0 %v1556_v4  ;;  %v1591_v10 = vld [vmem:[%s2050_s1 + $0x48] ss:$12 sps:$4 sm:$0xff]   ;;  %1232 = vmatpush3.bf16.msra.mxu1 %v1585_v9  ;;  %v1598_v11 = vld [vmem:[%s2050_s1 + $0x64] ss:$12 sps:$4 sm:$0xff]   ;;  %v1604_v12 = vld [vmem:[%s2050_s1 + $0x20] ss:$12 sps:$4 sm:$0xff]  }
   0x5   :  { %1233 = vmatprep.subr.bf16.mxu1 %v1514_v1  ;;  %v1609_v13 = vld [vmem:[%s2050_s1 + $0x60] ss:$12 sps:$4 sm:$0xff]   ;;  %v1616_v14 = vld [vmem:[%s2050_s1 + $0x38] ss:$12 sps:$4 sm:$0xff]   ;;  %v1622_v15 = vld [vmem:[%s2050_s1 + $0x7c] ss:$12 sps:$4 sm:$0xff]  }
   0x6   :  { %v1629_v16 = vld [vmem:[%s2050_s1 + $0x78] ss:$12 sps:$4 sm:$0xff]   ;;  %v1635_v17 = vld [vmem:[%s2050_s1 + $0x50] ss:$12 sps:$4 sm:$0xff]   ;;  %v1641_v18 = vld [vmem:[%s2050_s1 + $0x94] ss:$12 sps:$4 sm:$0xff]  }
   0x7   :  { %188 = vmatpush1.bf16.msra.mxu0 %v1562_v5  ;;  %v1648_v19 = vld [vmem:[%s2050_s1 + $0x90] ss:$12 sps:$4 sm:$0xff]   ;;  %v1654_v20 = vld [vmem:[%s2050_s1 + $0x68] ss:$12 sps:$4 sm:$0xff]   ;;  %v1660_v21 = vld [vmem:[%s2050_s1 + $0xac] ss:$12 sps:$4 sm:$0xff]  }
   0x8   :  { %189 = vmatprep.subr.bf16.mxu0 %v1568_v6  ;;  %1234 = vmatpush3.bf16.msra.mxu1 %v1604_v12  ;;  %v1667_v22 = vld [vmem:[%s2050_s1 + $0xa8] ss:$12 sps:$4 sm:$0xff]   ;;  %v1669_v23 = vld [vmem:[#allocation2] sm:$0x3]  ;;  %v1686_v26 = vld [vmem:[%s2050_s1 + $0x98] ss:$12 sps:$4 sm:$0xff]  }
   0x9   :  { %1235 = vmatprep.subr.bf16.mxu1 %v1514_v1  ;;  %v1675_v24 = vld [vmem:[%s2050_s1 + $0x80] ss:$12 sps:$4 sm:$0xff]   ;;  %v56_v25 = vpack.c.bf16 %v1669_v23, %v1669_v23  ;;  %v1694_v27 = vld [vmem:[%s2050_s1 + $0xb0] ss:$12 sps:$4 sm:$0xff]  }
   0xa   :  { %v54_v28 = vld [vmem:[%s2051_s0] sm:$0x7]  ;;  %v1131_v60 = vld [vmem:[%s2051_s0 + $0x3] sm:$0x7] }
   0xb   :  { %190 = vmatpush1.bf16.msra.mxu0 %v1574_v7  ;;  %v55_v29 = vunpack.c.l.bf16 %v54_v28  ;;  %v1740_v46 = vld [vmem:[%s2052_s2] ss:$0 sm:$0xff]  ;;  %v303_v61 = vunpack.c.l.bf16 %v1131_v60 }
   0xc   :  { %191 = vmatprep.subr.bf16.mxu0 %v1580_v8  ;;  %1236 = vmatpush3.bf16.msra.mxu1 %v1616_v14 }
   0xd   :  { %1237 = vmatprep.subr.bf16.mxu1 %v1514_v1  ;;  %v274_v31 = vrot.slane %v55_v29, 2  ;;  %v291_v49 = vrot.slane %v55_v29, 4 }
   0xf   :  { %192 = vmatpush1.bf16.msra.mxu0 %v1591_v10 }
  0x10   :  { %193 = vmatprep.subr.bf16.mxu0 %v1598_v11  ;;  %1238 = vmatpush3.bf16.msra.mxu1 %v1635_v17 }
  0x11   :  { %1239 = vmatprep.subr.bf16.mxu1 %v1514_v1 }
  0x13   :  { %194 = vmatpush1.bf16.msra.mxu0 %v1609_v13 }
  0x14   :  { %195 = vmatprep.subr.bf16.mxu0 %v1622_v15  ;;  %1240 = vmatpush3.bf16.msra.mxu1 %v1654_v20 }
  0x15   :  { %1241 = vmatprep.subr.bf16.mxu1 %v1514_v1 }
  0x17   :  { %196 = vmatpush1.bf16.msra.mxu0 %v1629_v16 }
  0x18   :  { %197 = vmatprep.subr.bf16.mxu0 %v1641_v18  ;;  %1242 = vmatpush3.bf16.msra.mxu1 %v1675_v24 }
  0x19   :  { %1243 = vmatprep.subr.bf16.mxu1 %v1514_v1 }
  0x1b   :  { %198 = vmatpush1.bf16.msra.mxu0 %v1648_v19 }
  0x1c   :  { %199 = vmatprep.subr.bf16.mxu0 %v1660_v21  ;;  %1244 = vmatpush3.bf16.msra.mxu1 %v1686_v26 }
  0x1d   :  { %1245 = vmatprep.subr.bf16.mxu1 %v1514_v1 }
  0x1f   :  { %200 = vmatpush1.bf16.msra.mxu0 %v1667_v22 }
  0x20   :  { %304 = vmatprep.subr.bf16.mxu0 %v1540_v0  ;;  %1246 = vmatpush3.bf16.msra.mxu1 %v1694_v27 }
  0x21   :  { %1251 = vmatprep.subr.bf16.mxu1 %v1514_v1 }
  0x22   :  { %218 = vmatmul.mubr.bf16.vlgmr.msra.gmra.mrb[0].mxu0 %v56_v25 }
  0x23   :  { %305 = vmatpush1.bf16.msra.mxu0 %v1548_v3  ;;  %336 = vmatprep.mubr.bf16.mxu0 %v1515_v2 }
  0x24   :  { %306 = vmatprep.subr.bf16.mxu0 %v1556_v4  ;;  %1248 = vmatmul.mubr.bf16.vlgmr.msra.gmra.mrb[0].mxu1 %v56_v25 }
  0x25   :  { %1252 = vmatpush3.bf16.msra.mxu1 %v1585_v9  ;;  %1267 = vmatprep.mubr.msk.bf16.mxu1 %vm1516_vm0, %v1514_v1 }
  0x26   :  { %1253 = vmatprep.subr.bf16.mxu1 %v1514_v1 }
  0x27   :  { %307 = vmatpush1.bf16.msra.mxu0 %v1562_v5 }
  0x28   :  { %308 = vmatprep.subr.bf16.mxu0 %v1568_v6 }
  0x29   :  { %1254 = vmatpush3.bf16.msra.mxu1 %v1604_v12 }
  0x2a   :  { %1255 = vmatprep.subr.bf16.mxu1 %v1514_v1 }
  0x2b   :  { %309 = vmatpush1.bf16.msra.mxu0 %v1574_v7 }
  0x2c   :  { %310 = vmatprep.subr.bf16.mxu0 %v1580_v8 }
  0x2d   :  { %1256 = vmatpush3.bf16.msra.mxu1 %v1616_v14 }
  0x2e   :  { %1257 = vmatprep.subr.bf16.mxu1 %v1514_v1 }
  0x2f   :  { %311 = vmatpush1.bf16.msra.mxu0 %v1591_v10 }
  0x30   :  { %312 = vmatprep.subr.bf16.mxu0 %v1598_v11 }
  0x31   :  { %1258 = vmatpush3.bf16.msra.mxu1 %v1635_v17 }
  0x32   :  { %1259 = vmatprep.subr.bf16.mxu1 %v1514_v1 }
  0x33   :  { %313 = vmatpush1.bf16.msra.mxu0 %v1609_v13 }
  0x34   :  { %314 = vmatprep.subr.bf16.mxu0 %v1622_v15 }
  0x35   :  { %1260 = vmatpush3.bf16.msra.mxu1 %v1654_v20 }
  0x36   :  { %1261 = vmatprep.subr.bf16.mxu1 %v1514_v1 }
  0x37   :  { %315 = vmatpush1.bf16.msra.mxu0 %v1629_v16 }
  0x38   :  { %316 = vmatprep.subr.bf16.mxu0 %v1641_v18 }
  0x39   :  { %1262 = vmatpush3.bf16.msra.mxu1 %v1675_v24 }
  0x3a   :  { %1263 = vmatprep.subr.bf16.mxu1 %v1514_v1 }
  0x3b   :  { %317 = vmatpush1.bf16.msra.mxu0 %v1648_v19 }
  0x3c   :  { %318 = vmatprep.subr.bf16.mxu0 %v1660_v21 }
  0x3d   :  { %1264 = vmatpush3.bf16.msra.mxu1 %v1686_v26 }
  0x3e   :  { %1265 = vmatprep.subr.bf16.mxu1 %v1514_v1 }
  0x3f   :  { %319 = vmatpush1.bf16.msra.mxu0 %v1667_v22 }
  0x40   :  { %418 = vmatprep.subr.bf16.mxu0 %v1540_v0 }
  0x41   :  { %1266 = vmatpush3.bf16.msra.mxu1 %v1694_v27 }
  0x42   :  { %1271 = vmatprep.subr.bf16.mxu1 %v1514_v1 }
  0xf5   :  { %v219_v30 = vpop.f32.mrb[0].mxu0 }
  0xf6   :  { %v266_v32 = vadd.f32 %v219_v30, %v55_v29  ;;  %v221_v33 = vpop.f32.mrb[1].mxu0 }
  0xf7   :  { %v223_v34 = vpop.f32.mrb[2].mxu0  ;;  %v276_v37 = vadd.f32 %v274_v31, %v221_v33  ;;  %v260_v39 = vpop.f32.mrb[0].mxu1 }
  0xf8   :  { %v1128_v35 = vmul.f32 -1.442695, %v266_v32  ;;  %v224_v36 = vpop.f32.mrb[3].mxu0  ;;  %v1249_v40 = vpop.f32.mrb[1].mxu1  ;;  %v289_v48 = vadd.f32 %v1740_v46, %v260_v39 }
  0xf9   :  { %v1129_v38 = vmul.f32 -1.442695, %v276_v37  ;;  %v263_v41 = vpop.f32.mrb[2].mxu1 }
  0xfa   :  { %1426 = vpow2.f32 %v1128_v35  ;;  %v1250_v42 = vpop.f32.mrb[3].mxu1 }
  0xfb   :  { %1428 = vpow2.f32 %v1129_v38  ;;  %v404_v42 = vrot.slane %v303_v61, 4 }
 0x104   :  { %v1427_v43 = vpop.eup %1426 }
 0x105   :  { %v270_v44 = vadd.f32 1.0, %v1427_v43  ;;  %v1429_v45 = vpop.eup %1428 }
 0x106   :  { %v280_v47 = vadd.f32 1.0, %v1429_v45 }
 0x107   :  { %1430 = vrcp.f32 %v270_v44 }
 0x108   :  { %1432 = vrcp.f32 %v280_v47 }
 0x111   :  { %v1431_v50 = vpop.eup %1430 }
 0x112   :  { %v290_v51 = vmul.f32 %v1431_v50, %v289_v48  ;;  %v1433_v53 = vpop.eup %1432 }
 0x113   :  { %v295_v54 = vsub.f32 1.0, %v1433_v53  ;;  %v297_v57 = vmul.f32 %v1433_v53, %v1669_v23  ;;  %v393_v23 = vrot.slane %v303_v61, 2 }
 0x114   :  { %v293_v52 = vadd.f32 %v291_v49, %v290_v51 }
 0x116   :  { %1434 = vtanh.f32 %v293_v52 }
 0x120   :  { %v1435_v55 = vpop.eup %1434 }
 0x121   :  { %v296_v56 = vmul.f32 %v1435_v55, %v295_v54  ;;  %v1135_v54 = vld [vmem:[%s2051_s0 + $0x6] sm:$0x7] }
 0x122   :  { %v417_v55 = vunpack.c.l.bf16 %v1135_v54 }
 0x123   :  { %v1744_v58 = vadd.f32 %v297_v57, %v296_v56 }
 0x125   :  { %v299_v59 = vpack.c.bf16 %v1744_v58, %v1744_v58 }
 0x127   :  { %300 = vst [vmem:[%s2053_s3] sm:$0x1] %v299_v59  ;;  %337 = vmatmul.mubr.bf16.vlgmr.msra.gmra.mrb[4].mxu0 %v299_v59  ;;  %1268 = vmatmul.mubr.bf16.vlgmr.msra.gmra.mrb[4].mxu1 %v299_v59 }
 0x128   :  { %419 = vmatpush1.bf16.msra.mxu0 %v1548_v3  ;;  %1272 = vmatpush3.bf16.msra.mxu1 %v1585_v9 }
 0x129   :  { %420 = vmatprep.subr.bf16.mxu0 %v1556_v4  ;;  %1273 = vmatprep.subr.bf16.mxu1 %v1514_v1 }
 0x12a   :  { %450 = vmatprep.mubr.bf16.mxu0 %v1515_v2  ;;  %1287 = vmatprep.mubr.msk.bf16.mxu1 %vm1516_vm0, %v1514_v1 }
 0x12c   :  { %421 = vmatpush1.bf16.msra.mxu0 %v1562_v5  ;;  %1274 = vmatpush3.bf16.msra.mxu1 %v1604_v12 }
 0x12d   :  { %422 = vmatprep.subr.bf16.mxu0 %v1568_v6  ;;  %1275 = vmatprep.subr.bf16.mxu1 %v1514_v1 }
 0x130   :  { %423 = vmatpush1.bf16.msra.mxu0 %v1574_v7  ;;  %1276 = vmatpush3.bf16.msra.mxu1 %v1616_v14 }
 0x131   :  { %424 = vmatprep.subr.bf16.mxu0 %v1580_v8  ;;  %1277 = vmatprep.subr.bf16.mxu1 %v1514_v1 }
 0x134   :  { %425 = vmatpush1.bf16.msra.mxu0 %v1591_v10  ;;  %1278 = vmatpush3.bf16.msra.mxu1 %v1635_v17 }
 0x135   :  { %426 = vmatprep.subr.bf16.mxu0 %v1598_v11  ;;  %1279 = vmatprep.subr.bf16.mxu1 %v1514_v1 }
 0x138   :  { %427 = vmatpush1.bf16.msra.mxu0 %v1609_v13  ;;  %1280 = vmatpush3.bf16.msra.mxu1 %v1654_v20 }
 0x139   :  { %428 = vmatprep.subr.bf16.mxu0 %v1622_v15  ;;  %1281 = vmatprep.subr.bf16.mxu1 %v1514_v1 }
 0x13c   :  { %429 = vmatpush1.bf16.msra.mxu0 %v1629_v16  ;;  %1282 = vmatpush3.bf16.msra.mxu1 %v1675_v24 }
 0x13d   :  { %430 = vmatprep.subr.bf16.mxu0 %v1641_v18  ;;  %1283 = vmatprep.subr.bf16.mxu1 %v1514_v1 }
 0x140   :  { %431 = vmatpush1.bf16.msra.mxu0 %v1648_v19  ;;  %1284 = vmatpush3.bf16.msra.mxu1 %v1686_v26 }
 0x141   :  { %432 = vmatprep.subr.bf16.mxu0 %v1660_v21  ;;  %1285 = vmatprep.subr.bf16.mxu1 %v1514_v1 }
 0x144   :  { %433 = vmatpush1.bf16.msra.mxu0 %v1667_v22  ;;  %1286 = vmatpush3.bf16.msra.mxu1 %v1694_v27 }
 0x145   :  { %532 = vmatprep.subr.bf16.mxu0 %v1540_v0  ;;  %1291 = vmatprep.subr.bf16.mxu1 %v1514_v1 }
 0x1fa   :  { %v338_v62 = vpop.f32.mrb[4].mxu0  ;;  %v379_v63 = vpop.f32.mrb[4].mxu1 }
 0x1fb   :  { %v385_v25 = vadd.f32 %v338_v62, %v303_v61  ;;  %v340_v28 = vpop.f32.mrb[5].mxu0  ;;  %v1269_v29 = vpop.f32.mrb[5].mxu1  ;;  %v402_v41 = vadd.f32 %v1740_v46, %v379_v63 }
 0x1fc   :  { %v342_v30 = vpop.f32.mrb[6].mxu0  ;;  %v382_v31 = vpop.f32.mrb[6].mxu1  ;;  %v395_v35 = vadd.f32 %v393_v23, %v340_v28 }
 0x1fd   :  { %v1132_v32 = vmul.f32 -1.442695, %v385_v25  ;;  %v343_v33 = vpop.f32.mrb[7].mxu0  ;;  %v1270_v34 = vpop.f32.mrb[7].mxu1 }
 0x1fe   :  { %v1133_v36 = vmul.f32 -1.442695, %v395_v35 }
 0x1ff   :  { %1436 = vpow2.f32 %v1132_v32 }
 0x200   :  { %1438 = vpow2.f32 %v1133_v36  ;;  %v518_v36 = vrot.slane %v417_v55, 4 }
 0x209   :  { %v1437_v37 = vpop.eup %1436 }
 0x20a   :  { %v389_v38 = vadd.f32 1.0, %v1437_v37  ;;  %v1439_v39 = vpop.eup %1438 }
 0x20b   :  { %v399_v40 = vadd.f32 1.0, %v1439_v39 }
 0x20c   :  { %1440 = vrcp.f32 %v389_v38 }
 0x20d   :  { %1442 = vrcp.f32 %v399_v40 }
 0x216   :  { %v1441_v43 = vpop.eup %1440 }
 0x217   :  { %v403_v44 = vmul.f32 %v1441_v43, %v402_v41  ;;  %v1443_v47 = vpop.eup %1442 }
 0x218   :  { %v408_v48 = vsub.f32 1.0, %v1443_v47  ;;  %v410_v51 = vmul.f32 %v1443_v47, %v1744_v58  ;;  %v507_v58 = vrot.slane %v417_v55, 2 }
 0x219   :  { %v406_v45 = vadd.f32 %v404_v42, %v403_v44 }
 0x21b   :  { %1444 = vtanh.f32 %v406_v45 }
 0x225   :  { %v1445_v49 = vpop.eup %1444 }
 0x226   :  { %v409_v50 = vmul.f32 %v1445_v49, %v408_v48  ;;  %v1139_v48 = vld [vmem:[%s2051_s0 + $0x9] sm:$0x7] }
 0x227   :  { %v531_v49 = vunpack.c.l.bf16 %v1139_v48 }
 0x228   :  { %v1791_v52 = vadd.f32 %v410_v51, %v409_v50 }
 0x22a   :  { %v412_v53 = vpack.c.bf16 %v1791_v52, %v1791_v52 }
 0x22c   :  { %1134 = vst [vmem:[%s2053_s3 + $0x1] sm:$0x1] %v412_v53  ;;  %451 = vmatmul.mubr.bf16.vlgmr.msra.gmra.mrb[8].mxu0 %v412_v53  ;;  %1288 = vmatmul.mubr.bf16.vlgmr.msra.gmra.mrb[8].mxu1 %v412_v53 }
 0x22d   :  { %533 = vmatpush1.bf16.msra.mxu0 %v1548_v3  ;;  %1292 = vmatpush3.bf16.msra.mxu1 %v1585_v9 }
 0x22e   :  { %534 = vmatprep.subr.bf16.mxu0 %v1556_v4  ;;  %1293 = vmatprep.subr.bf16.mxu1 %v1514_v1 }
 0x22f   :  { %564 = vmatprep.mubr.bf16.mxu0 %v1515_v2  ;;  %1307 = vmatprep.mubr.msk.bf16.mxu1 %vm1516_vm0, %v1514_v1 }
 0x231   :  { %535 = vmatpush1.bf16.msra.mxu0 %v1562_v5  ;;  %1294 = vmatpush3.bf16.msra.mxu1 %v1604_v12 }
 0x232   :  { %536 = vmatprep.subr.bf16.mxu0 %v1568_v6  ;;  %1295 = vmatprep.subr.bf16.mxu1 %v1514_v1 }
 0x235   :  { %537 = vmatpush1.bf16.msra.mxu0 %v1574_v7  ;;  %1296 = vmatpush3.bf16.msra.mxu1 %v1616_v14 }
 0x236   :  { %538 = vmatprep.subr.bf16.mxu0 %v1580_v8  ;;  %1297 = vmatprep.subr.bf16.mxu1 %v1514_v1 }
 0x239   :  { %539 = vmatpush1.bf16.msra.mxu0 %v1591_v10  ;;  %1298 = vmatpush3.bf16.msra.mxu1 %v1635_v17 }
 0x23a   :  { %540 = vmatprep.subr.bf16.mxu0 %v1598_v11  ;;  %1299 = vmatprep.subr.bf16.mxu1 %v1514_v1 }
 0x23d   :  { %541 = vmatpush1.bf16.msra.mxu0 %v1609_v13  ;;  %1300 = vmatpush3.bf16.msra.mxu1 %v1654_v20 }
 0x23e   :  { %542 = vmatprep.subr.bf16.mxu0 %v1622_v15  ;;  %1301 = vmatprep.subr.bf16.mxu1 %v1514_v1 }
 0x241   :  { %543 = vmatpush1.bf16.msra.mxu0 %v1629_v16  ;;  %1302 = vmatpush3.bf16.msra.mxu1 %v1675_v24 }
 0x242   :  { %544 = vmatprep.subr.bf16.mxu0 %v1641_v18  ;;  %1303 = vmatprep.subr.bf16.mxu1 %v1514_v1 }
 0x245   :  { %545 = vmatpush1.bf16.msra.mxu0 %v1648_v19  ;;  %1304 = vmatpush3.bf16.msra.mxu1 %v1686_v26 }
 0x246   :  { %546 = vmatprep.subr.bf16.mxu0 %v1660_v21  ;;  %1305 = vmatprep.subr.bf16.mxu1 %v1514_v1 }
 0x249   :  { %547 = vmatpush1.bf16.msra.mxu0 %v1667_v22  ;;  %1306 = vmatpush3.bf16.msra.mxu1 %v1694_v27 }
 0x24a   :  { %646 = vmatprep.subr.bf16.mxu0 %v1540_v0  ;;  %1311 = vmatprep.subr.bf16.mxu1 %v1514_v1 }
 0x2ff   :  { %v452_v56 = vpop.f32.mrb[8].mxu0  ;;  %v493_v57 = vpop.f32.mrb[8].mxu1 }
 0x300   :  { %v499_v59 = vadd.f32 %v452_v56, %v417_v55  ;;  %v454_v60 = vpop.f32.mrb[9].mxu0  ;;  %v1289_v61 = vpop.f32.mrb[9].mxu1  ;;  %v516_v35 = vadd.f32 %v1740_v46, %v493_v57 }
 0x301   :  { %v456_v62 = vpop.f32.mrb[10].mxu0  ;;  %v496_v63 = vpop.f32.mrb[10].mxu1  ;;  %v509_v29 = vadd.f32 %v507_v58, %v454_v60 }
 0x302   :  { %v1136_v23 = vmul.f32 -1.442695, %v499_v59  ;;  %v457_v25 = vpop.f32.mrb[11].mxu0  ;;  %v1290_v28 = vpop.f32.mrb[11].mxu1 }
 0x303   :  { %v1137_v30 = vmul.f32 -1.442695, %v509_v29 }
 0x304   :  { %1446 = vpow2.f32 %v1136_v23 }
 0x305   :  { %1448 = vpow2.f32 %v1137_v30  ;;  %v632_v30 = vrot.slane %v531_v49, 4 }
 0x30e   :  { %v1447_v31 = vpop.eup %1446 }
 0x30f   :  { %v503_v32 = vadd.f32 1.0, %v1447_v31  ;;  %v1449_v33 = vpop.eup %1448 }
 0x310   :  { %v513_v34 = vadd.f32 1.0, %v1449_v33 }
 0x311   :  { %1450 = vrcp.f32 %v503_v32 }
 0x312   :  { %1452 = vrcp.f32 %v513_v34 }
 0x31b   :  { %v1451_v37 = vpop.eup %1450 }
 0x31c   :  { %v517_v38 = vmul.f32 %v1451_v37, %v516_v35  ;;  %v1453_v40 = vpop.eup %1452 }
 0x31d   :  { %v522_v41 = vsub.f32 1.0, %v1453_v40  ;;  %v524_v44 = vmul.f32 %v1453_v40, %v1791_v52  ;;  %v621_v52 = vrot.slane %v531_v49, 2 }
 0x31e   :  { %v520_v39 = vadd.f32 %v518_v36, %v517_v38 }
 0x320   :  { %1454 = vtanh.f32 %v520_v39 }
 0x32a   :  { %v1455_v42 = vpop.eup %1454 }
 0x32b   :  { %v523_v43 = vmul.f32 %v1455_v42, %v522_v41  ;;  %v1143_v41 = vld [vmem:[%s2051_s0 + $0xc] sm:$0x7] }
 0x32c   :  { %v645_v42 = vunpack.c.l.bf16 %v1143_v41 }
 0x32d   :  { %v1838_v45 = vadd.f32 %v524_v44, %v523_v43 }
 0x32f   :  { %v526_v47 = vpack.c.bf16 %v1838_v45, %v1838_v45 }
 0x331   :  { %1138 = vst [vmem:[%s2053_s3 + $0x2] sm:$0x1] %v526_v47  ;;  %565 = vmatmul.mubr.bf16.vlgmr.msra.gmra.mrb[12].mxu0 %v526_v47  ;;  %1308 = vmatmul.mubr.bf16.vlgmr.msra.gmra.mrb[12].mxu1 %v526_v47 }
 0x332   :  { %647 = vmatpush1.bf16.msra.mxu0 %v1548_v3  ;;  %1312 = vmatpush3.bf16.msra.mxu1 %v1585_v9 }
 0x333   :  { %648 = vmatprep.subr.bf16.mxu0 %v1556_v4  ;;  %1313 = vmatprep.subr.bf16.mxu1 %v1514_v1 }
 0x334   :  { %678 = vmatprep.mubr.bf16.mxu0 %v1515_v2  ;;  %1327 = vmatprep.mubr.msk.bf16.mxu1 %vm1516_vm0, %v1514_v1 }
 0x336   :  { %649 = vmatpush1.bf16.msra.mxu0 %v1562_v5  ;;  %1314 = vmatpush3.bf16.msra.mxu1 %v1604_v12 }
 0x337   :  { %650 = vmatprep.subr.bf16.mxu0 %v1568_v6  ;;  %1315 = vmatprep.subr.bf16.mxu1 %v1514_v1 }
 0x33a   :  { %651 = vmatpush1.bf16.msra.mxu0 %v1574_v7  ;;  %1316 = vmatpush3.bf16.msra.mxu1 %v1616_v14 }
 0x33b   :  { %652 = vmatprep.subr.bf16.mxu0 %v1580_v8  ;;  %1317 = vmatprep.subr.bf16.mxu1 %v1514_v1 }
 0x33e   :  { %653 = vmatpush1.bf16.msra.mxu0 %v1591_v10  ;;  %1318 = vmatpush3.bf16.msra.mxu1 %v1635_v17 }
 0x33f   :  { %654 = vmatprep.subr.bf16.mxu0 %v1598_v11  ;;  %1319 = vmatprep.subr.bf16.mxu1 %v1514_v1 }
 0x342   :  { %655 = vmatpush1.bf16.msra.mxu0 %v1609_v13  ;;  %1320 = vmatpush3.bf16.msra.mxu1 %v1654_v20 }
 0x343   :  { %656 = vmatprep.subr.bf16.mxu0 %v1622_v15  ;;  %1321 = vmatprep.subr.bf16.mxu1 %v1514_v1 }
 0x346   :  { %657 = vmatpush1.bf16.msra.mxu0 %v1629_v16  ;;  %1322 = vmatpush3.bf16.msra.mxu1 %v1675_v24 }
 0x347   :  { %658 = vmatprep.subr.bf16.mxu0 %v1641_v18  ;;  %1323 = vmatprep.subr.bf16.mxu1 %v1514_v1 }
 0x34a   :  { %659 = vmatpush1.bf16.msra.mxu0 %v1648_v19  ;;  %1324 = vmatpush3.bf16.msra.mxu1 %v1686_v26 }
 0x34b   :  { %660 = vmatprep.subr.bf16.mxu0 %v1660_v21  ;;  %1325 = vmatprep.subr.bf16.mxu1 %v1514_v1 }
 0x34e   :  { %661 = vmatpush1.bf16.msra.mxu0 %v1667_v22  ;;  %1326 = vmatpush3.bf16.msra.mxu1 %v1694_v27 }
 0x34f   :  { %760 = vmatprep.subr.bf16.mxu0 %v1540_v0  ;;  %1331 = vmatprep.subr.bf16.mxu1 %v1514_v1 }
 0x404   :  { %v566_v50 = vpop.f32.mrb[12].mxu0  ;;  %v607_v51 = vpop.f32.mrb[12].mxu1 }
 0x405   :  { %v613_v53 = vadd.f32 %v566_v50, %v531_v49  ;;  %v568_v54 = vpop.f32.mrb[13].mxu0  ;;  %v1309_v55 = vpop.f32.mrb[13].mxu1  ;;  %v630_v29 = vadd.f32 %v1740_v46, %v607_v51 }
 0x406   :  { %v570_v56 = vpop.f32.mrb[14].mxu0  ;;  %v610_v57 = vpop.f32.mrb[14].mxu1  ;;  %v623_v61 = vadd.f32 %v621_v52, %v568_v54 }
 0x407   :  { %v1140_v58 = vmul.f32 -1.442695, %v613_v53  ;;  %v571_v59 = vpop.f32.mrb[15].mxu0  ;;  %v1310_v60 = vpop.f32.mrb[15].mxu1 }
 0x408   :  { %v1141_v62 = vmul.f32 -1.442695, %v623_v61 }
 0x409   :  { %1456 = vpow2.f32 %v1140_v58 }
 0x40a   :  { %1458 = vpow2.f32 %v1141_v62  ;;  %v746_v62 = vrot.slane %v645_v42, 4 }
 0x413   :  { %v1457_v63 = vpop.eup %1456 }
 0x414   :  { %v617_v23 = vadd.f32 1.0, %v1457_v63  ;;  %v1459_v25 = vpop.eup %1458 }
 0x415   :  { %v627_v28 = vadd.f32 1.0, %v1459_v25 }
 0x416   :  { %1460 = vrcp.f32 %v617_v23 }
 0x417   :  { %1462 = vrcp.f32 %v627_v28 }
 0x420   :  { %v1461_v31 = vpop.eup %1460 }
 0x421   :  { %v631_v32 = vmul.f32 %v1461_v31, %v630_v29  ;;  %v1463_v34 = vpop.eup %1462 }
 0x422   :  { %v636_v35 = vsub.f32 1.0, %v1463_v34  ;;  %v638_v38 = vmul.f32 %v1463_v34, %v1838_v45  ;;  %v735_v45 = vrot.slane %v645_v42, 2 }
 0x423   :  { %v634_v33 = vadd.f32 %v632_v30, %v631_v32 }
 0x425   :  { %1464 = vtanh.f32 %v634_v33 }
 0x42f   :  { %v1465_v36 = vpop.eup %1464 }
 0x430   :  { %v637_v37 = vmul.f32 %v1465_v36, %v636_v35 }
 0x432   :  { %v1885_v39 = vadd.f32 %v638_v38, %v637_v37 }
 0x434   :  { %v640_v40 = vpack.c.bf16 %v1885_v39, %v1885_v39 }
 0x436   :  { %1142 = vst [vmem:[%s2053_s3 + $0x3] sm:$0x1] %v640_v40  ;;  %679 = vmatmul.mubr.bf16.vlgmr.msra.gmra.mrb[16].mxu0 %v640_v40  ;;  %1328 = vmatmul.mubr.bf16.vlgmr.msra.gmra.mrb[16].mxu1 %v640_v40 }
 0x437   :  { %761 = vmatpush1.bf16.msra.mxu0 %v1548_v3  ;;  %1332 = vmatpush3.bf16.msra.mxu1 %v1585_v9 }
 0x438   :  { %762 = vmatprep.subr.bf16.mxu0 %v1556_v4  ;;  %1333 = vmatprep.subr.bf16.mxu1 %v1514_v1 }
 0x439   :  { %792 = vmatprep.mubr.bf16.mxu0 %v1515_v2  ;;  %1347 = vmatprep.mubr.msk.bf16.mxu1 %vm1516_vm0, %v1514_v1 }
 0x43b   :  { %763 = vmatpush1.bf16.msra.mxu0 %v1562_v5  ;;  %1334 = vmatpush3.bf16.msra.mxu1 %v1604_v12 }
 0x43c   :  { %764 = vmatprep.subr.bf16.mxu0 %v1568_v6  ;;  %1335 = vmatprep.subr.bf16.mxu1 %v1514_v1 }
 0x43f   :  { %765 = vmatpush1.bf16.msra.mxu0 %v1574_v7  ;;  %1336 = vmatpush3.bf16.msra.mxu1 %v1616_v14 }
 0x440   :  { %766 = vmatprep.subr.bf16.mxu0 %v1580_v8  ;;  %1337 = vmatprep.subr.bf16.mxu1 %v1514_v1 }
 0x443   :  { %767 = vmatpush1.bf16.msra.mxu0 %v1591_v10  ;;  %1338 = vmatpush3.bf16.msra.mxu1 %v1635_v17 }
 0x444   :  { %768 = vmatprep.subr.bf16.mxu0 %v1598_v11  ;;  %1339 = vmatprep.subr.bf16.mxu1 %v1514_v1 }
 0x447   :  { %769 = vmatpush1.bf16.msra.mxu0 %v1609_v13  ;;  %1340 = vmatpush3.bf16.msra.mxu1 %v1654_v20 }
 0x448   :  { %770 = vmatprep.subr.bf16.mxu0 %v1622_v15  ;;  %1341 = vmatprep.subr.bf16.mxu1 %v1514_v1 }
 0x44b   :  { %771 = vmatpush1.bf16.msra.mxu0 %v1629_v16  ;;  %1342 = vmatpush3.bf16.msra.mxu1 %v1675_v24 }
 0x44c   :  { %772 = vmatprep.subr.bf16.mxu0 %v1641_v18  ;;  %1343 = vmatprep.subr.bf16.mxu1 %v1514_v1 }
 0x44f   :  { %773 = vmatpush1.bf16.msra.mxu0 %v1648_v19  ;;  %1344 = vmatpush3.bf16.msra.mxu1 %v1686_v26 }
 0x450   :  { %774 = vmatprep.subr.bf16.mxu0 %v1660_v21  ;;  %1345 = vmatprep.subr.bf16.mxu1 %v1514_v1 }
 0x453   :  { %775 = vmatpush1.bf16.msra.mxu0 %v1667_v22  ;;  %1346 = vmatpush3.bf16.msra.mxu1 %v1694_v27 }
 0x454   :  { %874 = vmatprep.subr.bf16.mxu0 %v1540_v0  ;;  %1351 = vmatprep.subr.bf16.mxu1 %v1514_v1 }
 0x509   :  { %v680_v43 = vpop.f32.mrb[16].mxu0  ;;  %v721_v44 = vpop.f32.mrb[16].mxu1 }
 0x50a   :  { %v727_v47 = vadd.f32 %v680_v43, %v645_v42  ;;  %v682_v48 = vpop.f32.mrb[17].mxu0  ;;  %v1329_v49 = vpop.f32.mrb[17].mxu1  ;;  %v744_v61 = vadd.f32 %v1740_v46, %v721_v44 }
 0x50b   :  { %v684_v50 = vpop.f32.mrb[18].mxu0  ;;  %v724_v51 = vpop.f32.mrb[18].mxu1  ;;  %v737_v55 = vadd.f32 %v735_v45, %v682_v48 }
 0x50c   :  { %v1144_v52 = vmul.f32 -1.442695, %v727_v47  ;;  %v685_v53 = vpop.f32.mrb[19].mxu0  ;;  %v1330_v54 = vpop.f32.mrb[19].mxu1 }
 0x50d   :  { %v1145_v56 = vmul.f32 -1.442695, %v737_v55 }
 0x50e   :  { %1466 = vpow2.f32 %v1144_v52 }
 0x50f   :  { %1468 = vpow2.f32 %v1145_v56 }
 0x518   :  { %v1467_v57 = vpop.eup %1466 }
 0x519   :  { %v731_v58 = vadd.f32 1.0, %v1467_v57  ;;  %v1469_v59 = vpop.eup %1468 }
 0x51a   :  { %v741_v60 = vadd.f32 1.0, %v1469_v59  ;;  %v1507_v59 = vld [vmem:[%s2050_s1 + $0x1c] ss:$12 sps:$4 sm:$0xff]  }
 0x51b   :  { %1470 = vrcp.f32 %v731_v58  ;;  %v1506_v58 = vld [vmem:[%s2050_s1] ss:$12 sps:$4 sm:$0xff]  }
 0x51c   :  { %1472 = vrcp.f32 %v741_v60  ;;  %v1508_v60 = vld [vmem:[%s2050_s1 + $0x18] ss:$12 sps:$4 sm:$0xff]  }
 0x525   :  { %v1471_v63 = vpop.eup %1470 }
 0x526   :  { %v745_v23 = vmul.f32 %v1471_v63, %v744_v61  ;;  %v1473_v28 = vpop.eup %1472  ;;  %v1511_v61 = vld [vmem:[%s2050_s1 + $0x4c] ss:$12 sps:$4 sm:$0xff]  }
 0x527   :  { %v750_v29 = vsub.f32 1.0, %v1473_v28  ;;  %v752_v32 = vmul.f32 %v1473_v28, %v1885_v39 }
 0x528   :  { %v748_v25 = vadd.f32 %v746_v62, %v745_v23  ;;  %v1513_v62 = vld [vmem:[%s2050_s1 + $0x64] ss:$12 sps:$4 sm:$0xff]  }
 0x52a   :  { %1474 = vtanh.f32 %v748_v25 }
 0x534   :  { %v1475_v30 = vpop.eup %1474 }
 0x535   :  { %v751_v31 = vmul.f32 %v1475_v30, %v750_v29 }
 0x537   :  { %v1932_v33 = vadd.f32 %v752_v32, %v751_v31 }
 0x539   :  { %v754_v34 = vpack.c.bf16 %v1932_v33, %v1932_v33 }
 0x53b   :  { %1146 = vst [vmem:[%s2053_s3 + $0x4] sm:$0x1] %v754_v34  ;;  %793 = vmatmul.mubr.bf16.vlgmr.msra.gmra.mrb[20].mxu0 %v754_v34  ;;  %1348 = vmatmul.mubr.bf16.vlgmr.msra.gmra.mrb[20].mxu1 %v754_v34 }
 0x53c   :  { %875 = vmatpush1.bf16.msra.mxu0 %v1548_v3  ;;  %1352 = vmatpush3.bf16.msra.mxu1 %v1585_v9  ;;  %v1147_v3 = vld [vmem:[%s2051_s0 + $0xf] sm:$0x7] }
 0x53d   :  { %876 = vmatprep.subr.bf16.mxu0 %v1556_v4  ;;  %1353 = vmatprep.subr.bf16.mxu1 %v1514_v1  ;;  %v759_v4 = vunpack.c.l.bf16 %v1147_v3 }
 0x53e   :  { %906 = vmatprep.mubr.bf16.mxu0 %v1515_v2  ;;  %1367 = vmatprep.mubr.msk.bf16.mxu1 %vm1516_vm0, %v1514_v1 }
 0x53f   :  { %v860_v47 = vrot.slane %v759_v4, 4 }
 0x540   :  { %877 = vmatpush1.bf16.msra.mxu0 %v1562_v5  ;;  %1354 = vmatpush3.bf16.msra.mxu1 %v1604_v12 }
 0x541   :  { %878 = vmatprep.subr.bf16.mxu0 %v1568_v6  ;;  %1355 = vmatprep.subr.bf16.mxu1 %v1514_v1 }
 0x544   :  { %879 = vmatpush1.bf16.msra.mxu0 %v1574_v7  ;;  %1356 = vmatpush3.bf16.msra.mxu1 %v1616_v14  ;;  %v849_v7 = vrot.slane %v759_v4, 2 }
 0x545   :  { %880 = vmatprep.subr.bf16.mxu0 %v1580_v8  ;;  %1357 = vmatprep.subr.bf16.mxu1 %v1514_v1 }
 0x548   :  { %881 = vmatpush1.bf16.msra.mxu0 %v1591_v10  ;;  %1358 = vmatpush3.bf16.msra.mxu1 %v1635_v17 }
 0x549   :  { %882 = vmatprep.subr.bf16.mxu0 %v1598_v11  ;;  %1359 = vmatprep.subr.bf16.mxu1 %v1514_v1 }
 0x54c   :  { %883 = vmatpush1.bf16.msra.mxu0 %v1609_v13  ;;  %1360 = vmatpush3.bf16.msra.mxu1 %v1654_v20 }
 0x54d   :  { %884 = vmatprep.subr.bf16.mxu0 %v1622_v15  ;;  %1361 = vmatprep.subr.bf16.mxu1 %v1514_v1 }
 0x550   :  { %885 = vmatpush1.bf16.msra.mxu0 %v1629_v16  ;;  %1362 = vmatpush3.bf16.msra.mxu1 %v1675_v24 }
 0x551   :  { %886 = vmatprep.subr.bf16.mxu0 %v1641_v18  ;;  %1363 = vmatprep.subr.bf16.mxu1 %v1514_v1 }
 0x554   :  { %887 = vmatpush1.bf16.msra.mxu0 %v1648_v19  ;;  %1364 = vmatpush3.bf16.msra.mxu1 %v1686_v26 }
 0x555   :  { %888 = vmatprep.subr.bf16.mxu0 %v1660_v21  ;;  %1365 = vmatprep.subr.bf16.mxu1 %v1514_v1 }
 0x558   :  { %889 = vmatpush1.bf16.msra.mxu0 %v1667_v22  ;;  %1366 = vmatpush3.bf16.msra.mxu1 %v1694_v27 }
 0x559   :  { %988 = vmatprep.subr.bf16.mxu0 %v1540_v0  ;;  %1371 = vmatprep.subr.bf16.mxu1 %v1514_v1 }
 0x60e   :  { %v794_v5 = vpop.f32.mrb[20].mxu0  ;;  %v835_v6 = vpop.f32.mrb[20].mxu1 }
 0x60f   :  { %v841_v8 = vadd.f32 %v794_v5, %v759_v4  ;;  %v796_v10 = vpop.f32.mrb[21].mxu0  ;;  %v1349_v11 = vpop.f32.mrb[21].mxu1  ;;  %v858_v45 = vadd.f32 %v1740_v46, %v835_v6 }
 0x610   :  { %v798_v35 = vpop.f32.mrb[22].mxu0  ;;  %v838_v36 = vpop.f32.mrb[22].mxu1  ;;  %v851_v40 = vadd.f32 %v849_v7, %v796_v10  ;;  %v1155_v11 = vld [vmem:[%s2051_s0 + $0x15] sm:$0x7] }
 0x611   :  { %v1148_v37 = vmul.f32 -1.442695, %v841_v8  ;;  %v799_v38 = vpop.f32.mrb[23].mxu0  ;;  %v1350_v39 = vpop.f32.mrb[23].mxu1  ;;  %v987_v35 = vunpack.c.l.bf16 %v1155_v11 }
 0x612   :  { %v1149_v0 = vmul.f32 -1.442695, %v851_v40 }
 0x613   :  { %1476 = vpow2.f32 %v1148_v37  ;;  %v1077_v38 = vrot.slane %v987_v35, 2 }
 0x614   :  { %1478 = vpow2.f32 %v1149_v0 }
 0x61d   :  { %v1477_v41 = vpop.eup %1476 }
 0x61e   :  { %v845_v42 = vadd.f32 1.0, %v1477_v41  ;;  %v1479_v43 = vpop.eup %1478 }
 0x61f   :  { %v855_v44 = vadd.f32 1.0, %v1479_v43 }
 0x620   :  { %1480 = vrcp.f32 %v845_v42 }
 0x621   :  { %1482 = vrcp.f32 %v855_v44 }
 0x62a   :  { %v1481_v48 = vpop.eup %1480 }
 0x62b   :  { %v859_v49 = vmul.f32 %v1481_v48, %v858_v45  ;;  %v1483_v51 = vpop.eup %1482 }
 0x62c   :  { %v864_v52 = vsub.f32 1.0, %v1483_v51  ;;  %v866_v55 = vmul.f32 %v1483_v51, %v1932_v33 }
 0x62d   :  { %v862_v50 = vadd.f32 %v860_v47, %v859_v49 }
 0x62f   :  { %1484 = vtanh.f32 %v862_v50 }
 0x639   :  { %v1485_v53 = vpop.eup %1484 }
 0x63a   :  { %v865_v54 = vmul.f32 %v1485_v53, %v864_v52 }
 0x63c   :  { %v1979_v56 = vadd.f32 %v866_v55, %v865_v54  ;;  %v1088_v54 = vrot.slane %v987_v35, 4 }
 0x63e   :  { %v868_v57 = vpack.c.bf16 %v1979_v56, %v1979_v56 }
 0x640   :  { %1150 = vst [vmem:[%s2053_s3 + $0x5] sm:$0x1] %v868_v57  ;;  %907 = vmatmul.mubr.bf16.vlgmr.msra.gmra.mrb[24].mxu0 %v868_v57  ;;  %1368 = vmatmul.mubr.bf16.vlgmr.msra.gmra.mrb[24].mxu1 %v868_v57 }
 0x641   :  { %989 = vmatpush1.bf16.msra.mxu0 %v1506_v58  ;;  %1372 = vmatpush3.bf16.msra.mxu1 %v1585_v9  ;;  %v1509_v9 = vld [vmem:[%s2050_s1 + $0x34] ss:$12 sps:$4 sm:$0xff]  }
 0x642   :  { %990 = vmatprep.subr.bf16.mxu0 %v1507_v59  ;;  %1373 = vmatprep.subr.bf16.mxu1 %v1514_v1 }
 0x643   :  { %1020 = vmatprep.mubr.bf16.mxu0 %v1515_v2  ;;  %1387 = vmatprep.mubr.msk.bf16.mxu1 %vm1516_vm0, %v1514_v1  ;;  %v1510_v2 = vld [vmem:[%s2050_s1 + $0x30] ss:$12 sps:$4 sm:$0xff]  }
 0x645   :  { %991 = vmatpush1.bf16.msra.mxu0 %v1508_v60  ;;  %1374 = vmatpush3.bf16.msra.mxu1 %v1604_v12  ;;  %v1512_v12 = vld [vmem:[%s2050_s1 + $0x48] ss:$12 sps:$4 sm:$0xff]  }
 0x646   :  { %992 = vmatprep.subr.bf16.mxu0 %v1509_v9  ;;  %1375 = vmatprep.subr.bf16.mxu1 %v1514_v1 }
 0x649   :  { %993 = vmatpush1.bf16.msra.mxu0 %v1510_v2  ;;  %1376 = vmatpush3.bf16.msra.mxu1 %v1616_v14 }
 0x64a   :  { %994 = vmatprep.subr.bf16.mxu0 %v1511_v61  ;;  %1377 = vmatprep.subr.bf16.mxu1 %v1514_v1 }
 0x64d   :  { %995 = vmatpush1.bf16.msra.mxu0 %v1512_v12  ;;  %1378 = vmatpush3.bf16.msra.mxu1 %v1635_v17 }
 0x64e   :  { %996 = vmatprep.subr.bf16.mxu0 %v1513_v62  ;;  %1379 = vmatprep.subr.bf16.mxu1 %v1514_v1 }
 0x651   :  { %997 = vmatpush1.bf16.msra.mxu0 %v1609_v13  ;;  %1380 = vmatpush3.bf16.msra.mxu1 %v1654_v20  ;;  %v1151_v13 = vld [vmem:[%s2051_s0 + $0x12] sm:$0x7] }
 0x652   :  { %998 = vmatprep.subr.bf16.mxu0 %v1622_v15  ;;  %1381 = vmatprep.subr.bf16.mxu1 %v1514_v1  ;;  %v873_v14 = vunpack.c.l.bf16 %v1151_v13 }
 0x654   :  { %v963_v17 = vrot.slane %v873_v14, 2  ;;  %v974_v31 = vrot.slane %v873_v14, 4 }
 0x655   :  { %999 = vmatpush1.bf16.msra.mxu0 %v1629_v16  ;;  %1382 = vmatpush3.bf16.msra.mxu1 %v1675_v24 }
 0x656   :  { %1000 = vmatprep.subr.bf16.mxu0 %v1641_v18  ;;  %1383 = vmatprep.subr.bf16.mxu1 %v1514_v1 }
 0x659   :  { %1001 = vmatpush1.bf16.msra.mxu0 %v1648_v19  ;;  %1384 = vmatpush3.bf16.msra.mxu1 %v1686_v26 }
 0x65a   :  { %1002 = vmatprep.subr.bf16.mxu0 %v1660_v21  ;;  %1385 = vmatprep.subr.bf16.mxu1 %v1514_v1 }
 0x65d   :  { %1003 = vmatpush1.bf16.msra.mxu0 %v1667_v22  ;;  %1386 = vmatpush3.bf16.msra.mxu1 %v1694_v27 }
 0x713   :  { %v908_v15 = vpop.f32.mrb[24].mxu0  ;;  %v949_v16 = vpop.f32.mrb[24].mxu1 }
 0x714   :  { %v955_v18 = vadd.f32 %v908_v15, %v873_v14  ;;  %v910_v19 = vpop.f32.mrb[25].mxu0  ;;  %v1369_v20 = vpop.f32.mrb[25].mxu1  ;;  %v972_v30 = vadd.f32 %v1740_v46, %v949_v16 }
 0x715   :  { %v912_v24 = vpop.f32.mrb[26].mxu0  ;;  %v952_v26 = vpop.f32.mrb[26].mxu1  ;;  %v965_v23 = vadd.f32 %v963_v17, %v910_v19 }
 0x716   :  { %v1152_v21 = vmul.f32 -1.442695, %v955_v18  ;;  %v913_v63 = vpop.f32.mrb[27].mxu0  ;;  %v1370_v1 = vpop.f32.mrb[27].mxu1 }
 0x717   :  { %v1153_v22 = vmul.f32 -1.442695, %v965_v23 }
 0x718   :  { %1486 = vpow2.f32 %v1152_v21 }
 0x719   :  { %1488 = vpow2.f32 %v1153_v22 }
 0x722   :  { %v1487_v27 = vpop.eup %1486 }
 0x723   :  { %v959_v25 = vadd.f32 1.0, %v1487_v27  ;;  %v1489_v28 = vpop.eup %1488 }
 0x724   :  { %v969_v29 = vadd.f32 1.0, %v1489_v28 }
 0x725   :  { %1490 = vrcp.f32 %v959_v25 }
 0x726   :  { %1492 = vrcp.f32 %v969_v29 }
 0x72f   :  { %v1491_v32 = vpop.eup %1490 }
 0x730   :  { %v973_v33 = vmul.f32 %v1491_v32, %v972_v30  ;;  %v1493_v3 = vpop.eup %1492 }
 0x731   :  { %v978_v4 = vsub.f32 1.0, %v1493_v3  ;;  %v980_v7 = vmul.f32 %v1493_v3, %v1979_v56 }
 0x732   :  { %v976_v34 = vadd.f32 %v974_v31, %v973_v33 }
 0x734   :  { %1494 = vtanh.f32 %v976_v34 }
 0x73e   :  { %v1495_v5 = vpop.eup %1494 }
 0x73f   :  { %v979_v6 = vmul.f32 %v1495_v5, %v978_v4 }
 0x741   :  { %v981_v8 = vadd.f32 %v980_v7, %v979_v6 }
 0x743   :  { %v982_v10 = vpack.c.bf16 %v981_v8, %v981_v8 }
 0x745   :  { %1154 = vst [vmem:[%s2053_s3 + $0x6] sm:$0x1] %v982_v10  ;;  %1021 = vmatmul.mubr.bf16.vlgmr.msra.gmra.mrb[28].mxu0 %v982_v10  ;;  %1388 = vmatmul.mubr.bf16.vlgmr.msra.gmra.mrb[28].mxu1 %v982_v10 }
 0x818   :  { %v1022_v36 = vpop.f32.mrb[28].mxu0  ;;  %v1063_v37 = vpop.f32.mrb[28].mxu1 }
 0x819   :  { %v1069_v39 = vadd.f32 %v1022_v36, %v987_v35  ;;  %v1024_v40 = vpop.f32.mrb[29].mxu0  ;;  %v1389_v0 = vpop.f32.mrb[29].mxu1  ;;  %v1086_v53 = vadd.f32 %v1740_v46, %v1063_v37 }
 0x81a   :  { %v1026_v41 = vpop.f32.mrb[30].mxu0  ;;  %v1066_v42 = vpop.f32.mrb[30].mxu1  ;;  %v1079_v47 = vadd.f32 %v1077_v38, %v1024_v40 }
 0x81b   :  { %v1156_v43 = vmul.f32 -1.442695, %v1069_v39  ;;  %v1027_v44 = vpop.f32.mrb[31].mxu0  ;;  %v1390_v45 = vpop.f32.mrb[31].mxu1 }
 0x81c   :  { %v1157_v48 = vmul.f32 -1.442695, %v1079_v47 }
 0x81d   :  { %1496 = vpow2.f32 %v1156_v43 }
 0x81e   :  { %1498 = vpow2.f32 %v1157_v48 }
 0x827   :  { %v1497_v49 = vpop.eup %1496 }
 0x828   :  { %v1073_v50 = vadd.f32 1.0, %v1497_v49  ;;  %v1499_v51 = vpop.eup %1498 }
 0x829   :  { %v1083_v52 = vadd.f32 1.0, %v1499_v51 }
 0x82a   :  { %1500 = vrcp.f32 %v1073_v50 }
 0x82b   :  { %1502 = vrcp.f32 %v1083_v52 }
 0x834   :  { %v1501_v55 = vpop.eup %1500 }
 0x835   :  { %v1087_v56 = vmul.f32 %v1501_v55, %v1086_v53  ;;  %v1503_v58 = vpop.eup %1502 }
 0x836   :  { %v1092_v59 = vsub.f32 1.0, %v1503_v58  ;;  %v1094_v2 = vmul.f32 %v1503_v58, %v981_v8 }
 0x837   :  { %v1090_v57 = vadd.f32 %v1088_v54, %v1087_v56 }
 0x839   :  { %1504 = vtanh.f32 %v1090_v57 }
 0x843   :  { %v1505_v60 = vpop.eup %1504 }
 0x844   :  { %v1093_v9 = vmul.f32 %v1505_v60, %v1092_v59 }
 0x846   :  { %v1095_v61 = vadd.f32 %v1094_v2, %v1093_v9 }
 0x848   :  { %v1096_v12 = vpack.c.bf16 %v1095_v61, %v1095_v61  ;;  %1099 = vst [vmem:[#allocation2] sm:$0x3] %v1095_v61 }
 0x84a   :  { %1158 = vst [vmem:[%s2053_s3 + $0x7] sm:$0x1] %v1096_v12 }

// kernel: gru_forward.5
= control target key start
LH: loop header
LB: loop body
LE: loop exit
PB: predicated region body
PF: predicated region fallthrough
CT: control target
= control target key end

     0   :  { %v1513_v1 = vmov 0.0   ;;  %v1514_v2 = vmov 0   ;;  %vm1515_vm0 = vmmov 0   ;;  %s2055_s1 = inlined_call_operand.vmem [shape: bf16[128,384], index: 1, kind: input, shape index: {}]   ;;  %s2056_s0 = inlined_call_operand.vmem [shape: bf16[8,2,384], index: 0, kind: input, shape index: {}]   ;;  %s2057_s2 = inlined_call_operand.vmem [shape: f32[1,128], index: 2, kind: input, shape index: {}]   ;;  %s2058_s3 = inlined_call_operand.vmem [shape: f32[8,2,128], index: 3, kind: output, shape index: {}]  }
   0x1   :  { %v1539_v0 = vld [vmem:[%s2055_s1 + $0x4] ss:$12 sps:$4 sm:$0xff]   ;;  %1230 = vmatprep.subr.bf16.mxu1 %v1513_v1  ;;  %19 = vst [vmem:[#allocation2] sm:$0x3] %v1513_v1  ;;  %217 = vmatprep.mubr.bf16.mxu0 %v1514_v2  ;;  %v1547_v3 = vld [vmem:[%s2055_s1] ss:$12 sps:$4 sm:$0xff]  }
   0x2   :  { %1246 = vmatprep.mubr.msk.bf16.mxu1 %vm1515_vm0, %v1513_v1  ;;  %185 = vmatprep.subr.bf16.mxu0 %v1539_v0  ;;  %v1555_v4 = vld [vmem:[%s2055_s1 + $0x1c] ss:$12 sps:$4 sm:$0xff]   ;;  %v1561_v5 = vld [vmem:[%s2055_s1 + $0x18] ss:$12 sps:$4 sm:$0xff]   ;;  %v1567_v6 = vld [vmem:[%s2055_s1 + $0x34] ss:$12 sps:$4 sm:$0xff]  }
   0x3   :  { %186 = vmatpush1.bf16.msra.mxu0 %v1547_v3  ;;  %v1573_v7 = vld [vmem:[%s2055_s1 + $0x30] ss:$12 sps:$4 sm:$0xff]   ;;  %v1579_v8 = vld [vmem:[%s2055_s1 + $0x4c] ss:$12 sps:$4 sm:$0xff]   ;;  %v1584_v9 = vld [vmem:[%s2055_s1 + $0x8] ss:$12 sps:$4 sm:$0xff]  }
   0x4   :  { %187 = vmatprep.subr.bf16.mxu0 %v1555_v4  ;;  %v1590_v10 = vld [vmem:[%s2055_s1 + $0x48] ss:$12 sps:$4 sm:$0xff]   ;;  %1231 = vmatpush3.bf16.msra.mxu1 %v1584_v9  ;;  %v1597_v11 = vld [vmem:[%s2055_s1 + $0x64] ss:$12 sps:$4 sm:$0xff]   ;;  %v1603_v12 = vld [vmem:[%s2055_s1 + $0x20] ss:$12 sps:$4 sm:$0xff]  }
   0x5   :  { %1232 = vmatprep.subr.bf16.mxu1 %v1513_v1  ;;  %v1608_v13 = vld [vmem:[%s2055_s1 + $0x60] ss:$12 sps:$4 sm:$0xff]   ;;  %v1615_v14 = vld [vmem:[%s2055_s1 + $0x38] ss:$12 sps:$4 sm:$0xff]   ;;  %v1621_v15 = vld [vmem:[%s2055_s1 + $0x7c] ss:$12 sps:$4 sm:$0xff]  }
   0x6   :  { %v1628_v16 = vld [vmem:[%s2055_s1 + $0x78] ss:$12 sps:$4 sm:$0xff]   ;;  %v1634_v17 = vld [vmem:[%s2055_s1 + $0x50] ss:$12 sps:$4 sm:$0xff]   ;;  %v1640_v18 = vld [vmem:[%s2055_s1 + $0x94] ss:$12 sps:$4 sm:$0xff]  }
   0x7   :  { %188 = vmatpush1.bf16.msra.mxu0 %v1561_v5  ;;  %v1647_v19 = vld [vmem:[%s2055_s1 + $0x90] ss:$12 sps:$4 sm:$0xff]   ;;  %v1653_v20 = vld [vmem:[%s2055_s1 + $0x68] ss:$12 sps:$4 sm:$0xff]   ;;  %v1659_v21 = vld [vmem:[%s2055_s1 + $0xac] ss:$12 sps:$4 sm:$0xff]  }
   0x8   :  { %189 = vmatprep.subr.bf16.mxu0 %v1567_v6  ;;  %1233 = vmatpush3.bf16.msra.mxu1 %v1603_v12  ;;  %v1666_v22 = vld [vmem:[%s2055_s1 + $0xa8] ss:$12 sps:$4 sm:$0xff]   ;;  %v1668_v23 = vld [vmem:[#allocation2] sm:$0x3]  ;;  %v1685_v26 = vld [vmem:[%s2055_s1 + $0x98] ss:$12 sps:$4 sm:$0xff]  }
   0x9   :  { %1234 = vmatprep.subr.bf16.mxu1 %v1513_v1  ;;  %v1674_v24 = vld [vmem:[%s2055_s1 + $0x80] ss:$12 sps:$4 sm:$0xff]   ;;  %v56_v25 = vpack.c.bf16 %v1668_v23, %v1668_v23  ;;  %v1693_v27 = vld [vmem:[%s2055_s1 + $0xb0] ss:$12 sps:$4 sm:$0xff]  }
   0xa   :  { %v54_v28 = vld [vmem:[%s2056_s0] sm:$0x7]  ;;  %v1130_v60 = vld [vmem:[%s2056_s0 + $0x3] sm:$0x7] }
   0xb   :  { %190 = vmatpush1.bf16.msra.mxu0 %v1573_v7  ;;  %v55_v29 = vunpack.c.l.bf16 %v54_v28  ;;  %v1739_v46 = vld [vmem:[%s2057_s2] ss:$0 sm:$0xff]  ;;  %v302_v61 = vunpack.c.l.bf16 %v1130_v60 }
   0xc   :  { %191 = vmatprep.subr.bf16.mxu0 %v1579_v8  ;;  %1235 = vmatpush3.bf16.msra.mxu1 %v1615_v14 }
   0xd   :  { %1236 = vmatprep.subr.bf16.mxu1 %v1513_v1  ;;  %v274_v31 = vrot.slane %v55_v29, 2  ;;  %v291_v49 = vrot.slane %v55_v29, 4 }
   0xf   :  { %192 = vmatpush1.bf16.msra.mxu0 %v1590_v10 }
  0x10   :  { %193 = vmatprep.subr.bf16.mxu0 %v1597_v11  ;;  %1237 = vmatpush3.bf16.msra.mxu1 %v1634_v17 }
  0x11   :  { %1238 = vmatprep.subr.bf16.mxu1 %v1513_v1 }
  0x13   :  { %194 = vmatpush1.bf16.msra.mxu0 %v1608_v13 }
  0x14   :  { %195 = vmatprep.subr.bf16.mxu0 %v1621_v15  ;;  %1239 = vmatpush3.bf16.msra.mxu1 %v1653_v20 }
  0x15   :  { %1240 = vmatprep.subr.bf16.mxu1 %v1513_v1 }
  0x17   :  { %196 = vmatpush1.bf16.msra.mxu0 %v1628_v16 }
  0x18   :  { %197 = vmatprep.subr.bf16.mxu0 %v1640_v18  ;;  %1241 = vmatpush3.bf16.msra.mxu1 %v1674_v24 }
  0x19   :  { %1242 = vmatprep.subr.bf16.mxu1 %v1513_v1 }
  0x1b   :  { %198 = vmatpush1.bf16.msra.mxu0 %v1647_v19 }
  0x1c   :  { %199 = vmatprep.subr.bf16.mxu0 %v1659_v21  ;;  %1243 = vmatpush3.bf16.msra.mxu1 %v1685_v26 }
  0x1d   :  { %1244 = vmatprep.subr.bf16.mxu1 %v1513_v1 }
  0x1f   :  { %200 = vmatpush1.bf16.msra.mxu0 %v1666_v22 }
  0x20   :  { %304 = vmatprep.subr.bf16.mxu0 %v1539_v0  ;;  %1245 = vmatpush3.bf16.msra.mxu1 %v1693_v27 }
  0x21   :  { %1250 = vmatprep.subr.bf16.mxu1 %v1513_v1 }
  0x22   :  { %218 = vmatmul.mubr.bf16.vlgmr.msra.gmra.mrb[0].mxu0 %v56_v25 }
  0x23   :  { %305 = vmatpush1.bf16.msra.mxu0 %v1547_v3  ;;  %336 = vmatprep.mubr.bf16.mxu0 %v1514_v2 }
  0x24   :  { %306 = vmatprep.subr.bf16.mxu0 %v1555_v4  ;;  %1247 = vmatmul.mubr.bf16.vlgmr.msra.gmra.mrb[0].mxu1 %v56_v25 }
  0x25   :  { %1251 = vmatpush3.bf16.msra.mxu1 %v1584_v9  ;;  %1266 = vmatprep.mubr.msk.bf16.mxu1 %vm1515_vm0, %v1513_v1 }
  0x26   :  { %1252 = vmatprep.subr.bf16.mxu1 %v1513_v1 }
  0x27   :  { %307 = vmatpush1.bf16.msra.mxu0 %v1561_v5 }
  0x28   :  { %308 = vmatprep.subr.bf16.mxu0 %v1567_v6 }
  0x29   :  { %1253 = vmatpush3.bf16.msra.mxu1 %v1603_v12 }
  0x2a   :  { %1254 = vmatprep.subr.bf16.mxu1 %v1513_v1 }
  0x2b   :  { %309 = vmatpush1.bf16.msra.mxu0 %v1573_v7 }
  0x2c   :  { %310 = vmatprep.subr.bf16.mxu0 %v1579_v8 }
  0x2d   :  { %1255 = vmatpush3.bf16.msra.mxu1 %v1615_v14 }
  0x2e   :  { %1256 = vmatprep.subr.bf16.mxu1 %v1513_v1 }
  0x2f   :  { %311 = vmatpush1.bf16.msra.mxu0 %v1590_v10 }
  0x30   :  { %312 = vmatprep.subr.bf16.mxu0 %v1597_v11 }
  0x31   :  { %1257 = vmatpush3.bf16.msra.mxu1 %v1634_v17 }
  0x32   :  { %1258 = vmatprep.subr.bf16.mxu1 %v1513_v1 }
  0x33   :  { %313 = vmatpush1.bf16.msra.mxu0 %v1608_v13 }
  0x34   :  { %314 = vmatprep.subr.bf16.mxu0 %v1621_v15 }
  0x35   :  { %1259 = vmatpush3.bf16.msra.mxu1 %v1653_v20 }
  0x36   :  { %1260 = vmatprep.subr.bf16.mxu1 %v1513_v1 }
  0x37   :  { %315 = vmatpush1.bf16.msra.mxu0 %v1628_v16 }
  0x38   :  { %316 = vmatprep.subr.bf16.mxu0 %v1640_v18 }
  0x39   :  { %1261 = vmatpush3.bf16.msra.mxu1 %v1674_v24 }
  0x3a   :  { %1262 = vmatprep.subr.bf16.mxu1 %v1513_v1 }
  0x3b   :  { %317 = vmatpush1.bf16.msra.mxu0 %v1647_v19 }
  0x3c   :  { %318 = vmatprep.subr.bf16.mxu0 %v1659_v21 }
  0x3d   :  { %1263 = vmatpush3.bf16.msra.mxu1 %v1685_v26 }
  0x3e   :  { %1264 = vmatprep.subr.bf16.mxu1 %v1513_v1 }
  0x3f   :  { %319 = vmatpush1.bf16.msra.mxu0 %v1666_v22 }
  0x40   :  { %418 = vmatprep.subr.bf16.mxu0 %v1539_v0 }
  0x41   :  { %1265 = vmatpush3.bf16.msra.mxu1 %v1693_v27 }
  0x42   :  { %1270 = vmatprep.subr.bf16.mxu1 %v1513_v1 }
  0xf5   :  { %v219_v30 = vpop.f32.mrb[0].mxu0 }
  0xf6   :  { %v266_v32 = vadd.f32 %v219_v30, %v55_v29  ;;  %v221_v33 = vpop.f32.mrb[1].mxu0 }
  0xf7   :  { %v223_v34 = vpop.f32.mrb[2].mxu0  ;;  %v276_v37 = vadd.f32 %v274_v31, %v221_v33  ;;  %v260_v39 = vpop.f32.mrb[0].mxu1 }
  0xf8   :  { %v1127_v35 = vmul.f32 -1.442695, %v266_v32  ;;  %v224_v36 = vpop.f32.mrb[3].mxu0  ;;  %v1248_v40 = vpop.f32.mrb[1].mxu1  ;;  %v289_v48 = vadd.f32 %v1739_v46, %v260_v39 }
  0xf9   :  { %v1128_v38 = vmul.f32 -1.442695, %v276_v37  ;;  %v263_v41 = vpop.f32.mrb[2].mxu1 }
  0xfa   :  { %1425 = vpow2.f32 %v1127_v35  ;;  %v1249_v42 = vpop.f32.mrb[3].mxu1 }
  0xfb   :  { %1427 = vpow2.f32 %v1128_v38  ;;  %v404_v42 = vrot.slane %v302_v61, 4 }
 0x104   :  { %v1426_v43 = vpop.eup %1425 }
 0x105   :  { %v270_v44 = vadd.f32 1.0, %v1426_v43  ;;  %v1428_v45 = vpop.eup %1427 }
 0x106   :  { %v280_v47 = vadd.f32 1.0, %v1428_v45 }
 0x107   :  { %1429 = vrcp.f32 %v270_v44 }
 0x108   :  { %1431 = vrcp.f32 %v280_v47 }
 0x111   :  { %v1430_v50 = vpop.eup %1429 }
 0x112   :  { %v290_v51 = vmul.f32 %v1430_v50, %v289_v48  ;;  %v1432_v53 = vpop.eup %1431 }
 0x113   :  { %v295_v54 = vsub.f32 1.0, %v1432_v53  ;;  %v297_v57 = vmul.f32 %v1432_v53, %v1668_v23  ;;  %v393_v23 = vrot.slane %v302_v61, 2 }
 0x114   :  { %v293_v52 = vadd.f32 %v291_v49, %v290_v51 }
 0x116   :  { %1433 = vtanh.f32 %v293_v52 }
 0x120   :  { %v1434_v55 = vpop.eup %1433 }
 0x121   :  { %v296_v56 = vmul.f32 %v1434_v55, %v295_v54  ;;  %v1134_v54 = vld [vmem:[%s2056_s0 + $0x6] sm:$0x7] }
 0x122   :  { %v416_v55 = vunpack.c.l.bf16 %v1134_v54 }
 0x123   :  { %v1743_v58 = vadd.f32 %v297_v57, %v296_v56 }
 0x125   :  { %299 = vst [vmem:[%s2058_s3] sm:$0x3] %v1743_v58  ;;  %v303_v59 = vpack.c.bf16 %v1743_v58, %v1743_v58 }
 0x127   :  { %337 = vmatmul.mubr.bf16.vlgmr.msra.gmra.mrb[4].mxu0 %v303_v59  ;;  %1267 = vmatmul.mubr.bf16.vlgmr.msra.gmra.mrb[4].mxu1 %v303_v59 }
 0x128   :  { %419 = vmatpush1.bf16.msra.mxu0 %v1547_v3  ;;  %1271 = vmatpush3.bf16.msra.mxu1 %v1584_v9 }
 0x129   :  { %420 = vmatprep.subr.bf16.mxu0 %v1555_v4  ;;  %1272 = vmatprep.subr.bf16.mxu1 %v1513_v1 }
 0x12a   :  { %450 = vmatprep.mubr.bf16.mxu0 %v1514_v2  ;;  %1286 = vmatprep.mubr.msk.bf16.mxu1 %vm1515_vm0, %v1513_v1 }
 0x12c   :  { %421 = vmatpush1.bf16.msra.mxu0 %v1561_v5  ;;  %1273 = vmatpush3.bf16.msra.mxu1 %v1603_v12 }
 0x12d   :  { %422 = vmatprep.subr.bf16.mxu0 %v1567_v6  ;;  %1274 = vmatprep.subr.bf16.mxu1 %v1513_v1 }
 0x130   :  { %423 = vmatpush1.bf16.msra.mxu0 %v1573_v7  ;;  %1275 = vmatpush3.bf16.msra.mxu1 %v1615_v14 }
 0x131   :  { %424 = vmatprep.subr.bf16.mxu0 %v1579_v8  ;;  %1276 = vmatprep.subr.bf16.mxu1 %v1513_v1 }
 0x134   :  { %425 = vmatpush1.bf16.msra.mxu0 %v1590_v10  ;;  %1277 = vmatpush3.bf16.msra.mxu1 %v1634_v17 }
 0x135   :  { %426 = vmatprep.subr.bf16.mxu0 %v1597_v11  ;;  %1278 = vmatprep.subr.bf16.mxu1 %v1513_v1 }
 0x138   :  { %427 = vmatpush1.bf16.msra.mxu0 %v1608_v13  ;;  %1279 = vmatpush3.bf16.msra.mxu1 %v1653_v20 }
 0x139   :  { %428 = vmatprep.subr.bf16.mxu0 %v1621_v15  ;;  %1280 = vmatprep.subr.bf16.mxu1 %v1513_v1 }
 0x13c   :  { %429 = vmatpush1.bf16.msra.mxu0 %v1628_v16  ;;  %1281 = vmatpush3.bf16.msra.mxu1 %v1674_v24 }
 0x13d   :  { %430 = vmatprep.subr.bf16.mxu0 %v1640_v18  ;;  %1282 = vmatprep.subr.bf16.mxu1 %v1513_v1 }
 0x140   :  { %431 = vmatpush1.bf16.msra.mxu0 %v1647_v19  ;;  %1283 = vmatpush3.bf16.msra.mxu1 %v1685_v26 }
 0x141   :  { %432 = vmatprep.subr.bf16.mxu0 %v1659_v21  ;;  %1284 = vmatprep.subr.bf16.mxu1 %v1513_v1 }
 0x144   :  { %433 = vmatpush1.bf16.msra.mxu0 %v1666_v22  ;;  %1285 = vmatpush3.bf16.msra.mxu1 %v1693_v27 }
 0x145   :  { %532 = vmatprep.subr.bf16.mxu0 %v1539_v0  ;;  %1290 = vmatprep.subr.bf16.mxu1 %v1513_v1 }
 0x1fa   :  { %v338_v62 = vpop.f32.mrb[4].mxu0  ;;  %v379_v63 = vpop.f32.mrb[4].mxu1 }
 0x1fb   :  { %v385_v25 = vadd.f32 %v338_v62, %v302_v61  ;;  %v340_v28 = vpop.f32.mrb[5].mxu0  ;;  %v1268_v29 = vpop.f32.mrb[5].mxu1  ;;  %v402_v41 = vadd.f32 %v1739_v46, %v379_v63 }
 0x1fc   :  { %v342_v30 = vpop.f32.mrb[6].mxu0  ;;  %v382_v31 = vpop.f32.mrb[6].mxu1  ;;  %v395_v35 = vadd.f32 %v393_v23, %v340_v28 }
 0x1fd   :  { %v1131_v32 = vmul.f32 -1.442695, %v385_v25  ;;  %v343_v33 = vpop.f32.mrb[7].mxu0  ;;  %v1269_v34 = vpop.f32.mrb[7].mxu1 }
 0x1fe   :  { %v1132_v36 = vmul.f32 -1.442695, %v395_v35 }
 0x1ff   :  { %1435 = vpow2.f32 %v1131_v32 }
 0x200   :  { %1437 = vpow2.f32 %v1132_v36  ;;  %v518_v36 = vrot.slane %v416_v55, 4 }
 0x209   :  { %v1436_v37 = vpop.eup %1435 }
 0x20a   :  { %v389_v38 = vadd.f32 1.0, %v1436_v37  ;;  %v1438_v39 = vpop.eup %1437 }
 0x20b   :  { %v399_v40 = vadd.f32 1.0, %v1438_v39 }
 0x20c   :  { %1439 = vrcp.f32 %v389_v38 }
 0x20d   :  { %1441 = vrcp.f32 %v399_v40 }
 0x216   :  { %v1440_v43 = vpop.eup %1439 }
 0x217   :  { %v403_v44 = vmul.f32 %v1440_v43, %v402_v41  ;;  %v1442_v47 = vpop.eup %1441 }
 0x218   :  { %v408_v48 = vsub.f32 1.0, %v1442_v47  ;;  %v410_v51 = vmul.f32 %v1442_v47, %v1743_v58  ;;  %v507_v58 = vrot.slane %v416_v55, 2 }
 0x219   :  { %v406_v45 = vadd.f32 %v404_v42, %v403_v44 }
 0x21b   :  { %1443 = vtanh.f32 %v406_v45 }
 0x225   :  { %v1444_v49 = vpop.eup %1443 }
 0x226   :  { %v409_v50 = vmul.f32 %v1444_v49, %v408_v48  ;;  %v1138_v48 = vld [vmem:[%s2056_s0 + $0x9] sm:$0x7] }
 0x227   :  { %v530_v49 = vunpack.c.l.bf16 %v1138_v48 }
 0x228   :  { %v1791_v52 = vadd.f32 %v410_v51, %v409_v50 }
 0x22a   :  { %1133 = vst [vmem:[%s2058_s3 + $0x2] sm:$0x3] %v1791_v52  ;;  %v417_v53 = vpack.c.bf16 %v1791_v52, %v1791_v52 }
 0x22c   :  { %451 = vmatmul.mubr.bf16.vlgmr.msra.gmra.mrb[8].mxu0 %v417_v53  ;;  %1287 = vmatmul.mubr.bf16.vlgmr.msra.gmra.mrb[8].mxu1 %v417_v53 }
 0x22d   :  { %533 = vmatpush1.bf16.msra.mxu0 %v1547_v3  ;;  %1291 = vmatpush3.bf16.msra.mxu1 %v1584_v9 }
 0x22e   :  { %534 = vmatprep.subr.bf16.mxu0 %v1555_v4  ;;  %1292 = vmatprep.subr.bf16.mxu1 %v1513_v1 }
 0x22f   :  { %564 = vmatprep.mubr.bf16.mxu0 %v1514_v2  ;;  %1306 = vmatprep.mubr.msk.bf16.mxu1 %vm1515_vm0, %v1513_v1 }
 0x231   :  { %535 = vmatpush1.bf16.msra.mxu0 %v1561_v5  ;;  %1293 = vmatpush3.bf16.msra.mxu1 %v1603_v12 }
 0x232   :  { %536 = vmatprep.subr.bf16.mxu0 %v1567_v6  ;;  %1294 = vmatprep.subr.bf16.mxu1 %v1513_v1 }
 0x235   :  { %537 = vmatpush1.bf16.msra.mxu0 %v1573_v7  ;;  %1295 = vmatpush3.bf16.msra.mxu1 %v1615_v14 }
 0x236   :  { %538 = vmatprep.subr.bf16.mxu0 %v1579_v8  ;;  %1296 = vmatprep.subr.bf16.mxu1 %v1513_v1 }
 0x239   :  { %539 = vmatpush1.bf16.msra.mxu0 %v1590_v10  ;;  %1297 = vmatpush3.bf16.msra.mxu1 %v1634_v17 }
 0x23a   :  { %540 = vmatprep.subr.bf16.mxu0 %v1597_v11  ;;  %1298 = vmatprep.subr.bf16.mxu1 %v1513_v1 }
 0x23d   :  { %541 = vmatpush1.bf16.msra.mxu0 %v1608_v13  ;;  %1299 = vmatpush3.bf16.msra.mxu1 %v1653_v20 }
 0x23e   :  { %542 = vmatprep.subr.bf16.mxu0 %v1621_v15  ;;  %1300 = vmatprep.subr.bf16.mxu1 %v1513_v1 }
 0x241   :  { %543 = vmatpush1.bf16.msra.mxu0 %v1628_v16  ;;  %1301 = vmatpush3.bf16.msra.mxu1 %v1674_v24 }
 0x242   :  { %544 = vmatprep.subr.bf16.mxu0 %v1640_v18  ;;  %1302 = vmatprep.subr.bf16.mxu1 %v1513_v1 }
 0x245   :  { %545 = vmatpush1.bf16.msra.mxu0 %v1647_v19  ;;  %1303 = vmatpush3.bf16.msra.mxu1 %v1685_v26 }
 0x246   :  { %546 = vmatprep.subr.bf16.mxu0 %v1659_v21  ;;  %1304 = vmatprep.subr.bf16.mxu1 %v1513_v1 }
 0x249   :  { %547 = vmatpush1.bf16.msra.mxu0 %v1666_v22  ;;  %1305 = vmatpush3.bf16.msra.mxu1 %v1693_v27 }
 0x24a   :  { %646 = vmatprep.subr.bf16.mxu0 %v1539_v0  ;;  %1310 = vmatprep.subr.bf16.mxu1 %v1513_v1 }
 0x2ff   :  { %v452_v56 = vpop.f32.mrb[8].mxu0  ;;  %v493_v57 = vpop.f32.mrb[8].mxu1 }
 0x300   :  { %v499_v59 = vadd.f32 %v452_v56, %v416_v55  ;;  %v454_v60 = vpop.f32.mrb[9].mxu0  ;;  %v1288_v61 = vpop.f32.mrb[9].mxu1  ;;  %v516_v35 = vadd.f32 %v1739_v46, %v493_v57 }
 0x301   :  { %v456_v62 = vpop.f32.mrb[10].mxu0  ;;  %v496_v63 = vpop.f32.mrb[10].mxu1  ;;  %v509_v29 = vadd.f32 %v507_v58, %v454_v60 }
 0x302   :  { %v1135_v23 = vmul.f32 -1.442695, %v499_v59  ;;  %v457_v25 = vpop.f32.mrb[11].mxu0  ;;  %v1289_v28 = vpop.f32.mrb[11].mxu1 }
 0x303   :  { %v1136_v30 = vmul.f32 -1.442695, %v509_v29 }
 0x304   :  { %1445 = vpow2.f32 %v1135_v23 }
 0x305   :  { %1447 = vpow2.f32 %v1136_v30  ;;  %v632_v30 = vrot.slane %v530_v49, 4 }
 0x30e   :  { %v1446_v31 = vpop.eup %1445 }
 0x30f   :  { %v503_v32 = vadd.f32 1.0, %v1446_v31  ;;  %v1448_v33 = vpop.eup %1447 }
 0x310   :  { %v513_v34 = vadd.f32 1.0, %v1448_v33 }
 0x311   :  { %1449 = vrcp.f32 %v503_v32 }
 0x312   :  { %1451 = vrcp.f32 %v513_v34 }
 0x31b   :  { %v1450_v37 = vpop.eup %1449 }
 0x31c   :  { %v517_v38 = vmul.f32 %v1450_v37, %v516_v35  ;;  %v1452_v40 = vpop.eup %1451 }
 0x31d   :  { %v522_v41 = vsub.f32 1.0, %v1452_v40  ;;  %v524_v44 = vmul.f32 %v1452_v40, %v1791_v52  ;;  %v621_v52 = vrot.slane %v530_v49, 2 }
 0x31e   :  { %v520_v39 = vadd.f32 %v518_v36, %v517_v38 }
 0x320   :  { %1453 = vtanh.f32 %v520_v39 }
 0x32a   :  { %v1454_v42 = vpop.eup %1453 }
 0x32b   :  { %v523_v43 = vmul.f32 %v1454_v42, %v522_v41  ;;  %v1142_v41 = vld [vmem:[%s2056_s0 + $0xc] sm:$0x7] }
 0x32c   :  { %v644_v42 = vunpack.c.l.bf16 %v1142_v41 }
 0x32d   :  { %v1839_v45 = vadd.f32 %v524_v44, %v523_v43 }
 0x32f   :  { %1137 = vst [vmem:[%s2058_s3 + $0x4] sm:$0x3] %v1839_v45  ;;  %v531_v47 = vpack.c.bf16 %v1839_v45, %v1839_v45 }
 0x331   :  { %565 = vmatmul.mubr.bf16.vlgmr.msra.gmra.mrb[12].mxu0 %v531_v47  ;;  %1307 = vmatmul.mubr.bf16.vlgmr.msra.gmra.mrb[12].mxu1 %v531_v47 }
 0x332   :  { %647 = vmatpush1.bf16.msra.mxu0 %v1547_v3  ;;  %1311 = vmatpush3.bf16.msra.mxu1 %v1584_v9 }
 0x333   :  { %648 = vmatprep.subr.bf16.mxu0 %v1555_v4  ;;  %1312 = vmatprep.subr.bf16.mxu1 %v1513_v1 }
 0x334   :  { %678 = vmatprep.mubr.bf16.mxu0 %v1514_v2  ;;  %1326 = vmatprep.mubr.msk.bf16.mxu1 %vm1515_vm0, %v1513_v1 }
 0x336   :  { %649 = vmatpush1.bf16.msra.mxu0 %v1561_v5  ;;  %1313 = vmatpush3.bf16.msra.mxu1 %v1603_v12 }
 0x337   :  { %650 = vmatprep.subr.bf16.mxu0 %v1567_v6  ;;  %1314 = vmatprep.subr.bf16.mxu1 %v1513_v1 }
 0x33a   :  { %651 = vmatpush1.bf16.msra.mxu0 %v1573_v7  ;;  %1315 = vmatpush3.bf16.msra.mxu1 %v1615_v14 }
 0x33b   :  { %652 = vmatprep.subr.bf16.mxu0 %v1579_v8  ;;  %1316 = vmatprep.subr.bf16.mxu1 %v1513_v1 }
 0x33e   :  { %653 = vmatpush1.bf16.msra.mxu0 %v1590_v10  ;;  %1317 = vmatpush3.bf16.msra.mxu1 %v1634_v17 }
 0x33f   :  { %654 = vmatprep.subr.bf16.mxu0 %v1597_v11  ;;  %1318 = vmatprep.subr.bf16.mxu1 %v1513_v1 }
 0x342   :  { %655 = vmatpush1.bf16.msra.mxu0 %v1608_v13  ;;  %1319 = vmatpush3.bf16.msra.mxu1 %v1653_v20 }
 0x343   :  { %656 = vmatprep.subr.bf16.mxu0 %v1621_v15  ;;  %1320 = vmatprep.subr.bf16.mxu1 %v1513_v1 }
 0x346   :  { %657 = vmatpush1.bf16.msra.mxu0 %v1628_v16  ;;  %1321 = vmatpush3.bf16.msra.mxu1 %v1674_v24 }
 0x347   :  { %658 = vmatprep.subr.bf16.mxu0 %v1640_v18  ;;  %1322 = vmatprep.subr.bf16.mxu1 %v1513_v1 }
 0x34a   :  { %659 = vmatpush1.bf16.msra.mxu0 %v1647_v19  ;;  %1323 = vmatpush3.bf16.msra.mxu1 %v1685_v26 }
 0x34b   :  { %660 = vmatprep.subr.bf16.mxu0 %v1659_v21  ;;  %1324 = vmatprep.subr.bf16.mxu1 %v1513_v1 }
 0x34e   :  { %661 = vmatpush1.bf16.msra.mxu0 %v1666_v22  ;;  %1325 = vmatpush3.bf16.msra.mxu1 %v1693_v27 }
 0x34f   :  { %760 = vmatprep.subr.bf16.mxu0 %v1539_v0  ;;  %1330 = vmatprep.subr.bf16.mxu1 %v1513_v1 }
 0x404   :  { %v566_v50 = vpop.f32.mrb[12].mxu0  ;;  %v607_v51 = vpop.f32.mrb[12].mxu1 }
 0x405   :  { %v613_v53 = vadd.f32 %v566_v50, %v530_v49  ;;  %v568_v54 = vpop.f32.mrb[13].mxu0  ;;  %v1308_v55 = vpop.f32.mrb[13].mxu1  ;;  %v630_v29 = vadd.f32 %v1739_v46, %v607_v51 }
 0x406   :  { %v570_v56 = vpop.f32.mrb[14].mxu0  ;;  %v610_v57 = vpop.f32.mrb[14].mxu1  ;;  %v623_v61 = vadd.f32 %v621_v52, %v568_v54 }
 0x407   :  { %v1139_v58 = vmul.f32 -1.442695, %v613_v53  ;;  %v571_v59 = vpop.f32.mrb[15].mxu0  ;;  %v1309_v60 = vpop.f32.mrb[15].mxu1 }
 0x408   :  { %v1140_v62 = vmul.f32 -1.442695, %v623_v61 }
 0x409   :  { %1455 = vpow2.f32 %v1139_v58 }
 0x40a   :  { %1457 = vpow2.f32 %v1140_v62  ;;  %v746_v62 = vrot.slane %v644_v42, 4 }
 0x413   :  { %v1456_v63 = vpop.eup %1455 }
 0x414   :  { %v617_v23 = vadd.f32 1.0, %v1456_v63  ;;  %v1458_v25 = vpop.eup %1457 }
 0x415   :  { %v627_v28 = vadd.f32 1.0, %v1458_v25 }
 0x416   :  { %1459 = vrcp.f32 %v617_v23 }
 0x417   :  { %1461 = vrcp.f32 %v627_v28 }
 0x420   :  { %v1460_v31 = vpop.eup %1459 }
 0x421   :  { %v631_v32 = vmul.f32 %v1460_v31, %v630_v29  ;;  %v1462_v34 = vpop.eup %1461 }
 0x422   :  { %v636_v35 = vsub.f32 1.0, %v1462_v34  ;;  %v638_v38 = vmul.f32 %v1462_v34, %v1839_v45  ;;  %v735_v45 = vrot.slane %v644_v42, 2 }
 0x423   :  { %v634_v33 = vadd.f32 %v632_v30, %v631_v32 }
 0x425   :  { %1463 = vtanh.f32 %v634_v33 }
 0x42f   :  { %v1464_v36 = vpop.eup %1463 }
 0x430   :  { %v637_v37 = vmul.f32 %v1464_v36, %v636_v35 }
 0x432   :  { %v1887_v39 = vadd.f32 %v638_v38, %v637_v37 }
 0x434   :  { %1141 = vst [vmem:[%s2058_s3 + $0x6] sm:$0x3] %v1887_v39  ;;  %v645_v40 = vpack.c.bf16 %v1887_v39, %v1887_v39 }
 0x436   :  { %679 = vmatmul.mubr.bf16.vlgmr.msra.gmra.mrb[16].mxu0 %v645_v40  ;;  %1327 = vmatmul.mubr.bf16.vlgmr.msra.gmra.mrb[16].mxu1 %v645_v40 }
 0x437   :  { %761 = vmatpush1.bf16.msra.mxu0 %v1547_v3  ;;  %1331 = vmatpush3.bf16.msra.mxu1 %v1584_v9 }
 0x438   :  { %762 = vmatprep.subr.bf16.mxu0 %v1555_v4  ;;  %1332 = vmatprep.subr.bf16.mxu1 %v1513_v1 }
 0x439   :  { %792 = vmatprep.mubr.bf16.mxu0 %v1514_v2  ;;  %1346 = vmatprep.mubr.msk.bf16.mxu1 %vm1515_vm0, %v1513_v1 }
 0x43b   :  { %763 = vmatpush1.bf16.msra.mxu0 %v1561_v5  ;;  %1333 = vmatpush3.bf16.msra.mxu1 %v1603_v12 }
 0x43c   :  { %764 = vmatprep.subr.bf16.mxu0 %v1567_v6  ;;  %1334 = vmatprep.subr.bf16.mxu1 %v1513_v1 }
 0x43f   :  { %765 = vmatpush1.bf16.msra.mxu0 %v1573_v7  ;;  %1335 = vmatpush3.bf16.msra.mxu1 %v1615_v14 }
 0x440   :  { %766 = vmatprep.subr.bf16.mxu0 %v1579_v8  ;;  %1336 = vmatprep.subr.bf16.mxu1 %v1513_v1 }
 0x443   :  { %767 = vmatpush1.bf16.msra.mxu0 %v1590_v10  ;;  %1337 = vmatpush3.bf16.msra.mxu1 %v1634_v17 }
 0x444   :  { %768 = vmatprep.subr.bf16.mxu0 %v1597_v11  ;;  %1338 = vmatprep.subr.bf16.mxu1 %v1513_v1 }
 0x447   :  { %769 = vmatpush1.bf16.msra.mxu0 %v1608_v13  ;;  %1339 = vmatpush3.bf16.msra.mxu1 %v1653_v20 }
 0x448   :  { %770 = vmatprep.subr.bf16.mxu0 %v1621_v15  ;;  %1340 = vmatprep.subr.bf16.mxu1 %v1513_v1 }
 0x44b   :  { %771 = vmatpush1.bf16.msra.mxu0 %v1628_v16  ;;  %1341 = vmatpush3.bf16.msra.mxu1 %v1674_v24 }
 0x44c   :  { %772 = vmatprep.subr.bf16.mxu0 %v1640_v18  ;;  %1342 = vmatprep.subr.bf16.mxu1 %v1513_v1 }
 0x44f   :  { %773 = vmatpush1.bf16.msra.mxu0 %v1647_v19  ;;  %1343 = vmatpush3.bf16.msra.mxu1 %v1685_v26 }
 0x450   :  { %774 = vmatprep.subr.bf16.mxu0 %v1659_v21  ;;  %1344 = vmatprep.subr.bf16.mxu1 %v1513_v1 }
 0x453   :  { %775 = vmatpush1.bf16.msra.mxu0 %v1666_v22  ;;  %1345 = vmatpush3.bf16.msra.mxu1 %v1693_v27 }
 0x454   :  { %874 = vmatprep.subr.bf16.mxu0 %v1539_v0  ;;  %1350 = vmatprep.subr.bf16.mxu1 %v1513_v1 }
 0x509   :  { %v680_v43 = vpop.f32.mrb[16].mxu0  ;;  %v721_v44 = vpop.f32.mrb[16].mxu1 }
 0x50a   :  { %v727_v47 = vadd.f32 %v680_v43, %v644_v42  ;;  %v682_v48 = vpop.f32.mrb[17].mxu0  ;;  %v1328_v49 = vpop.f32.mrb[17].mxu1  ;;  %v744_v61 = vadd.f32 %v1739_v46, %v721_v44 }
 0x50b   :  { %v684_v50 = vpop.f32.mrb[18].mxu0  ;;  %v724_v51 = vpop.f32.mrb[18].mxu1  ;;  %v737_v55 = vadd.f32 %v735_v45, %v682_v48 }
 0x50c   :  { %v1143_v52 = vmul.f32 -1.442695, %v727_v47  ;;  %v685_v53 = vpop.f32.mrb[19].mxu0  ;;  %v1329_v54 = vpop.f32.mrb[19].mxu1 }
 0x50d   :  { %v1144_v56 = vmul.f32 -1.442695, %v737_v55 }
 0x50e   :  { %1465 = vpow2.f32 %v1143_v52 }
 0x50f   :  { %1467 = vpow2.f32 %v1144_v56 }
 0x518   :  { %v1466_v57 = vpop.eup %1465 }
 0x519   :  { %v731_v58 = vadd.f32 1.0, %v1466_v57  ;;  %v1468_v59 = vpop.eup %1467 }
 0x51a   :  { %v741_v60 = vadd.f32 1.0, %v1468_v59  ;;  %v1506_v59 = vld [vmem:[%s2055_s1 + $0x1c] ss:$12 sps:$4 sm:$0xff]  }
 0x51b   :  { %1469 = vrcp.f32 %v731_v58  ;;  %v1505_v58 = vld [vmem:[%s2055_s1] ss:$12 sps:$4 sm:$0xff]  }
 0x51c   :  { %1471 = vrcp.f32 %v741_v60  ;;  %v1507_v60 = vld [vmem:[%s2055_s1 + $0x18] ss:$12 sps:$4 sm:$0xff]  }
 0x525   :  { %v1470_v63 = vpop.eup %1469 }
 0x526   :  { %v745_v23 = vmul.f32 %v1470_v63, %v744_v61  ;;  %v1472_v28 = vpop.eup %1471  ;;  %v1510_v61 = vld [vmem:[%s2055_s1 + $0x4c] ss:$12 sps:$4 sm:$0xff]  }
 0x527   :  { %v750_v29 = vsub.f32 1.0, %v1472_v28  ;;  %v752_v32 = vmul.f32 %v1472_v28, %v1887_v39 }
 0x528   :  { %v748_v25 = vadd.f32 %v746_v62, %v745_v23  ;;  %v1512_v62 = vld [vmem:[%s2055_s1 + $0x64] ss:$12 sps:$4 sm:$0xff]  }
 0x52a   :  { %1473 = vtanh.f32 %v748_v25 }
 0x534   :  { %v1474_v30 = vpop.eup %1473 }
 0x535   :  { %v751_v31 = vmul.f32 %v1474_v30, %v750_v29 }
 0x537   :  { %v1935_v33 = vadd.f32 %v752_v32, %v751_v31 }
 0x539   :  { %1145 = vst [vmem:[%s2058_s3 + $0x8] sm:$0x3] %v1935_v33  ;;  %v759_v34 = vpack.c.bf16 %v1935_v33, %v1935_v33 }
 0x53b   :  { %793 = vmatmul.mubr.bf16.vlgmr.msra.gmra.mrb[20].mxu0 %v759_v34  ;;  %1347 = vmatmul.mubr.bf16.vlgmr.msra.gmra.mrb[20].mxu1 %v759_v34 }
 0x53c   :  { %875 = vmatpush1.bf16.msra.mxu0 %v1547_v3  ;;  %1351 = vmatpush3.bf16.msra.mxu1 %v1584_v9  ;;  %v1146_v3 = vld [vmem:[%s2056_s0 + $0xf] sm:$0x7] }
 0x53d   :  { %876 = vmatprep.subr.bf16.mxu0 %v1555_v4  ;;  %1352 = vmatprep.subr.bf16.mxu1 %v1513_v1  ;;  %v758_v4 = vunpack.c.l.bf16 %v1146_v3 }
 0x53e   :  { %906 = vmatprep.mubr.bf16.mxu0 %v1514_v2  ;;  %1366 = vmatprep.mubr.msk.bf16.mxu1 %vm1515_vm0, %v1513_v1 }
 0x53f   :  { %v860_v47 = vrot.slane %v758_v4, 4 }
 0x540   :  { %877 = vmatpush1.bf16.msra.mxu0 %v1561_v5  ;;  %1353 = vmatpush3.bf16.msra.mxu1 %v1603_v12 }
 0x541   :  { %878 = vmatprep.subr.bf16.mxu0 %v1567_v6  ;;  %1354 = vmatprep.subr.bf16.mxu1 %v1513_v1 }
 0x544   :  { %879 = vmatpush1.bf16.msra.mxu0 %v1573_v7  ;;  %1355 = vmatpush3.bf16.msra.mxu1 %v1615_v14  ;;  %v849_v7 = vrot.slane %v758_v4, 2 }
 0x545   :  { %880 = vmatprep.subr.bf16.mxu0 %v1579_v8  ;;  %1356 = vmatprep.subr.bf16.mxu1 %v1513_v1 }
 0x548   :  { %881 = vmatpush1.bf16.msra.mxu0 %v1590_v10  ;;  %1357 = vmatpush3.bf16.msra.mxu1 %v1634_v17 }
 0x549   :  { %882 = vmatprep.subr.bf16.mxu0 %v1597_v11  ;;  %1358 = vmatprep.subr.bf16.mxu1 %v1513_v1 }
 0x54c   :  { %883 = vmatpush1.bf16.msra.mxu0 %v1608_v13  ;;  %1359 = vmatpush3.bf16.msra.mxu1 %v1653_v20 }
 0x54d   :  { %884 = vmatprep.subr.bf16.mxu0 %v1621_v15  ;;  %1360 = vmatprep.subr.bf16.mxu1 %v1513_v1 }
 0x550   :  { %885 = vmatpush1.bf16.msra.mxu0 %v1628_v16  ;;  %1361 = vmatpush3.bf16.msra.mxu1 %v1674_v24 }
 0x551   :  { %886 = vmatprep.subr.bf16.mxu0 %v1640_v18  ;;  %1362 = vmatprep.subr.bf16.mxu1 %v1513_v1 }
 0x554   :  { %887 = vmatpush1.bf16.msra.mxu0 %v1647_v19  ;;  %1363 = vmatpush3.bf16.msra.mxu1 %v1685_v26 }
 0x555   :  { %888 = vmatprep.subr.bf16.mxu0 %v1659_v21  ;;  %1364 = vmatprep.subr.bf16.mxu1 %v1513_v1 }
 0x558   :  { %889 = vmatpush1.bf16.msra.mxu0 %v1666_v22  ;;  %1365 = vmatpush3.bf16.msra.mxu1 %v1693_v27 }
 0x559   :  { %988 = vmatprep.subr.bf16.mxu0 %v1539_v0  ;;  %1370 = vmatprep.subr.bf16.mxu1 %v1513_v1 }
 0x60e   :  { %v794_v5 = vpop.f32.mrb[20].mxu0  ;;  %v835_v6 = vpop.f32.mrb[20].mxu1 }
 0x60f   :  { %v841_v8 = vadd.f32 %v794_v5, %v758_v4  ;;  %v796_v10 = vpop.f32.mrb[21].mxu0  ;;  %v1348_v11 = vpop.f32.mrb[21].mxu1  ;;  %v858_v45 = vadd.f32 %v1739_v46, %v835_v6 }
 0x610   :  { %v798_v35 = vpop.f32.mrb[22].mxu0  ;;  %v838_v36 = vpop.f32.mrb[22].mxu1  ;;  %v851_v40 = vadd.f32 %v849_v7, %v796_v10  ;;  %v1154_v11 = vld [vmem:[%s2056_s0 + $0x15] sm:$0x7] }
 0x611   :  { %v1147_v37 = vmul.f32 -1.442695, %v841_v8  ;;  %v799_v38 = vpop.f32.mrb[23].mxu0  ;;  %v1349_v39 = vpop.f32.mrb[23].mxu1  ;;  %v986_v35 = vunpack.c.l.bf16 %v1154_v11 }
 0x612   :  { %v1148_v0 = vmul.f32 -1.442695, %v851_v40 }
 0x613   :  { %1475 = vpow2.f32 %v1147_v37  ;;  %v1077_v38 = vrot.slane %v986_v35, 2 }
 0x614   :  { %1477 = vpow2.f32 %v1148_v0 }
 0x61d   :  { %v1476_v41 = vpop.eup %1475 }
 0x61e   :  { %v845_v42 = vadd.f32 1.0, %v1476_v41  ;;  %v1478_v43 = vpop.eup %1477 }
 0x61f   :  { %v855_v44 = vadd.f32 1.0, %v1478_v43 }
 0x620   :  { %1479 = vrcp.f32 %v845_v42 }
 0x621   :  { %1481 = vrcp.f32 %v855_v44 }
 0x62a   :  { %v1480_v48 = vpop.eup %1479 }
 0x62b   :  { %v859_v49 = vmul.f32 %v1480_v48, %v858_v45  ;;  %v1482_v51 = vpop.eup %1481 }
 0x62c   :  { %v864_v52 = vsub.f32 1.0, %v1482_v51  ;;  %v866_v55 = vmul.f32 %v1482_v51, %v1935_v33 }
 0x62d   :  { %v862_v50 = vadd.f32 %v860_v47, %v859_v49 }
 0x62f   :  { %1483 = vtanh.f32 %v862_v50 }
 0x639   :  { %v1484_v53 = vpop.eup %1483 }
 0x63a   :  { %v865_v54 = vmul.f32 %v1484_v53, %v864_v52 }
 0x63c   :  { %v1983_v56 = vadd.f32 %v866_v55, %v865_v54  ;;  %v1088_v54 = vrot.slane %v986_v35, 4 }
 0x63e   :  { %1149 = vst [vmem:[%s2058_s3 + $0xa] sm:$0x3] %v1983_v56  ;;  %v873_v57 = vpack.c.bf16 %v1983_v56, %v1983_v56 }
 0x640   :  { %907 = vmatmul.mubr.bf16.vlgmr.msra.gmra.mrb[24].mxu0 %v873_v57  ;;  %1367 = vmatmul.mubr.bf16.vlgmr.msra.gmra.mrb[24].mxu1 %v873_v57 }
 0x641   :  { %989 = vmatpush1.bf16.msra.mxu0 %v1505_v58  ;;  %1371 = vmatpush3.bf16.msra.mxu1 %v1584_v9  ;;  %v1508_v9 = vld [vmem:[%s2055_s1 + $0x34] ss:$12 sps:$4 sm:$0xff]  }
 0x642   :  { %990 = vmatprep.subr.bf16.mxu0 %v1506_v59  ;;  %1372 = vmatprep.subr.bf16.mxu1 %v1513_v1 }
 0x643   :  { %1020 = vmatprep.mubr.bf16.mxu0 %v1514_v2  ;;  %1386 = vmatprep.mubr.msk.bf16.mxu1 %vm1515_vm0, %v1513_v1  ;;  %v1509_v2 = vld [vmem:[%s2055_s1 + $0x30] ss:$12 sps:$4 sm:$0xff]  }
 0x645   :  { %991 = vmatpush1.bf16.msra.mxu0 %v1507_v60  ;;  %1373 = vmatpush3.bf16.msra.mxu1 %v1603_v12  ;;  %v1511_v12 = vld [vmem:[%s2055_s1 + $0x48] ss:$12 sps:$4 sm:$0xff]  }
 0x646   :  { %992 = vmatprep.subr.bf16.mxu0 %v1508_v9  ;;  %1374 = vmatprep.subr.bf16.mxu1 %v1513_v1 }
 0x649   :  { %993 = vmatpush1.bf16.msra.mxu0 %v1509_v2  ;;  %1375 = vmatpush3.bf16.msra.mxu1 %v1615_v14 }
 0x64a   :  { %994 = vmatprep.subr.bf16.mxu0 %v1510_v61  ;;  %1376 = vmatprep.subr.bf16.mxu1 %v1513_v1 }
 0x64d   :  { %995 = vmatpush1.bf16.msra.mxu0 %v1511_v12  ;;  %1377 = vmatpush3.bf16.msra.mxu1 %v1634_v17 }
 0x64e   :  { %996 = vmatprep.subr.bf16.mxu0 %v1512_v62  ;;  %1378 = vmatprep.subr.bf16.mxu1 %v1513_v1 }
 0x651   :  { %997 = vmatpush1.bf16.msra.mxu0 %v1608_v13  ;;  %1379 = vmatpush3.bf16.msra.mxu1 %v1653_v20  ;;  %v1150_v13 = vld [vmem:[%s2056_s0 + $0x12] sm:$0x7] }
 0x652   :  { %998 = vmatprep.subr.bf16.mxu0 %v1621_v15  ;;  %1380 = vmatprep.subr.bf16.mxu1 %v1513_v1  ;;  %v872_v14 = vunpack.c.l.bf16 %v1150_v13 }
 0x654   :  { %v963_v17 = vrot.slane %v872_v14, 2  ;;  %v974_v31 = vrot.slane %v872_v14, 4 }
 0x655   :  { %999 = vmatpush1.bf16.msra.mxu0 %v1628_v16  ;;  %1381 = vmatpush3.bf16.msra.mxu1 %v1674_v24 }
 0x656   :  { %1000 = vmatprep.subr.bf16.mxu0 %v1640_v18  ;;  %1382 = vmatprep.subr.bf16.mxu1 %v1513_v1 }
 0x659   :  { %1001 = vmatpush1.bf16.msra.mxu0 %v1647_v19  ;;  %1383 = vmatpush3.bf16.msra.mxu1 %v1685_v26 }
 0x65a   :  { %1002 = vmatprep.subr.bf16.mxu0 %v1659_v21  ;;  %1384 = vmatprep.subr.bf16.mxu1 %v1513_v1 }
 0x65d   :  { %1003 = vmatpush1.bf16.msra.mxu0 %v1666_v22  ;;  %1385 = vmatpush3.bf16.msra.mxu1 %v1693_v27 }
 0x713   :  { %v908_v15 = vpop.f32.mrb[24].mxu0  ;;  %v949_v16 = vpop.f32.mrb[24].mxu1 }
 0x714   :  { %v955_v18 = vadd.f32 %v908_v15, %v872_v14  ;;  %v910_v19 = vpop.f32.mrb[25].mxu0  ;;  %v1368_v20 = vpop.f32.mrb[25].mxu1  ;;  %v972_v30 = vadd.f32 %v1739_v46, %v949_v16 }
 0x715   :  { %v912_v24 = vpop.f32.mrb[26].mxu0  ;;  %v952_v26 = vpop.f32.mrb[26].mxu1  ;;  %v965_v23 = vadd.f32 %v963_v17, %v910_v19 }
 0x716   :  { %v1151_v21 = vmul.f32 -1.442695, %v955_v18  ;;  %v913_v63 = vpop.f32.mrb[27].mxu0  ;;  %v1369_v1 = vpop.f32.mrb[27].mxu1 }
 0x717   :  { %v1152_v22 = vmul.f32 -1.442695, %v965_v23 }
 0x718   :  { %1485 = vpow2.f32 %v1151_v21 }
 0x719   :  { %1487 = vpow2.f32 %v1152_v22 }
 0x722   :  { %v1486_v27 = vpop.eup %1485 }
 0x723   :  { %v959_v25 = vadd.f32 1.0, %v1486_v27  ;;  %v1488_v28 = vpop.eup %1487 }
 0x724   :  { %v969_v29 = vadd.f32 1.0, %v1488_v28 }
 0x725   :  { %1489 = vrcp.f32 %v959_v25 }
 0x726   :  { %1491 = vrcp.f32 %v969_v29 }
 0x72f   :  { %v1490_v32 = vpop.eup %1489 }
 0x730   :  { %v973_v33 = vmul.f32 %v1490_v32, %v972_v30  ;;  %v1492_v3 = vpop.eup %1491 }
 0x731   :  { %v978_v4 = vsub.f32 1.0, %v1492_v3  ;;  %v980_v7 = vmul.f32 %v1492_v3, %v1983_v56 }
 0x732   :  { %v976_v34 = vadd.f32 %v974_v31, %v973_v33 }
 0x734   :  { %1493 = vtanh.f32 %v976_v34 }
 0x73e   :  { %v1494_v5 = vpop.eup %1493 }
 0x73f   :  { %v979_v6 = vmul.f32 %v1494_v5, %v978_v4 }
 0x741   :  { %v981_v8 = vadd.f32 %v980_v7, %v979_v6 }
 0x743   :  { %1153 = vst [vmem:[%s2058_s3 + $0xc] sm:$0x3] %v981_v8  ;;  %v987_v10 = vpack.c.bf16 %v981_v8, %v981_v8 }
 0x745   :  { %1021 = vmatmul.mubr.bf16.vlgmr.msra.gmra.mrb[28].mxu0 %v987_v10  ;;  %1387 = vmatmul.mubr.bf16.vlgmr.msra.gmra.mrb[28].mxu1 %v987_v10 }
 0x818   :  { %v1022_v36 = vpop.f32.mrb[28].mxu0  ;;  %v1063_v37 = vpop.f32.mrb[28].mxu1 }
 0x819   :  { %v1069_v39 = vadd.f32 %v1022_v36, %v986_v35  ;;  %v1024_v40 = vpop.f32.mrb[29].mxu0  ;;  %v1388_v0 = vpop.f32.mrb[29].mxu1  ;;  %v1086_v53 = vadd.f32 %v1739_v46, %v1063_v37 }
 0x81a   :  { %v1026_v41 = vpop.f32.mrb[30].mxu0  ;;  %v1066_v42 = vpop.f32.mrb[30].mxu1  ;;  %v1079_v47 = vadd.f32 %v1077_v38, %v1024_v40 }
 0x81b   :  { %v1155_v43 = vmul.f32 -1.442695, %v1069_v39  ;;  %v1027_v44 = vpop.f32.mrb[31].mxu0  ;;  %v1389_v45 = vpop.f32.mrb[31].mxu1 }
 0x81c   :  { %v1156_v48 = vmul.f32 -1.442695, %v1079_v47 }
 0x81d   :  { %1495 = vpow2.f32 %v1155_v43 }
 0x81e   :  { %1497 = vpow2.f32 %v1156_v48 }
 0x827   :  { %v1496_v49 = vpop.eup %1495 }
 0x828   :  { %v1073_v50 = vadd.f32 1.0, %v1496_v49  ;;  %v1498_v51 = vpop.eup %1497 }
 0x829   :  { %v1083_v52 = vadd.f32 1.0, %v1498_v51 }
 0x82a   :  { %1499 = vrcp.f32 %v1073_v50 }
 0x82b   :  { %1501 = vrcp.f32 %v1083_v52 }
 0x834   :  { %v1500_v55 = vpop.eup %1499 }
 0x835   :  { %v1087_v56 = vmul.f32 %v1500_v55, %v1086_v53  ;;  %v1502_v58 = vpop.eup %1501 }
 0x836   :  { %v1092_v59 = vsub.f32 1.0, %v1502_v58  ;;  %v1094_v2 = vmul.f32 %v1502_v58, %v981_v8 }
 0x837   :  { %v1090_v57 = vadd.f32 %v1088_v54, %v1087_v56 }
 0x839   :  { %1503 = vtanh.f32 %v1090_v57 }
 0x843   :  { %v1504_v60 = vpop.eup %1503 }
 0x844   :  { %v1093_v9 = vmul.f32 %v1504_v60, %v1092_v59 }
 0x846   :  { %v1095_v61 = vadd.f32 %v1094_v2, %v1093_v9 }
 0x848   :  { %1157 = vst [vmem:[%s2058_s3 + $0xe] sm:$0x3] %v1095_v61  ;;  %1098 = vst [vmem:[#allocation2] sm:$0x3] %v1095_v61 }

</bundles_post_ra>
